<compile_context>
chip_gen: v7x
topology: tpu7x:2x2x1
jax: 0.10.0
libtpu: 0.0.40
codegen_flags: <defaults>
</compile_context>

<pallas_src>
import numpy as np
import jax
import jax.numpy as jnp
from jax.experimental import pallas as pl
from jax.experimental.pallas import tpu as pltpu

_BN_EPS = 1e-5
_HP = jax.lax.Precision.HIGHEST


# --------------------------------------------------------------------------------------
# Host-side lowering of 3x3 (transposed) convolutions to per-tap matmul matrices.
# --------------------------------------------------------------------------------------
def _conv_tap_matrices(w4, bias, Hin, Win, N, up, stride, pad_t, pad_b, pad_l, pad_r):
    """Lower a 3x3 (possibly transposed) conv to per-vertical-tap matrices.

    w4: (3, 3, Cin, Cout) kernel (already flipped / channel-swapped for transposed convs).
    up: zero-upsampling factor of the input (1 = normal conv, 2 = stride-2 ConvTranspose).
    stride: conv stride over the (upsampled, padded) input.
    Returns S (3, N*OH, N*Hin), M (3, Win*Cin, OW*Cout), bias_row (1, OW*Cout), OH, OW.
    """
    Cin, Cout = w4.shape[2], w4.shape[3]
    Hp = (Hin - 1) * up + 1 + pad_t + pad_b
    Wp = (Win - 1) * up + 1 + pad_l + pad_r
    OH = (Hp - 3) // stride + 1
    OW = (Wp - 3) // stride + 1
    S = np.zeros((3, N * OH, N * Hin), np.float32)
    M = np.zeros((3, Win * Cin, OW * Cout), np.float32)
    for kh in range(3):
        for oh in range(OH):
            r = stride * oh + kh - pad_t          # row in upsampled (unpadded) coordinates
            if r < 0 or r % up != 0 or r // up >= Hin:
                continue                           # zero padding / upsampling hole
            hin = r // up
            for n in range(N):
                S[kh, n * OH + oh, n * Hin + hin] = 1.0
        for ow in range(OW):
            for kw in range(3):
                c = stride * ow + kw - pad_l
                if c < 0 or c % up != 0 or c // up >= Win:
                    continue
                win = c // up
                M[kh, win * Cin:(win + 1) * Cin, ow * Cout:(ow + 1) * Cout] += w4[kh, kw]
    bias_row = np.tile(np.asarray(bias, np.float32).reshape(1, Cout), (1, OW))
    return S, M, bias_row, OH, OW


def prepare_params(p, batch, lat_dim):
    """Pre-transform all PyTorch-layout weights (once) into kernel-ready matrices."""
    N = batch
    plan, flat = [], []
    f32 = lambda a: np.asarray(a, np.float32)

    def conv_w4(w):       # Conv2d weight (Cout, Cin, 3, 3) -> (kh, kw, Cin, Cout)
        return np.transpose(f32(w), (2, 3, 1, 0))

    def convT_w4(w):      # ConvTranspose2d weight (Cin, Cout, 3, 3) -> flipped conv form
        wt = f32(w)
        return np.ascontiguousarray(np.transpose(wt[:, :, ::-1, ::-1], (2, 3, 0, 1)))

    def add_conv(w4, b, Hin, Win, up, stride, pad, out_pad, bn, act):
        if up == 1:                      # normal conv
            pt = pb = pl_ = pr = pad
        else:                            # transposed conv as conv over zero-upsampled input
            pt = pl_ = 2 - pad
            pb = pr = 2 - pad + out_pad
        S, M, bias_row, OH, OW = _conv_tap_matrices(
            w4, b, Hin, Win, N, up, stride, pt, pb, pl_, pr)
        Cout = w4.shape[3]
        if bn is None:
            plan.append(("conv", False, act))
            flat.extend([S, M, bias_row])
        else:
            g, bb = bn
            V = np.concatenate(
                [bias_row,
                 np.tile(f32(g).reshape(1, Cout), (1, OW)),
                 np.tile(f32(bb).reshape(1, Cout), (1, OW))], axis=0)      # (3, OW*Cout)
            # Q averages, per channel, over the OW width positions (columns share rows
            # for the (N, OH) part; the row-mean is taken in-kernel).
            Q = np.zeros((OW * Cout, OW * Cout), np.float32)
            for co in range(Cout):
                Q[co::Cout, co::Cout] = 1.0 / OW
            plan.append(("conv", True, act))
            flat.extend([S, M, V, Q])

    # ----------------------------- encoder -----------------------------
    add_conv(conv_w4(p["e_c1_w"]), f32(p["e_c1_b"]), 28, 28, 1, 2, 1, 0, None, "relu")
    add_conv(conv_w4(p["e_c2_w"]), f32(p["e_c2_b"]), 14, 14, 1, 2, 1, 0,
             (p["e_bn_g"], p["e_bn_b"]), "relu")
    add_conv(conv_w4(p["e_c3_w"]), f32(p["e_c3_b"]), 7, 7, 1, 2, 0, 0, None, "relu")

    # Flatten (PyTorch (C,H,W) order) + Linear(288, 128), folded into tap form.
    W = f32(p["e_l1_w"])                              # (288, 128) stored as (in, out)
    S = np.zeros((3, N, N * 3), np.float32)
    M = np.zeros((3, 96, 128), np.float32)
    for h in range(3):
        for n in range(N):
            S[h, n, n * 3 + h] = 1.0
        for w in range(3):
            rows = np.arange(32) * 9 + h * 3 + w      # flat index = c*9 + h*3 + w
            M[h, w * 32:(w + 1) * 32, :] = W[rows, :]
    plan.append(("flatten_linear", False, "relu"))
    flat.extend([S, M, f32(p["e_l1_b"]).reshape(1, 128)])

    plan.append(("dense", False, "none"))
    flat.extend([f32(p["e_l2_w"]), f32(p["e_l2_b"]).reshape(1, lat_dim)])

    # ----------------------------- decoder -----------------------------
    plan.append(("dense", False, "relu"))
    flat.extend([f32(p["d_l1_w"]), f32(p["d_l1_b"]).reshape(1, 128)])

    # Linear(128, 288) + Unflatten(32,3,3), folded into (scatter) tap form.
    W = f32(p["d_l2_w"])                              # (128, 288)
    b = f32(p["d_l2_b"])
    S = np.zeros((3, N * 3, N), np.float32)
    M = np.zeros((3, 128, 96), np.float32)
    BV = np.zeros((3, 96), np.float32)
    for h in range(3):
        for n in range(N):
            S[h, n * 3 + h, n] = 1.0
        for w in range(3):
            cols = np.arange(32) * 9 + h * 3 + w
            M[h, :, w * 32:(w + 1) * 32] = W[:, cols]
            BV[h, w * 32:(w + 1) * 32] = b[cols]
    plan.append(("unflatten_linear", False, "relu"))
    flat.extend([S, M, BV])

    add_conv(convT_w4(p["d_c1_w"]), f32(p["d_c1_b"]), 3, 3, 2, 1, 0, 0,
             (p["d_bn1_g"], p["d_bn1_b"]), "relu")
    add_conv(convT_w4(p["d_c2_w"]), f32(p["d_c2_b"]), 7, 7, 2, 1, 1, 1,
             (p["d_bn2_g"], p["d_bn2_b"]), "relu")
    add_conv(convT_w4(p["d_c3_w"]), f32(p["d_c3_b"]), 14, 14, 2, 1, 1, 1, None, "sigmoid")

    return plan, flat


# --------------------------------------------------------------------------------------
# The single fused Pallas kernel: whole forward pass, everything VMEM resident.
# --------------------------------------------------------------------------------------
def _make_forward_kernel(plan):
    def kernel(*refs):
        x_ref, param_refs, o_ref = refs[0], refs[1:-1], refs[-1]
        cursor = [0]

        def take():
            r = param_refs[cursor[0]]
            cursor[0] += 1
            return r

        def act_fn(y, act):
            if act == "relu":
                return jnp.maximum(y, 0.0)
            if act == "sigmoid":
                return 1.0 / (1.0 + jnp.exp(-y))
            return y

        def tap_matmul(S_ref, a, M_ref):
            acc = None
            for t in range(S_ref.shape[0]):
                y = jnp.dot(S_ref[t], a, preferred_element_type=jnp.float32)
                y = jnp.dot(y, M_ref[t], preferred_element_type=jnp.float32)
                acc = y if acc is None else acc + y
            return acc

        a = x_ref[...]
        for kind, bn, act in plan:
            if kind == "conv":
                S_ref, M_ref, V_ref = take(), take(), take()
                Q_ref = take() if bn else None
                v = V_ref[...]
                y = tap_matmul(S_ref, a, M_ref) + v[0:1, :]
                if bn:
                    Q = Q_ref[...]
                    # Per-channel train-mode batch stats (biased variance), exact under
                    # the (rows=(n,oh), cols=(ow,c)) layout: row-mean x width-average (Q).
                    mean_b = jnp.mean(jnp.dot(y, Q, preferred_element_type=jnp.float32),
                                      axis=0, keepdims=True)
                    msq_b = jnp.mean(jnp.dot(y * y, Q, preferred_element_type=jnp.float32),
                                     axis=0, keepdims=True)
                    var_b = msq_b - mean_b * mean_b
                    y = (y - mean_b) * jax.lax.rsqrt(var_b + _BN_EPS) * v[1:2, :] + v[2:3, :]
                a = act_fn(y, act)
            elif kind == "dense":
                M_ref, b_ref = take(), take()
                y = jnp.dot(a, M_ref[...], preferred_element_type=jnp.float32) + b_ref[...]
                a = act_fn(y, act)
            elif kind == "flatten_linear":
                S_ref, M_ref, b_ref = take(), take(), take()
                y = tap_matmul(S_ref, a, M_ref) + b_ref[...]
                a = act_fn(y, act)
            else:  # "unflatten_linear"
                S_ref, M_ref, bv_ref = take(), take(), take()
                bv = bv_ref[...]
                acc = None
                for t in range(3):
                    y = jnp.dot(a, M_ref[t], preferred_element_type=jnp.float32) + bv[t:t + 1, :]
                    y = jnp.dot(S_ref[t], y, preferred_element_type=jnp.float32)
                    acc = y if acc is None else acc + y
                a = act_fn(acc, act)
        o_ref[...] = a

    return kernel


def build_autoencoder(params, batch, lat_dim):
    plan, flat = prepare_params(params, batch, lat_dim)
    kernel = _make_forward_kernel(plan)
    vmem = pl.BlockSpec(memory_space=pltpu.MemorySpace.VMEM)
    call = pl.pallas_call(
        kernel,
        out_shape=jax.ShapeDtypeStruct((batch * 28, 28), jnp.float32),
        in_specs=[vmem] * (1 + len(flat)),
        out_specs=vmem,
    )
    flat_j = tuple(jnp.asarray(a) for a in flat)

    def forward(x_nchw):
        # NCHW (N,1,28,28) -> rows=(n,h), cols=(w, c=1)
        x2d = x_nchw.reshape(batch * 28, 28).astype(jnp.float32)
        y2d = call(x2d, *flat_j)
        return y2d.reshape(batch, 1, 28, 28)

    return forward


# --------------------------------------------------------------------------------------
# Parameters (PyTorch layouts) and a plain-XLA reference used only for a numerical check.
# --------------------------------------------------------------------------------------
def init_params(key, lat_dim):
    ks = iter(jax.random.split(key, 32))

    def rnd(shape, fan_in):
        return (1.0 / jnp.sqrt(jnp.float32(fan_in))) * jax.random.normal(next(ks), shape, jnp.float32)

    p = {}
    p["e_c1_w"] = rnd((8, 1, 3, 3), 9);         p["e_c1_b"] = rnd((8,), 9)
    p["e_c2_w"] = rnd((16, 8, 3, 3), 72);       p["e_c2_b"] = rnd((16,), 72)
    p["e_bn_g"] = jnp.ones((16,), jnp.float32); p["e_bn_b"] = jnp.zeros((16,), jnp.float32)
    p["e_c3_w"] = rnd((32, 16, 3, 3), 144);     p["e_c3_b"] = rnd((32,), 144)
    p["e_l1_w"] = rnd((288, 128), 288);         p["e_l1_b"] = rnd((128,), 288)
    p["e_l2_w"] = rnd((128, lat_dim), 128);     p["e_l2_b"] = rnd((lat_dim,), 128)
    p["d_l1_w"] = rnd((lat_dim, 128), lat_dim); p["d_l1_b"] = rnd((128,), lat_dim)
    p["d_l2_w"] = rnd((128, 288), 128);         p["d_l2_b"] = rnd((288,), 128)
    p["d_c1_w"] = rnd((32, 16, 3, 3), 32 * 9);  p["d_c1_b"] = rnd((16,), 32 * 9)
    p["d_bn1_g"] = jnp.ones((16,), jnp.float32); p["d_bn1_b"] = jnp.zeros((16,), jnp.float32)
    p["d_c2_w"] = rnd((16, 8, 3, 3), 16 * 9);   p["d_c2_b"] = rnd((8,), 16 * 9)
    p["d_bn2_g"] = jnp.ones((8,), jnp.float32); p["d_bn2_b"] = jnp.zeros((8,), jnp.float32)
    p["d_c3_w"] = rnd((8, 1, 3, 3), 8 * 9);     p["d_c3_b"] = rnd((1,), 8 * 9)
    return p


def reference_forward(x_nchw, p):
    """Plain-JAX/XLA reference of the same module (used only for a numerical cross-check)."""
    dn = ("NCHW", "OIHW", "NCHW")
    relu = lambda t: jnp.maximum(t, 0.0)

    def conv(x, w, b, stride, pad):
        y = jax.lax.conv_general_dilated(x, w, (stride, stride), [(pad, pad), (pad, pad)],
                                         dimension_numbers=dn, precision=_HP)
        return y + b.reshape(1, -1, 1, 1)

    def convT(x, w_t, b, stride, pad, out_pad):
        w_conv = jnp.flip(w_t, (2, 3)).transpose(1, 0, 2, 3)     # (Cout, Cin, kh, kw)
        lo, hi = 2 - pad, 2 - pad + out_pad
        y = jax.lax.conv_general_dilated(x, w_conv, (1, 1), [(lo, hi), (lo, hi)],
                                         lhs_dilation=(stride, stride),
                                         dimension_numbers=dn, precision=_HP)
        return y + b.reshape(1, -1, 1, 1)

    def bn(x, g, bt):
        mean = jnp.mean(x, axis=(0, 2, 3), keepdims=True)
        var = jnp.mean(jnp.square(x - mean), axis=(0, 2, 3), keepdims=True)
        return (x - mean) * jax.lax.rsqrt(var + _BN_EPS) * g.reshape(1, -1, 1, 1) \
            + bt.reshape(1, -1, 1, 1)

    n = x_nchw.shape[0]
    h = relu(conv(x_nchw, p["e_c1_w"], p["e_c1_b"], 2, 1))
    h = relu(bn(conv(h, p["e_c2_w"], p["e_c2_b"], 2, 1), p["e_bn_g"], p["e_bn_b"]))
    h = relu(conv(h, p["e_c3_w"], p["e_c3_b"], 2, 0))
    z = relu(jnp.dot(h.reshape(n, 288), p["e_l1_w"], precision=_HP) + p["e_l1_b"])
    z = jnp.dot(z, p["e_l2_w"], precision=_HP) + p["e_l2_b"]
    z = relu(jnp.dot(z, p["d_l1_w"], precision=_HP) + p["d_l1_b"])
    z = relu(jnp.dot(z, p["d_l2_w"], precision=_HP) + p["d_l2_b"])
    h = z.reshape(n, 32, 3, 3)
    h = relu(bn(convT(h, p["d_c1_w"], p["d_c1_b"], 2, 0, 0), p["d_bn1_g"], p["d_bn1_b"]))
    h = relu(bn(convT(h, p["d_c2_w"], p["d_c2_b"], 2, 1, 1), p["d_bn2_g"], p["d_bn2_b"]))
    h = convT(h, p["d_c3_w"], p["d_c3_b"], 2, 1, 1)
    return jax.nn.sigmoid(h)


if __name__ == "__main__":
    key = jax.random.PRNGKey(0)
    k_x, k_p = jax.random.split(key)
    lat_dim, batch = 16, 2

    # Forward pass requires 28x28 spatial input (flatten -> 3*3*32 = 288).
    x = jax.random.normal(k_x, (batch, 1, 28, 28), jnp.float32)
    params = init_params(k_p, lat_dim)

    forward = jax.jit(build_autoencoder(params, batch=batch, lat_dim=lat_dim))
    out = jax.block_until_ready(forward(x))

    assert out.shape == (batch, 1, 28, 28), out.shape
    assert bool(jnp.all(jnp.isfinite(out)))
    assert bool(jnp.all((out >= 0.0) & (out <= 1.0)))   # sigmoid output range

    # Numerical cross-check of the fused kernel against a plain-XLA reference.
    # (Loose-ish tolerance only to stay robust to MXU f32-emulation differences.)
    ref = jax.block_until_ready(jax.jit(reference_forward)(x, params))
    max_err = float(jnp.max(jnp.abs(out - ref)))
    assert max_err < 2e-2, f"kernel/reference mismatch, max abs err = {max_err}"

    print("KERNEL_OK")
</pallas_src>

<mosaic_0001>
module attributes {stable_mosaic.version = 11 : i64} {
  func.func @kernel(%arg0: memref<56x28xf32, #tpu.memory_space<vmem>>, %arg1: memref<3x28x56xf32, #tpu.memory_space<vmem>>, %arg2: memref<3x28x112xf32, #tpu.memory_space<vmem>>, %arg3: memref<1x112xf32, #tpu.memory_space<vmem>>, %arg4: memref<3x14x28xf32, #tpu.memory_space<vmem>>, %arg5: memref<3x112x112xf32, #tpu.memory_space<vmem>>, %arg6: memref<3x112xf32, #tpu.memory_space<vmem>>, %arg7: memref<112x112xf32, #tpu.memory_space<vmem>>, %arg8: memref<3x6x14xf32, #tpu.memory_space<vmem>>, %arg9: memref<3x112x96xf32, #tpu.memory_space<vmem>>, %arg10: memref<1x96xf32, #tpu.memory_space<vmem>>, %arg11: memref<3x2x6xf32, #tpu.memory_space<vmem>>, %arg12: memref<3x96x128xf32, #tpu.memory_space<vmem>>, %arg13: memref<1x128xf32, #tpu.memory_space<vmem>>, %arg14: memref<128x16xf32, #tpu.memory_space<vmem>>, %arg15: memref<1x16xf32, #tpu.memory_space<vmem>>, %arg16: memref<16x128xf32, #tpu.memory_space<vmem>>, %arg17: memref<1x128xf32, #tpu.memory_space<vmem>>, %arg18: memref<3x6x2xf32, #tpu.memory_space<vmem>>, %arg19: memref<3x128x96xf32, #tpu.memory_space<vmem>>, %arg20: memref<3x96xf32, #tpu.memory_space<vmem>>, %arg21: memref<3x14x6xf32, #tpu.memory_space<vmem>>, %arg22: memref<3x96x112xf32, #tpu.memory_space<vmem>>, %arg23: memref<3x112xf32, #tpu.memory_space<vmem>>, %arg24: memref<112x112xf32, #tpu.memory_space<vmem>>, %arg25: memref<3x28x14xf32, #tpu.memory_space<vmem>>, %arg26: memref<3x112x112xf32, #tpu.memory_space<vmem>>, %arg27: memref<3x112xf32, #tpu.memory_space<vmem>>, %arg28: memref<112x112xf32, #tpu.memory_space<vmem>>, %arg29: memref<3x56x28xf32, #tpu.memory_space<vmem>>, %arg30: memref<3x112x28xf32, #tpu.memory_space<vmem>>, %arg31: memref<1x28xf32, #tpu.memory_space<vmem>>, %arg32: memref<56x28xf32, #tpu.memory_space<vmem>>) attributes {dimension_semantics = [], scalar_prefetch = 0 : i64, scratch_operands = 0 : i64, tpu.core_type = #tpu.core_type<tc>} {
    %c0 = arith.constant 0 : index
    %c0_0 = arith.constant 0 : index
    %0 = vector.load %arg0[%c0, %c0_0] : memref<56x28xf32, #tpu.memory_space<vmem>>, vector<56x28xf32>
    %c0_1 = arith.constant 0 : index
    %c0_2 = arith.constant 0 : index
    %1 = vector.load %arg3[%c0_1, %c0_2] : memref<1x112xf32, #tpu.memory_space<vmem>>, vector<1x112xf32>
    %c0_3 = arith.constant 0 : index
    %c0_4 = arith.constant 0 : index
    %c0_5 = arith.constant 0 : index
    %2 = vector.load %arg1[%c0_3, %c0_4, %c0_5] : memref<3x28x56xf32, #tpu.memory_space<vmem>>, vector<1x28x56xf32>
    %3 = vector.shape_cast %2 : vector<1x28x56xf32> to vector<28x56xf32>
    %cst = arith.constant dense<0.000000e+00> : vector<28x28xf32>
    %4 = tpu.matmul %3, %0, %cst {dimension_numbers = #tpu.dot_dimension_numbers<[1], [0], [0], [1], [0, 0, 1, 1], [], []>} : vector<28x56xf32>, vector<56x28xf32>, vector<28x28xf32> -> vector<28x28xf32>
    %c0_6 = arith.constant 0 : index
    %c0_7 = arith.constant 0 : index
    %c0_8 = arith.constant 0 : index
    %5 = vector.load %arg2[%c0_6, %c0_7, %c0_8] : memref<3x28x112xf32, #tpu.memory_space<vmem>>, vector<1x28x112xf32>
    %6 = vector.shape_cast %5 : vector<1x28x112xf32> to vector<28x112xf32>
    %cst_9 = arith.constant dense<0.000000e+00> : vector<28x112xf32>
    %7 = tpu.matmul %4, %6, %cst_9 {dimension_numbers = #tpu.dot_dimension_numbers<[1], [0], [0], [1], [0, 0, 1, 1], [], []>} : vector<28x28xf32>, vector<28x112xf32>, vector<28x112xf32> -> vector<28x112xf32>
    %c1 = arith.constant 1 : index
    %c0_10 = arith.constant 0 : index
    %c0_11 = arith.constant 0 : index
    %8 = vector.load %arg1[%c1, %c0_10, %c0_11] : memref<3x28x56xf32, #tpu.memory_space<vmem>>, vector<1x28x56xf32>
    %9 = vector.shape_cast %8 : vector<1x28x56xf32> to vector<28x56xf32>
    %cst_12 = arith.constant dense<0.000000e+00> : vector<28x28xf32>
    %10 = tpu.matmul %9, %0, %cst_12 {dimension_numbers = #tpu.dot_dimension_numbers<[1], [0], [0], [1], [0, 0, 1, 1], [], []>} : vector<28x56xf32>, vector<56x28xf32>, vector<28x28xf32> -> vector<28x28xf32>
    %c1_13 = arith.constant 1 : index
    %c0_14 = arith.constant 0 : index
    %c0_15 = arith.constant 0 : index
    %11 = vector.load %arg2[%c1_13, %c0_14, %c0_15] : memref<3x28x112xf32, #tpu.memory_space<vmem>>, vector<1x28x112xf32>
    %12 = vector.shape_cast %11 : vector<1x28x112xf32> to vector<28x112xf32>
    %cst_16 = arith.constant dense<0.000000e+00> : vector<28x112xf32>
    %13 = tpu.matmul %10, %12, %cst_16 {dimension_numbers = #tpu.dot_dimension_numbers<[1], [0], [0], [1], [0, 0, 1, 1], [], []>} : vector<28x28xf32>, vector<28x112xf32>, vector<28x112xf32> -> vector<28x112xf32>
    %14 = arith.addf %7, %13 : vector<28x112xf32>
    %c2 = arith.constant 2 : index
    %c0_17 = arith.constant 0 : index
    %c0_18 = arith.constant 0 : index
    %15 = vector.load %arg1[%c2, %c0_17, %c0_18] : memref<3x28x56xf32, #tpu.memory_space<vmem>>, vector<1x28x56xf32>
    %16 = vector.shape_cast %15 : vector<1x28x56xf32> to vector<28x56xf32>
    %cst_19 = arith.constant dense<0.000000e+00> : vector<28x28xf32>
    %17 = tpu.matmul %16, %0, %cst_19 {dimension_numbers = #tpu.dot_dimension_numbers<[1], [0], [0], [1], [0, 0, 1, 1], [], []>} : vector<28x56xf32>, vector<56x28xf32>, vector<28x28xf32> -> vector<28x28xf32>
    %c2_20 = arith.constant 2 : index
    %c0_21 = arith.constant 0 : index
    %c0_22 = arith.constant 0 : index
    %18 = vector.load %arg2[%c2_20, %c0_21, %c0_22] : memref<3x28x112xf32, #tpu.memory_space<vmem>>, vector<1x28x112xf32>
    %19 = vector.shape_cast %18 : vector<1x28x112xf32> to vector<28x112xf32>
    %cst_23 = arith.constant dense<0.000000e+00> : vector<28x112xf32>
    %20 = tpu.matmul %17, %19, %cst_23 {dimension_numbers = #tpu.dot_dimension_numbers<[1], [0], [0], [1], [0, 0, 1, 1], [], []>} : vector<28x28xf32>, vector<28x112xf32>, vector<28x112xf32> -> vector<28x112xf32>
    %21 = arith.addf %14, %20 : vector<28x112xf32>
    %22 = vector.broadcast %1 : vector<1x112xf32> to vector<28x112xf32>
    %23 = arith.addf %21, %22 : vector<28x112xf32>
    %cst_24 = arith.constant 0.000000e+00 : f32
    %24 = vector.broadcast %cst_24 : f32 to vector<28x112xf32>
    %25 = arith.maximumf %23, %24 : vector<28x112xf32>
    %c0_25 = arith.constant 0 : index
    %c0_26 = arith.constant 0 : index
    %26 = vector.load %arg6[%c0_25, %c0_26] : memref<3x112xf32, #tpu.memory_space<vmem>>, vector<3x112xf32>
    %c0_27 = arith.constant 0 : index
    %c0_28 = arith.constant 0 : index
    %c0_29 = arith.constant 0 : index
    %27 = vector.load %arg4[%c0_27, %c0_28, %c0_29] : memref<3x14x28xf32, #tpu.memory_space<vmem>>, vector<1x14x28xf32>
    %28 = vector.shape_cast %27 : vector<1x14x28xf32> to vector<14x28xf32>
    %cst_30 = arith.constant dense<0.000000e+00> : vector<14x112xf32>
    %29 = tpu.matmul %28, %25, %cst_30 {dimension_numbers = #tpu.dot_dimension_numbers<[1], [0], [0], [1], [0, 0, 1, 1], [], []>} : vector<14x28xf32>, vector<28x112xf32>, vector<14x112xf32> -> vector<14x112xf32>
    %c0_31 = arith.constant 0 : index
    %c0_32 = arith.constant 0 : index
    %c0_33 = arith.constant 0 : index
    %30 = vector.load %arg5[%c0_31, %c0_32, %c0_33] : memref<3x112x112xf32, #tpu.memory_space<vmem>>, vector<1x112x112xf32>
    %31 = vector.shape_cast %30 : vector<1x112x112xf32> to vector<112x112xf32>
    %cst_34 = arith.constant dense<0.000000e+00> : vector<14x112xf32>
    %32 = tpu.matmul %29, %31, %cst_34 {dimension_numbers = #tpu.dot_dimension_numbers<[1], [0], [0], [1], [0, 0, 1, 1], [], []>} : vector<14x112xf32>, vector<112x112xf32>, vector<14x112xf32> -> vector<14x112xf32>
    %c1_35 = arith.constant 1 : index
    %c0_36 = arith.constant 0 : index
    %c0_37 = arith.constant 0 : index
    %33 = vector.load %arg4[%c1_35, %c0_36, %c0_37] : memref<3x14x28xf32, #tpu.memory_space<vmem>>, vector<1x14x28xf32>
    %34 = vector.shape_cast %33 : vector<1x14x28xf32> to vector<14x28xf32>
    %cst_38 = arith.constant dense<0.000000e+00> : vector<14x112xf32>
    %35 = tpu.matmul %34, %25, %cst_38 {dimension_numbers = #tpu.dot_dimension_numbers<[1], [0], [0], [1], [0, 0, 1, 1], [], []>} : vector<14x28xf32>, vector<28x112xf32>, vector<14x112xf32> -> vector<14x112xf32>
    %c1_39 = arith.constant 1 : index
    %c0_40 = arith.constant 0 : index
    %c0_41 = arith.constant 0 : index
    %36 = vector.load %arg5[%c1_39, %c0_40, %c0_41] : memref<3x112x112xf32, #tpu.memory_space<vmem>>, vector<1x112x112xf32>
    %37 = vector.shape_cast %36 : vector<1x112x112xf32> to vector<112x112xf32>
    %cst_42 = arith.constant dense<0.000000e+00> : vector<14x112xf32>
    %38 = tpu.matmul %35, %37, %cst_42 {dimension_numbers = #tpu.dot_dimension_numbers<[1], [0], [0], [1], [0, 0, 1, 1], [], []>} : vector<14x112xf32>, vector<112x112xf32>, vector<14x112xf32> -> vector<14x112xf32>
    %39 = arith.addf %32, %38 : vector<14x112xf32>
    %c2_43 = arith.constant 2 : index
    %c0_44 = arith.constant 0 : index
    %c0_45 = arith.constant 0 : index
    %40 = vector.load %arg4[%c2_43, %c0_44, %c0_45] : memref<3x14x28xf32, #tpu.memory_space<vmem>>, vector<1x14x28xf32>
    %41 = vector.shape_cast %40 : vector<1x14x28xf32> to vector<14x28xf32>
    %cst_46 = arith.constant dense<0.000000e+00> : vector<14x112xf32>
    %42 = tpu.matmul %41, %25, %cst_46 {dimension_numbers = #tpu.dot_dimension_numbers<[1], [0], [0], [1], [0, 0, 1, 1], [], []>} : vector<14x28xf32>, vector<28x112xf32>, vector<14x112xf32> -> vector<14x112xf32>
    %c2_47 = arith.constant 2 : index
    %c0_48 = arith.constant 0 : index
    %c0_49 = arith.constant 0 : index
    %43 = vector.load %arg5[%c2_47, %c0_48, %c0_49] : memref<3x112x112xf32, #tpu.memory_space<vmem>>, vector<1x112x112xf32>
    %44 = vector.shape_cast %43 : vector<1x112x112xf32> to vector<112x112xf32>
    %cst_50 = arith.constant dense<0.000000e+00> : vector<14x112xf32>
    %45 = tpu.matmul %42, %44, %cst_50 {dimension_numbers = #tpu.dot_dimension_numbers<[1], [0], [0], [1], [0, 0, 1, 1], [], []>} : vector<14x112xf32>, vector<112x112xf32>, vector<14x112xf32> -> vector<14x112xf32>
    %46 = arith.addf %39, %45 : vector<14x112xf32>
    %47 = vector.extract_strided_slice %26 {offsets = [0, 0], sizes = [1, 112], strides = [1, 1]} : vector<3x112xf32> to vector<1x112xf32>
    %48 = vector.broadcast %47 : vector<1x112xf32> to vector<14x112xf32>
    %49 = arith.addf %46, %48 : vector<14x112xf32>
    %c0_51 = arith.constant 0 : index
    %c0_52 = arith.constant 0 : index
    %50 = vector.load %arg7[%c0_51, %c0_52] : memref<112x112xf32, #tpu.memory_space<vmem>>, vector<112x112xf32>
    %cst_53 = arith.constant dense<0.000000e+00> : vector<14x112xf32>
    %51 = tpu.matmul %49, %50, %cst_53 {dimension_numbers = #tpu.dot_dimension_numbers<[1], [0], [0], [1], [0, 0, 1, 1], [], []>} : vector<14x112xf32>, vector<112x112xf32>, vector<14x112xf32> -> vector<14x112xf32>
    %cst_54 = arith.constant dense<0.000000e+00> : vector<112xf32>
    %52 = vector.multi_reduction <add>, %51, %cst_54 [0] : vector<14x112xf32> to vector<112xf32>
    %53 = vector.shape_cast %52 : vector<112xf32> to vector<1x112xf32>
    %cst_55 = arith.constant 1.400000e+01 : f32
    %54 = vector.broadcast %cst_55 : f32 to vector<1x112xf32>
    %55 = arith.divf %53, %54 : vector<1x112xf32>
    %56 = arith.mulf %49, %49 : vector<14x112xf32>
    %cst_56 = arith.constant dense<0.000000e+00> : vector<14x112xf32>
    %57 = tpu.matmul %56, %50, %cst_56 {dimension_numbers = #tpu.dot_dimension_numbers<[1], [0], [0], [1], [0, 0, 1, 1], [], []>} : vector<14x112xf32>, vector<112x112xf32>, vector<14x112xf32> -> vector<14x112xf32>
    %cst_57 = arith.constant dense<0.000000e+00> : vector<112xf32>
    %58 = vector.multi_reduction <add>, %57, %cst_57 [0] : vector<14x112xf32> to vector<112xf32>
    %59 = vector.shape_cast %58 : vector<112xf32> to vector<1x112xf32>
    %cst_58 = arith.constant 1.400000e+01 : f32
    %60 = vector.broadcast %cst_58 : f32 to vector<1x112xf32>
    %61 = arith.divf %59, %60 : vector<1x112xf32>
    %62 = arith.mulf %55, %55 : vector<1x112xf32>
    %63 = arith.subf %61, %62 : vector<1x112xf32>
    %64 = vector.broadcast %55 : vector<1x112xf32> to vector<14x112xf32>
    %65 = arith.subf %49, %64 : vector<14x112xf32>
    %cst_59 = arith.constant 9.99999974E-6 : f32
    %66 = vector.broadcast %cst_59 : f32 to vector<1x112xf32>
    %67 = arith.addf %63, %66 : vector<1x112xf32>
    %68 = math.rsqrt %67 : vector<1x112xf32>
    %69 = vector.broadcast %68 : vector<1x112xf32> to vector<14x112xf32>
    %70 = arith.mulf %65, %69 : vector<14x112xf32>
    %71 = vector.extract_strided_slice %26 {offsets = [1, 0], sizes = [1, 112], strides = [1, 1]} : vector<3x112xf32> to vector<1x112xf32>
    %72 = vector.broadcast %71 : vector<1x112xf32> to vector<14x112xf32>
    %73 = arith.mulf %70, %72 : vector<14x112xf32>
    %74 = vector.extract_strided_slice %26 {offsets = [2, 0], sizes = [1, 112], strides = [1, 1]} : vector<3x112xf32> to vector<1x112xf32>
    %75 = vector.broadcast %74 : vector<1x112xf32> to vector<14x112xf32>
    %76 = arith.addf %73, %75 : vector<14x112xf32>
    %cst_60 = arith.constant 0.000000e+00 : f32
    %77 = vector.broadcast %cst_60 : f32 to vector<14x112xf32>
    %78 = arith.maximumf %76, %77 : vector<14x112xf32>
    %c0_61 = arith.constant 0 : index
    %c0_62 = arith.constant 0 : index
    %79 = vector.load %arg10[%c0_61, %c0_62] : memref<1x96xf32, #tpu.memory_space<vmem>>, vector<1x96xf32>
    %c0_63 = arith.constant 0 : index
    %c0_64 = arith.constant 0 : index
    %c0_65 = arith.constant 0 : index
    %80 = vector.load %arg8[%c0_63, %c0_64, %c0_65] : memref<3x6x14xf32, #tpu.memory_space<vmem>>, vector<1x6x14xf32>
    %81 = vector.shape_cast %80 : vector<1x6x14xf32> to vector<6x14xf32>
    %cst_66 = arith.constant dense<0.000000e+00> : vector<6x112xf32>
    %82 = tpu.matmul %81, %78, %cst_66 {dimension_numbers = #tpu.dot_dimension_numbers<[1], [0], [0], [1], [0, 0, 1, 1], [], []>} : vector<6x14xf32>, vector<14x112xf32>, vector<6x112xf32> -> vector<6x112xf32>
    %c0_67 = arith.constant 0 : index
    %c0_68 = arith.constant 0 : index
    %c0_69 = arith.constant 0 : index
    %83 = vector.load %arg9[%c0_67, %c0_68, %c0_69] : memref<3x112x96xf32, #tpu.memory_space<vmem>>, vector<1x112x96xf32>
    %84 = vector.shape_cast %83 : vector<1x112x96xf32> to vector<112x96xf32>
    %cst_70 = arith.constant dense<0.000000e+00> : vector<6x96xf32>
    %85 = tpu.matmul %82, %84, %cst_70 {dimension_numbers = #tpu.dot_dimension_numbers<[1], [0], [0], [1], [0, 0, 1, 1], [], []>} : vector<6x112xf32>, vector<112x96xf32>, vector<6x96xf32> -> vector<6x96xf32>
    %c1_71 = arith.constant 1 : index
    %c0_72 = arith.constant 0 : index
    %c0_73 = arith.constant 0 : index
    %86 = vector.load %arg8[%c1_71, %c0_72, %c0_73] : memref<3x6x14xf32, #tpu.memory_space<vmem>>, vector<1x6x14xf32>
    %87 = vector.shape_cast %86 : vector<1x6x14xf32> to vector<6x14xf32>
    %cst_74 = arith.constant dense<0.000000e+00> : vector<6x112xf32>
    %88 = tpu.matmul %87, %78, %cst_74 {dimension_numbers = #tpu.dot_dimension_numbers<[1], [0], [0], [1], [0, 0, 1, 1], [], []>} : vector<6x14xf32>, vector<14x112xf32>, vector<6x112xf32> -> vector<6x112xf32>
    %c1_75 = arith.constant 1 : index
    %c0_76 = arith.constant 0 : index
    %c0_77 = arith.constant 0 : index
    %89 = vector.load %arg9[%c1_75, %c0_76, %c0_77] : memref<3x112x96xf32, #tpu.memory_space<vmem>>, vector<1x112x96xf32>
    %90 = vector.shape_cast %89 : vector<1x112x96xf32> to vector<112x96xf32>
    %cst_78 = arith.constant dense<0.000000e+00> : vector<6x96xf32>
    %91 = tpu.matmul %88, %90, %cst_78 {dimension_numbers = #tpu.dot_dimension_numbers<[1], [0], [0], [1], [0, 0, 1, 1], [], []>} : vector<6x112xf32>, vector<112x96xf32>, vector<6x96xf32> -> vector<6x96xf32>
    %92 = arith.addf %85, %91 : vector<6x96xf32>
    %c2_79 = arith.constant 2 : index
    %c0_80 = arith.constant 0 : index
    %c0_81 = arith.constant 0 : index
    %93 = vector.load %arg8[%c2_79, %c0_80, %c0_81] : memref<3x6x14xf32, #tpu.memory_space<vmem>>, vector<1x6x14xf32>
    %94 = vector.shape_cast %93 : vector<1x6x14xf32> to vector<6x14xf32>
    %cst_82 = arith.constant dense<0.000000e+00> : vector<6x112xf32>
    %95 = tpu.matmul %94, %78, %cst_82 {dimension_numbers = #tpu.dot_dimension_numbers<[1], [0], [0], [1], [0, 0, 1, 1], [], []>} : vector<6x14xf32>, vector<14x112xf32>, vector<6x112xf32> -> vector<6x112xf32>
    %c2_83 = arith.constant 2 : index
    %c0_84 = arith.constant 0 : index
    %c0_85 = arith.constant 0 : index
    %96 = vector.load %arg9[%c2_83, %c0_84, %c0_85] : memref<3x112x96xf32, #tpu.memory_space<vmem>>, vector<1x112x96xf32>
    %97 = vector.shape_cast %96 : vector<1x112x96xf32> to vector<112x96xf32>
    %cst_86 = arith.constant dense<0.000000e+00> : vector<6x96xf32>
    %98 = tpu.matmul %95, %97, %cst_86 {dimension_numbers = #tpu.dot_dimension_numbers<[1], [0], [0], [1], [0, 0, 1, 1], [], []>} : vector<6x112xf32>, vector<112x96xf32>, vector<6x96xf32> -> vector<6x96xf32>
    %99 = arith.addf %92, %98 : vector<6x96xf32>
    %100 = vector.broadcast %79 : vector<1x96xf32> to vector<6x96xf32>
    %101 = arith.addf %99, %100 : vector<6x96xf32>
    %cst_87 = arith.constant 0.000000e+00 : f32
    %102 = vector.broadcast %cst_87 : f32 to vector<6x96xf32>
    %103 = arith.maximumf %101, %102 : vector<6x96xf32>
    %c0_88 = arith.constant 0 : index
    %c0_89 = arith.constant 0 : index
    %c0_90 = arith.constant 0 : index
    %104 = vector.load %arg11[%c0_88, %c0_89, %c0_90] : memref<3x2x6xf32, #tpu.memory_space<vmem>>, vector<1x2x6xf32>
    %105 = vector.shape_cast %104 : vector<1x2x6xf32> to vector<2x6xf32>
    %cst_91 = arith.constant dense<0.000000e+00> : vector<2x96xf32>
    %106 = tpu.matmul %105, %103, %cst_91 {dimension_numbers = #tpu.dot_dimension_numbers<[1], [0], [0], [1], [0, 0, 1, 1], [], []>} : vector<2x6xf32>, vector<6x96xf32>, vector<2x96xf32> -> vector<2x96xf32>
    %c0_92 = arith.constant 0 : index
    %c0_93 = arith.constant 0 : index
    %c0_94 = arith.constant 0 : index
    %107 = vector.load %arg12[%c0_92, %c0_93, %c0_94] : memref<3x96x128xf32, #tpu.memory_space<vmem>>, vector<1x96x128xf32>
    %108 = vector.shape_cast %107 : vector<1x96x128xf32> to vector<96x128xf32>
    %cst_95 = arith.constant dense<0.000000e+00> : vector<2x128xf32>
    %109 = tpu.matmul %106, %108, %cst_95 {dimension_numbers = #tpu.dot_dimension_numbers<[1], [0], [0], [1], [0, 0, 1, 1], [], []>} : vector<2x96xf32>, vector<96x128xf32>, vector<2x128xf32> -> vector<2x128xf32>
    %c1_96 = arith.constant 1 : index
    %c0_97 = arith.constant 0 : index
    %c0_98 = arith.constant 0 : index
    %110 = vector.load %arg11[%c1_96, %c0_97, %c0_98] : memref<3x2x6xf32, #tpu.memory_space<vmem>>, vector<1x2x6xf32>
    %111 = vector.shape_cast %110 : vector<1x2x6xf32> to vector<2x6xf32>
    %cst_99 = arith.constant dense<0.000000e+00> : vector<2x96xf32>
    %112 = tpu.matmul %111, %103, %cst_99 {dimension_numbers = #tpu.dot_dimension_numbers<[1], [0], [0], [1], [0, 0, 1, 1], [], []>} : vector<2x6xf32>, vector<6x96xf32>, vector<2x96xf32> -> vector<2x96xf32>
    %c1_100 = arith.constant 1 : index
    %c0_101 = arith.constant 0 : index
    %c0_102 = arith.constant 0 : index
    %113 = vector.load %arg12[%c1_100, %c0_101, %c0_102] : memref<3x96x128xf32, #tpu.memory_space<vmem>>, vector<1x96x128xf32>
    %114 = vector.shape_cast %113 : vector<1x96x128xf32> to vector<96x128xf32>
    %cst_103 = arith.constant dense<0.000000e+00> : vector<2x128xf32>
    %115 = tpu.matmul %112, %114, %cst_103 {dimension_numbers = #tpu.dot_dimension_numbers<[1], [0], [0], [1], [0, 0, 1, 1], [], []>} : vector<2x96xf32>, vector<96x128xf32>, vector<2x128xf32> -> vector<2x128xf32>
    %116 = arith.addf %109, %115 : vector<2x128xf32>
    %c2_104 = arith.constant 2 : index
    %c0_105 = arith.constant 0 : index
    %c0_106 = arith.constant 0 : index
    %117 = vector.load %arg11[%c2_104, %c0_105, %c0_106] : memref<3x2x6xf32, #tpu.memory_space<vmem>>, vector<1x2x6xf32>
    %118 = vector.shape_cast %117 : vector<1x2x6xf32> to vector<2x6xf32>
    %cst_107 = arith.constant dense<0.000000e+00> : vector<2x96xf32>
    %119 = tpu.matmul %118, %103, %cst_107 {dimension_numbers = #tpu.dot_dimension_numbers<[1], [0], [0], [1], [0, 0, 1, 1], [], []>} : vector<2x6xf32>, vector<6x96xf32>, vector<2x96xf32> -> vector<2x96xf32>
    %c2_108 = arith.constant 2 : index
    %c0_109 = arith.constant 0 : index
    %c0_110 = arith.constant 0 : index
    %120 = vector.load %arg12[%c2_108, %c0_109, %c0_110] : memref<3x96x128xf32, #tpu.memory_space<vmem>>, vector<1x96x128xf32>
    %121 = vector.shape_cast %120 : vector<1x96x128xf32> to vector<96x128xf32>
    %cst_111 = arith.constant dense<0.000000e+00> : vector<2x128xf32>
    %122 = tpu.matmul %119, %121, %cst_111 {dimension_numbers = #tpu.dot_dimension_numbers<[1], [0], [0], [1], [0, 0, 1, 1], [], []>} : vector<2x96xf32>, vector<96x128xf32>, vector<2x128xf32> -> vector<2x128xf32>
    %123 = arith.addf %116, %122 : vector<2x128xf32>
    %c0_112 = arith.constant 0 : index
    %c0_113 = arith.constant 0 : index
    %124 = vector.load %arg13[%c0_112, %c0_113] : memref<1x128xf32, #tpu.memory_space<vmem>>, vector<1x128xf32>
    %125 = vector.broadcast %124 : vector<1x128xf32> to vector<2x128xf32>
    %126 = arith.addf %123, %125 : vector<2x128xf32>
    %cst_114 = arith.constant 0.000000e+00 : f32
    %127 = vector.broadcast %cst_114 : f32 to vector<2x128xf32>
    %128 = arith.maximumf %126, %127 : vector<2x128xf32>
    %c0_115 = arith.constant 0 : index
    %c0_116 = arith.constant 0 : index
    %129 = vector.load %arg14[%c0_115, %c0_116] : memref<128x16xf32, #tpu.memory_space<vmem>>, vector<128x16xf32>
    %cst_117 = arith.constant dense<0.000000e+00> : vector<2x16xf32>
    %130 = tpu.matmul %128, %129, %cst_117 {dimension_numbers = #tpu.dot_dimension_numbers<[1], [0], [0], [1], [0, 0, 1, 1], [], []>} : vector<2x128xf32>, vector<128x16xf32>, vector<2x16xf32> -> vector<2x16xf32>
    %c0_118 = arith.constant 0 : index
    %c0_119 = arith.constant 0 : index
    %131 = vector.load %arg15[%c0_118, %c0_119] : memref<1x16xf32, #tpu.memory_space<vmem>>, vector<1x16xf32>
    %132 = vector.broadcast %131 : vector<1x16xf32> to vector<2x16xf32>
    %133 = arith.addf %130, %132 : vector<2x16xf32>
    %c0_120 = arith.constant 0 : index
    %c0_121 = arith.constant 0 : index
    %134 = vector.load %arg16[%c0_120, %c0_121] : memref<16x128xf32, #tpu.memory_space<vmem>>, vector<16x128xf32>
    %cst_122 = arith.constant dense<0.000000e+00> : vector<2x128xf32>
    %135 = tpu.matmul %133, %134, %cst_122 {dimension_numbers = #tpu.dot_dimension_numbers<[1], [0], [0], [1], [0, 0, 1, 1], [], []>} : vector<2x16xf32>, vector<16x128xf32>, vector<2x128xf32> -> vector<2x128xf32>
    %c0_123 = arith.constant 0 : index
    %c0_124 = arith.constant 0 : index
    %136 = vector.load %arg17[%c0_123, %c0_124] : memref<1x128xf32, #tpu.memory_space<vmem>>, vector<1x128xf32>
    %137 = vector.broadcast %136 : vector<1x128xf32> to vector<2x128xf32>
    %138 = arith.addf %135, %137 : vector<2x128xf32>
    %cst_125 = arith.constant 0.000000e+00 : f32
    %139 = vector.broadcast %cst_125 : f32 to vector<2x128xf32>
    %140 = arith.maximumf %138, %139 : vector<2x128xf32>
    %c0_126 = arith.constant 0 : index
    %c0_127 = arith.constant 0 : index
    %141 = vector.load %arg20[%c0_126, %c0_127] : memref<3x96xf32, #tpu.memory_space<vmem>>, vector<3x96xf32>
    %c0_128 = arith.constant 0 : index
    %c0_129 = arith.constant 0 : index
    %c0_130 = arith.constant 0 : index
    %142 = vector.load %arg19[%c0_128, %c0_129, %c0_130] : memref<3x128x96xf32, #tpu.memory_space<vmem>>, vector<1x128x96xf32>
    %143 = vector.shape_cast %142 : vector<1x128x96xf32> to vector<128x96xf32>
    %cst_131 = arith.constant dense<0.000000e+00> : vector<2x96xf32>
    %144 = tpu.matmul %140, %143, %cst_131 {dimension_numbers = #tpu.dot_dimension_numbers<[1], [0], [0], [1], [0, 0, 1, 1], [], []>} : vector<2x128xf32>, vector<128x96xf32>, vector<2x96xf32> -> vector<2x96xf32>
    %145 = vector.extract_strided_slice %141 {offsets = [0, 0], sizes = [1, 96], strides = [1, 1]} : vector<3x96xf32> to vector<1x96xf32>
    %146 = vector.broadcast %145 : vector<1x96xf32> to vector<2x96xf32>
    %147 = arith.addf %144, %146 : vector<2x96xf32>
    %c0_132 = arith.constant 0 : index
    %c0_133 = arith.constant 0 : index
    %c0_134 = arith.constant 0 : index
    %148 = vector.load %arg18[%c0_132, %c0_133, %c0_134] : memref<3x6x2xf32, #tpu.memory_space<vmem>>, vector<1x6x2xf32>
    %149 = vector.shape_cast %148 : vector<1x6x2xf32> to vector<6x2xf32>
    %cst_135 = arith.constant dense<0.000000e+00> : vector<6x96xf32>
    %150 = tpu.matmul %149, %147, %cst_135 {dimension_numbers = #tpu.dot_dimension_numbers<[1], [0], [0], [1], [0, 0, 1, 1], [], []>} : vector<6x2xf32>, vector<2x96xf32>, vector<6x96xf32> -> vector<6x96xf32>
    %c1_136 = arith.constant 1 : index
    %c0_137 = arith.constant 0 : index
    %c0_138 = arith.constant 0 : index
    %151 = vector.load %arg19[%c1_136, %c0_137, %c0_138] : memref<3x128x96xf32, #tpu.memory_space<vmem>>, vector<1x128x96xf32>
    %152 = vector.shape_cast %151 : vector<1x128x96xf32> to vector<128x96xf32>
    %cst_139 = arith.constant dense<0.000000e+00> : vector<2x96xf32>
    %153 = tpu.matmul %140, %152, %cst_139 {dimension_numbers = #tpu.dot_dimension_numbers<[1], [0], [0], [1], [0, 0, 1, 1], [], []>} : vector<2x128xf32>, vector<128x96xf32>, vector<2x96xf32> -> vector<2x96xf32>
    %154 = vector.extract_strided_slice %141 {offsets = [1, 0], sizes = [1, 96], strides = [1, 1]} : vector<3x96xf32> to vector<1x96xf32>
    %155 = vector.broadcast %154 : vector<1x96xf32> to vector<2x96xf32>
    %156 = arith.addf %153, %155 : vector<2x96xf32>
    %c1_140 = arith.constant 1 : index
    %c0_141 = arith.constant 0 : index
    %c0_142 = arith.constant 0 : index
    %157 = vector.load %arg18[%c1_140, %c0_141, %c0_142] : memref<3x6x2xf32, #tpu.memory_space<vmem>>, vector<1x6x2xf32>
    %158 = vector.shape_cast %157 : vector<1x6x2xf32> to vector<6x2xf32>
    %cst_143 = arith.constant dense<0.000000e+00> : vector<6x96xf32>
    %159 = tpu.matmul %158, %156, %cst_143 {dimension_numbers = #tpu.dot_dimension_numbers<[1], [0], [0], [1], [0, 0, 1, 1], [], []>} : vector<6x2xf32>, vector<2x96xf32>, vector<6x96xf32> -> vector<6x96xf32>
    %160 = arith.addf %150, %159 : vector<6x96xf32>
    %c2_144 = arith.constant 2 : index
    %c0_145 = arith.constant 0 : index
    %c0_146 = arith.constant 0 : index
    %161 = vector.load %arg19[%c2_144, %c0_145, %c0_146] : memref<3x128x96xf32, #tpu.memory_space<vmem>>, vector<1x128x96xf32>
    %162 = vector.shape_cast %161 : vector<1x128x96xf32> to vector<128x96xf32>
    %cst_147 = arith.constant dense<0.000000e+00> : vector<2x96xf32>
    %163 = tpu.matmul %140, %162, %cst_147 {dimension_numbers = #tpu.dot_dimension_numbers<[1], [0], [0], [1], [0, 0, 1, 1], [], []>} : vector<2x128xf32>, vector<128x96xf32>, vector<2x96xf32> -> vector<2x96xf32>
    %164 = vector.extract_strided_slice %141 {offsets = [2, 0], sizes = [1, 96], strides = [1, 1]} : vector<3x96xf32> to vector<1x96xf32>
    %165 = vector.broadcast %164 : vector<1x96xf32> to vector<2x96xf32>
    %166 = arith.addf %163, %165 : vector<2x96xf32>
    %c2_148 = arith.constant 2 : index
    %c0_149 = arith.constant 0 : index
    %c0_150 = arith.constant 0 : index
    %167 = vector.load %arg18[%c2_148, %c0_149, %c0_150] : memref<3x6x2xf32, #tpu.memory_space<vmem>>, vector<1x6x2xf32>
    %168 = vector.shape_cast %167 : vector<1x6x2xf32> to vector<6x2xf32>
    %cst_151 = arith.constant dense<0.000000e+00> : vector<6x96xf32>
    %169 = tpu.matmul %168, %166, %cst_151 {dimension_numbers = #tpu.dot_dimension_numbers<[1], [0], [0], [1], [0, 0, 1, 1], [], []>} : vector<6x2xf32>, vector<2x96xf32>, vector<6x96xf32> -> vector<6x96xf32>
    %170 = arith.addf %160, %169 : vector<6x96xf32>
    %cst_152 = arith.constant 0.000000e+00 : f32
    %171 = vector.broadcast %cst_152 : f32 to vector<6x96xf32>
    %172 = arith.maximumf %170, %171 : vector<6x96xf32>
    %c0_153 = arith.constant 0 : index
    %c0_154 = arith.constant 0 : index
    %173 = vector.load %arg23[%c0_153, %c0_154] : memref<3x112xf32, #tpu.memory_space<vmem>>, vector<3x112xf32>
    %c0_155 = arith.constant 0 : index
    %c0_156 = arith.constant 0 : index
    %c0_157 = arith.constant 0 : index
    %174 = vector.load %arg21[%c0_155, %c0_156, %c0_157] : memref<3x14x6xf32, #tpu.memory_space<vmem>>, vector<1x14x6xf32>
    %175 = vector.shape_cast %174 : vector<1x14x6xf32> to vector<14x6xf32>
    %cst_158 = arith.constant dense<0.000000e+00> : vector<14x96xf32>
    %176 = tpu.matmul %175, %172, %cst_158 {dimension_numbers = #tpu.dot_dimension_numbers<[1], [0], [0], [1], [0, 0, 1, 1], [], []>} : vector<14x6xf32>, vector<6x96xf32>, vector<14x96xf32> -> vector<14x96xf32>
    %c0_159 = arith.constant 0 : index
    %c0_160 = arith.constant 0 : index
    %c0_161 = arith.constant 0 : index
    %177 = vector.load %arg22[%c0_159, %c0_160, %c0_161] : memref<3x96x112xf32, #tpu.memory_space<vmem>>, vector<1x96x112xf32>
    %178 = vector.shape_cast %177 : vector<1x96x112xf32> to vector<96x112xf32>
    %cst_162 = arith.constant dense<0.000000e+00> : vector<14x112xf32>
    %179 = tpu.matmul %176, %178, %cst_162 {dimension_numbers = #tpu.dot_dimension_numbers<[1], [0], [0], [1], [0, 0, 1, 1], [], []>} : vector<14x96xf32>, vector<96x112xf32>, vector<14x112xf32> -> vector<14x112xf32>
    %c1_163 = arith.constant 1 : index
    %c0_164 = arith.constant 0 : index
    %c0_165 = arith.constant 0 : index
    %180 = vector.load %arg21[%c1_163, %c0_164, %c0_165] : memref<3x14x6xf32, #tpu.memory_space<vmem>>, vector<1x14x6xf32>
    %181 = vector.shape_cast %180 : vector<1x14x6xf32> to vector<14x6xf32>
    %cst_166 = arith.constant dense<0.000000e+00> : vector<14x96xf32>
    %182 = tpu.matmul %181, %172, %cst_166 {dimension_numbers = #tpu.dot_dimension_numbers<[1], [0], [0], [1], [0, 0, 1, 1], [], []>} : vector<14x6xf32>, vector<6x96xf32>, vector<14x96xf32> -> vector<14x96xf32>
    %c1_167 = arith.constant 1 : index
    %c0_168 = arith.constant 0 : index
    %c0_169 = arith.constant 0 : index
    %183 = vector.load %arg22[%c1_167, %c0_168, %c0_169] : memref<3x96x112xf32, #tpu.memory_space<vmem>>, vector<1x96x112xf32>
    %184 = vector.shape_cast %183 : vector<1x96x112xf32> to vector<96x112xf32>
    %cst_170 = arith.constant dense<0.000000e+00> : vector<14x112xf32>
    %185 = tpu.matmul %182, %184, %cst_170 {dimension_numbers = #tpu.dot_dimension_numbers<[1], [0], [0], [1], [0, 0, 1, 1], [], []>} : vector<14x96xf32>, vector<96x112xf32>, vector<14x112xf32> -> vector<14x112xf32>
    %186 = arith.addf %179, %185 : vector<14x112xf32>
    %c2_171 = arith.constant 2 : index
    %c0_172 = arith.constant 0 : index
    %c0_173 = arith.constant 0 : index
    %187 = vector.load %arg21[%c2_171, %c0_172, %c0_173] : memref<3x14x6xf32, #tpu.memory_space<vmem>>, vector<1x14x6xf32>
    %188 = vector.shape_cast %187 : vector<1x14x6xf32> to vector<14x6xf32>
    %cst_174 = arith.constant dense<0.000000e+00> : vector<14x96xf32>
    %189 = tpu.matmul %188, %172, %cst_174 {dimension_numbers = #tpu.dot_dimension_numbers<[1], [0], [0], [1], [0, 0, 1, 1], [], []>} : vector<14x6xf32>, vector<6x96xf32>, vector<14x96xf32> -> vector<14x96xf32>
    %c2_175 = arith.constant 2 : index
    %c0_176 = arith.constant 0 : index
    %c0_177 = arith.constant 0 : index
    %190 = vector.load %arg22[%c2_175, %c0_176, %c0_177] : memref<3x96x112xf32, #tpu.memory_space<vmem>>, vector<1x96x112xf32>
    %191 = vector.shape_cast %190 : vector<1x96x112xf32> to vector<96x112xf32>
    %cst_178 = arith.constant dense<0.000000e+00> : vector<14x112xf32>
    %192 = tpu.matmul %189, %191, %cst_178 {dimension_numbers = #tpu.dot_dimension_numbers<[1], [0], [0], [1], [0, 0, 1, 1], [], []>} : vector<14x96xf32>, vector<96x112xf32>, vector<14x112xf32> -> vector<14x112xf32>
    %193 = arith.addf %186, %192 : vector<14x112xf32>
    %194 = vector.extract_strided_slice %173 {offsets = [0, 0], sizes = [1, 112], strides = [1, 1]} : vector<3x112xf32> to vector<1x112xf32>
    %195 = vector.broadcast %194 : vector<1x112xf32> to vector<14x112xf32>
    %196 = arith.addf %193, %195 : vector<14x112xf32>
    %c0_179 = arith.constant 0 : index
    %c0_180 = arith.constant 0 : index
    %197 = vector.load %arg24[%c0_179, %c0_180] : memref<112x112xf32, #tpu.memory_space<vmem>>, vector<112x112xf32>
    %cst_181 = arith.constant dense<0.000000e+00> : vector<14x112xf32>
    %198 = tpu.matmul %196, %197, %cst_181 {dimension_numbers = #tpu.dot_dimension_numbers<[1], [0], [0], [1], [0, 0, 1, 1], [], []>} : vector<14x112xf32>, vector<112x112xf32>, vector<14x112xf32> -> vector<14x112xf32>
    %cst_182 = arith.constant dense<0.000000e+00> : vector<112xf32>
    %199 = vector.multi_reduction <add>, %198, %cst_182 [0] : vector<14x112xf32> to vector<112xf32>
    %200 = vector.shape_cast %199 : vector<112xf32> to vector<1x112xf32>
    %cst_183 = arith.constant 1.400000e+01 : f32
    %201 = vector.broadcast %cst_183 : f32 to vector<1x112xf32>
    %202 = arith.divf %200, %201 : vector<1x112xf32>
    %203 = arith.mulf %196, %196 : vector<14x112xf32>
    %cst_184 = arith.constant dense<0.000000e+00> : vector<14x112xf32>
    %204 = tpu.matmul %203, %197, %cst_184 {dimension_numbers = #tpu.dot_dimension_numbers<[1], [0], [0], [1], [0, 0, 1, 1], [], []>} : vector<14x112xf32>, vector<112x112xf32>, vector<14x112xf32> -> vector<14x112xf32>
    %cst_185 = arith.constant dense<0.000000e+00> : vector<112xf32>
    %205 = vector.multi_reduction <add>, %204, %cst_185 [0] : vector<14x112xf32> to vector<112xf32>
    %206 = vector.shape_cast %205 : vector<112xf32> to vector<1x112xf32>
    %cst_186 = arith.constant 1.400000e+01 : f32
    %207 = vector.broadcast %cst_186 : f32 to vector<1x112xf32>
    %208 = arith.divf %206, %207 : vector<1x112xf32>
    %209 = arith.mulf %202, %202 : vector<1x112xf32>
    %210 = arith.subf %208, %209 : vector<1x112xf32>
    %211 = vector.broadcast %202 : vector<1x112xf32> to vector<14x112xf32>
    %212 = arith.subf %196, %211 : vector<14x112xf32>
    %cst_187 = arith.constant 9.99999974E-6 : f32
    %213 = vector.broadcast %cst_187 : f32 to vector<1x112xf32>
    %214 = arith.addf %210, %213 : vector<1x112xf32>
    %215 = math.rsqrt %214 : vector<1x112xf32>
    %216 = vector.broadcast %215 : vector<1x112xf32> to vector<14x112xf32>
    %217 = arith.mulf %212, %216 : vector<14x112xf32>
    %218 = vector.extract_strided_slice %173 {offsets = [1, 0], sizes = [1, 112], strides = [1, 1]} : vector<3x112xf32> to vector<1x112xf32>
    %219 = vector.broadcast %218 : vector<1x112xf32> to vector<14x112xf32>
    %220 = arith.mulf %217, %219 : vector<14x112xf32>
    %221 = vector.extract_strided_slice %173 {offsets = [2, 0], sizes = [1, 112], strides = [1, 1]} : vector<3x112xf32> to vector<1x112xf32>
    %222 = vector.broadcast %221 : vector<1x112xf32> to vector<14x112xf32>
    %223 = arith.addf %220, %222 : vector<14x112xf32>
    %cst_188 = arith.constant 0.000000e+00 : f32
    %224 = vector.broadcast %cst_188 : f32 to vector<14x112xf32>
    %225 = arith.maximumf %223, %224 : vector<14x112xf32>
    %c0_189 = arith.constant 0 : index
    %c0_190 = arith.constant 0 : index
    %226 = vector.load %arg27[%c0_189, %c0_190] : memref<3x112xf32, #tpu.memory_space<vmem>>, vector<3x112xf32>
    %c0_191 = arith.constant 0 : index
    %c0_192 = arith.constant 0 : index
    %c0_193 = arith.constant 0 : index
    %227 = vector.load %arg25[%c0_191, %c0_192, %c0_193] : memref<3x28x14xf32, #tpu.memory_space<vmem>>, vector<1x28x14xf32>
    %228 = vector.shape_cast %227 : vector<1x28x14xf32> to vector<28x14xf32>
    %cst_194 = arith.constant dense<0.000000e+00> : vector<28x112xf32>
    %229 = tpu.matmul %228, %225, %cst_194 {dimension_numbers = #tpu.dot_dimension_numbers<[1], [0], [0], [1], [0, 0, 1, 1], [], []>} : vector<28x14xf32>, vector<14x112xf32>, vector<28x112xf32> -> vector<28x112xf32>
    %c0_195 = arith.constant 0 : index
    %c0_196 = arith.constant 0 : index
    %c0_197 = arith.constant 0 : index
    %230 = vector.load %arg26[%c0_195, %c0_196, %c0_197] : memref<3x112x112xf32, #tpu.memory_space<vmem>>, vector<1x112x112xf32>
    %231 = vector.shape_cast %230 : vector<1x112x112xf32> to vector<112x112xf32>
    %cst_198 = arith.constant dense<0.000000e+00> : vector<28x112xf32>
    %232 = tpu.matmul %229, %231, %cst_198 {dimension_numbers = #tpu.dot_dimension_numbers<[1], [0], [0], [1], [0, 0, 1, 1], [], []>} : vector<28x112xf32>, vector<112x112xf32>, vector<28x112xf32> -> vector<28x112xf32>
    %c1_199 = arith.constant 1 : index
    %c0_200 = arith.constant 0 : index
    %c0_201 = arith.constant 0 : index
    %233 = vector.load %arg25[%c1_199, %c0_200, %c0_201] : memref<3x28x14xf32, #tpu.memory_space<vmem>>, vector<1x28x14xf32>
    %234 = vector.shape_cast %233 : vector<1x28x14xf32> to vector<28x14xf32>
    %cst_202 = arith.constant dense<0.000000e+00> : vector<28x112xf32>
    %235 = tpu.matmul %234, %225, %cst_202 {dimension_numbers = #tpu.dot_dimension_numbers<[1], [0], [0], [1], [0, 0, 1, 1], [], []>} : vector<28x14xf32>, vector<14x112xf32>, vector<28x112xf32> -> vector<28x112xf32>
    %c1_203 = arith.constant 1 : index
    %c0_204 = arith.constant 0 : index
    %c0_205 = arith.constant 0 : index
    %236 = vector.load %arg26[%c1_203, %c0_204, %c0_205] : memref<3x112x112xf32, #tpu.memory_space<vmem>>, vector<1x112x112xf32>
    %237 = vector.shape_cast %236 : vector<1x112x112xf32> to vector<112x112xf32>
    %cst_206 = arith.constant dense<0.000000e+00> : vector<28x112xf32>
    %238 = tpu.matmul %235, %237, %cst_206 {dimension_numbers = #tpu.dot_dimension_numbers<[1], [0], [0], [1], [0, 0, 1, 1], [], []>} : vector<28x112xf32>, vector<112x112xf32>, vector<28x112xf32> -> vector<28x112xf32>
    %239 = arith.addf %232, %238 : vector<28x112xf32>
    %c2_207 = arith.constant 2 : index
    %c0_208 = arith.constant 0 : index
    %c0_209 = arith.constant 0 : index
    %240 = vector.load %arg25[%c2_207, %c0_208, %c0_209] : memref<3x28x14xf32, #tpu.memory_space<vmem>>, vector<1x28x14xf32>
    %241 = vector.shape_cast %240 : vector<1x28x14xf32> to vector<28x14xf32>
    %cst_210 = arith.constant dense<0.000000e+00> : vector<28x112xf32>
    %242 = tpu.matmul %241, %225, %cst_210 {dimension_numbers = #tpu.dot_dimension_numbers<[1], [0], [0], [1], [0, 0, 1, 1], [], []>} : vector<28x14xf32>, vector<14x112xf32>, vector<28x112xf32> -> vector<28x112xf32>
    %c2_211 = arith.constant 2 : index
    %c0_212 = arith.constant 0 : index
    %c0_213 = arith.constant 0 : index
    %243 = vector.load %arg26[%c2_211, %c0_212, %c0_213] : memref<3x112x112xf32, #tpu.memory_space<vmem>>, vector<1x112x112xf32>
    %244 = vector.shape_cast %243 : vector<1x112x112xf32> to vector<112x112xf32>
    %cst_214 = arith.constant dense<0.000000e+00> : vector<28x112xf32>
    %245 = tpu.matmul %242, %244, %cst_214 {dimension_numbers = #tpu.dot_dimension_numbers<[1], [0], [0], [1], [0, 0, 1, 1], [], []>} : vector<28x112xf32>, vector<112x112xf32>, vector<28x112xf32> -> vector<28x112xf32>
    %246 = arith.addf %239, %245 : vector<28x112xf32>
    %247 = vector.extract_strided_slice %226 {offsets = [0, 0], sizes = [1, 112], strides = [1, 1]} : vector<3x112xf32> to vector<1x112xf32>
    %248 = vector.broadcast %247 : vector<1x112xf32> to vector<28x112xf32>
    %249 = arith.addf %246, %248 : vector<28x112xf32>
    %c0_215 = arith.constant 0 : index
    %c0_216 = arith.constant 0 : index
    %250 = vector.load %arg28[%c0_215, %c0_216] : memref<112x112xf32, #tpu.memory_space<vmem>>, vector<112x112xf32>
    %cst_217 = arith.constant dense<0.000000e+00> : vector<28x112xf32>
    %251 = tpu.matmul %249, %250, %cst_217 {dimension_numbers = #tpu.dot_dimension_numbers<[1], [0], [0], [1], [0, 0, 1, 1], [], []>} : vector<28x112xf32>, vector<112x112xf32>, vector<28x112xf32> -> vector<28x112xf32>
    %cst_218 = arith.constant dense<0.000000e+00> : vector<112xf32>
    %252 = vector.multi_reduction <add>, %251, %cst_218 [0] : vector<28x112xf32> to vector<112xf32>
    %253 = vector.shape_cast %252 : vector<112xf32> to vector<1x112xf32>
    %cst_219 = arith.constant 2.800000e+01 : f32
    %254 = vector.broadcast %cst_219 : f32 to vector<1x112xf32>
    %255 = arith.divf %253, %254 : vector<1x112xf32>
    %256 = arith.mulf %249, %249 : vector<28x112xf32>
    %cst_220 = arith.constant dense<0.000000e+00> : vector<28x112xf32>
    %257 = tpu.matmul %256, %250, %cst_220 {dimension_numbers = #tpu.dot_dimension_numbers<[1], [0], [0], [1], [0, 0, 1, 1], [], []>} : vector<28x112xf32>, vector<112x112xf32>, vector<28x112xf32> -> vector<28x112xf32>
    %cst_221 = arith.constant dense<0.000000e+00> : vector<112xf32>
    %258 = vector.multi_reduction <add>, %257, %cst_221 [0] : vector<28x112xf32> to vector<112xf32>
    %259 = vector.shape_cast %258 : vector<112xf32> to vector<1x112xf32>
    %cst_222 = arith.constant 2.800000e+01 : f32
    %260 = vector.broadcast %cst_222 : f32 to vector<1x112xf32>
    %261 = arith.divf %259, %260 : vector<1x112xf32>
    %262 = arith.mulf %255, %255 : vector<1x112xf32>
    %263 = arith.subf %261, %262 : vector<1x112xf32>
    %264 = vector.broadcast %255 : vector<1x112xf32> to vector<28x112xf32>
    %265 = arith.subf %249, %264 : vector<28x112xf32>
    %cst_223 = arith.constant 9.99999974E-6 : f32
    %266 = vector.broadcast %cst_223 : f32 to vector<1x112xf32>
    %267 = arith.addf %263, %266 : vector<1x112xf32>
    %268 = math.rsqrt %267 : vector<1x112xf32>
    %269 = vector.broadcast %268 : vector<1x112xf32> to vector<28x112xf32>
    %270 = arith.mulf %265, %269 : vector<28x112xf32>
    %271 = vector.extract_strided_slice %226 {offsets = [1, 0], sizes = [1, 112], strides = [1, 1]} : vector<3x112xf32> to vector<1x112xf32>
    %272 = vector.broadcast %271 : vector<1x112xf32> to vector<28x112xf32>
    %273 = arith.mulf %270, %272 : vector<28x112xf32>
    %274 = vector.extract_strided_slice %226 {offsets = [2, 0], sizes = [1, 112], strides = [1, 1]} : vector<3x112xf32> to vector<1x112xf32>
    %275 = vector.broadcast %274 : vector<1x112xf32> to vector<28x112xf32>
    %276 = arith.addf %273, %275 : vector<28x112xf32>
    %cst_224 = arith.constant 0.000000e+00 : f32
    %277 = vector.broadcast %cst_224 : f32 to vector<28x112xf32>
    %278 = arith.maximumf %276, %277 : vector<28x112xf32>
    %c0_225 = arith.constant 0 : index
    %c0_226 = arith.constant 0 : index
    %279 = vector.load %arg31[%c0_225, %c0_226] : memref<1x28xf32, #tpu.memory_space<vmem>>, vector<1x28xf32>
    %c0_227 = arith.constant 0 : index
    %c0_228 = arith.constant 0 : index
    %c0_229 = arith.constant 0 : index
    %280 = vector.load %arg29[%c0_227, %c0_228, %c0_229] : memref<3x56x28xf32, #tpu.memory_space<vmem>>, vector<1x56x28xf32>
    %281 = vector.shape_cast %280 : vector<1x56x28xf32> to vector<56x28xf32>
    %cst_230 = arith.constant dense<0.000000e+00> : vector<56x112xf32>
    %282 = tpu.matmul %281, %278, %cst_230 {dimension_numbers = #tpu.dot_dimension_numbers<[1], [0], [0], [1], [0, 0, 1, 1], [], []>} : vector<56x28xf32>, vector<28x112xf32>, vector<56x112xf32> -> vector<56x112xf32>
    %c0_231 = arith.constant 0 : index
    %c0_232 = arith.constant 0 : index
    %c0_233 = arith.constant 0 : index
    %283 = vector.load %arg30[%c0_231, %c0_232, %c0_233] : memref<3x112x28xf32, #tpu.memory_space<vmem>>, vector<1x112x28xf32>
    %284 = vector.shape_cast %283 : vector<1x112x28xf32> to vector<112x28xf32>
    %cst_234 = arith.constant dense<0.000000e+00> : vector<56x28xf32>
    %285 = tpu.matmul %282, %284, %cst_234 {dimension_numbers = #tpu.dot_dimension_numbers<[1], [0], [0], [1], [0, 0, 1, 1], [], []>} : vector<56x112xf32>, vector<112x28xf32>, vector<56x28xf32> -> vector<56x28xf32>
    %c1_235 = arith.constant 1 : index
    %c0_236 = arith.constant 0 : index
    %c0_237 = arith.constant 0 : index
    %286 = vector.load %arg29[%c1_235, %c0_236, %c0_237] : memref<3x56x28xf32, #tpu.memory_space<vmem>>, vector<1x56x28xf32>
    %287 = vector.shape_cast %286 : vector<1x56x28xf32> to vector<56x28xf32>
    %cst_238 = arith.constant dense<0.000000e+00> : vector<56x112xf32>
    %288 = tpu.matmul %287, %278, %cst_238 {dimension_numbers = #tpu.dot_dimension_numbers<[1], [0], [0], [1], [0, 0, 1, 1], [], []>} : vector<56x28xf32>, vector<28x112xf32>, vector<56x112xf32> -> vector<56x112xf32>
    %c1_239 = arith.constant 1 : index
    %c0_240 = arith.constant 0 : index
    %c0_241 = arith.constant 0 : index
    %289 = vector.load %arg30[%c1_239, %c0_240, %c0_241] : memref<3x112x28xf32, #tpu.memory_space<vmem>>, vector<1x112x28xf32>
    %290 = vector.shape_cast %289 : vector<1x112x28xf32> to vector<112x28xf32>
    %cst_242 = arith.constant dense<0.000000e+00> : vector<56x28xf32>
    %291 = tpu.matmul %288, %290, %cst_242 {dimension_numbers = #tpu.dot_dimension_numbers<[1], [0], [0], [1], [0, 0, 1, 1], [], []>} : vector<56x112xf32>, vector<112x28xf32>, vector<56x28xf32> -> vector<56x28xf32>
    %292 = arith.addf %285, %291 : vector<56x28xf32>
    %c2_243 = arith.constant 2 : index
    %c0_244 = arith.constant 0 : index
    %c0_245 = arith.constant 0 : index
    %293 = vector.load %arg29[%c2_243, %c0_244, %c0_245] : memref<3x56x28xf32, #tpu.memory_space<vmem>>, vector<1x56x28xf32>
    %294 = vector.shape_cast %293 : vector<1x56x28xf32> to vector<56x28xf32>
    %cst_246 = arith.constant dense<0.000000e+00> : vector<56x112xf32>
    %295 = tpu.matmul %294, %278, %cst_246 {dimension_numbers = #tpu.dot_dimension_numbers<[1], [0], [0], [1], [0, 0, 1, 1], [], []>} : vector<56x28xf32>, vector<28x112xf32>, vector<56x112xf32> -> vector<56x112xf32>
    %c2_247 = arith.constant 2 : index
    %c0_248 = arith.constant 0 : index
    %c0_249 = arith.constant 0 : index
    %296 = vector.load %arg30[%c2_247, %c0_248, %c0_249] : memref<3x112x28xf32, #tpu.memory_space<vmem>>, vector<1x112x28xf32>
    %297 = vector.shape_cast %296 : vector<1x112x28xf32> to vector<112x28xf32>
    %cst_250 = arith.constant dense<0.000000e+00> : vector<56x28xf32>
    %298 = tpu.matmul %295, %297, %cst_250 {dimension_numbers = #tpu.dot_dimension_numbers<[1], [0], [0], [1], [0, 0, 1, 1], [], []>} : vector<56x112xf32>, vector<112x28xf32>, vector<56x28xf32> -> vector<56x28xf32>
    %299 = arith.addf %292, %298 : vector<56x28xf32>
    %300 = vector.broadcast %279 : vector<1x28xf32> to vector<56x28xf32>
    %301 = arith.addf %299, %300 : vector<56x28xf32>
    %cst_251 = arith.constant 0.000000e+00 : f32
    %302 = vector.broadcast %cst_251 : f32 to vector<56x28xf32>
    %303 = arith.subf %302, %301 : vector<56x28xf32>
    %304 = math.exp %303 : vector<56x28xf32>
    %cst_252 = arith.constant 1.000000e+00 : f32
    %305 = vector.broadcast %cst_252 : f32 to vector<56x28xf32>
    %306 = arith.addf %305, %304 : vector<56x28xf32>
    %cst_253 = arith.constant 1.000000e+00 : f32
    %307 = vector.broadcast %cst_253 : f32 to vector<56x28xf32>
    %308 = arith.divf %307, %306 : vector<56x28xf32>
    %c0_254 = arith.constant 0 : index
    %c0_255 = arith.constant 0 : index
    %309 = vector.load %arg32[%c0_254, %c0_255] : memref<56x28xf32, #tpu.memory_space<vmem>>, vector<56x28xf32>
    tpu.vector_store %arg32[%c0_254, %c0_255], %308 {strides = array<i32>} : memref<56x28xf32, #tpu.memory_space<vmem>>, vector<56x28xf32>,
    return
  }
}

</mosaic_0001>

<bundles_post_ra>
// kernel: forward.1
= control target key start
LH: loop header
LB: loop body
LE: loop exit
PB: predicated region body
PF: predicated region fallthrough
CT: control target
= control target key end

     0   :  { %s9946_s6 = smov 1   ;;  %s9947_s10 = smov 2   ;;  %s11131_s0 = inlined_call_operand.smem [shape: u32[33], index: -1, kind: input, shape index: {}] }
   0x1   :  { %s10024_s5 = sld [smem:[%s11131_s0]]   ;;  %s9948_s14 = smov 3  }
   0x2   :  { %s10029_s9 = sld [smem:[%s11131_s0 + %s9946_s6]]   ;;  %s9949_s18 = smov 4  }
   0x3   :  { %s10034_s13 = sld [smem:[%s11131_s0 + %s9947_s10]]   ;;  %s9950_s22 = smov 5  }
   0x4   :  { %s10039_s17 = sld [smem:[%s11131_s0 + %s9948_s14]]   ;;  %s9951_s26 = smov 6  }
   0x5   :  { %s10044_s21 = sld [smem:[%s11131_s0 + %s9949_s18]]   ;;  %s9952_s30 = smov 7  }
   0x6   :  { %s10049_s25 = sld [smem:[%s11131_s0 + %s9950_s22]]   ;;  %s9953_s4 = smov 8  }
   0x7   :  { %s10054_s29 = sld [smem:[%s11131_s0 + %s9951_s26]]   ;;  %s9954_s10 = smov 9  }
   0x8   :  { %s10059_s3 = sld [smem:[%s11131_s0 + %s9952_s30]]   ;;  %s9955_s15 = smov 10  }
   0x9   :  { %11146 = sst [smem:[#allocation64_spill]] %s10034_s13  ;;  %s9956_s20 = smov 11  }
   0xa   :  { %s10064_s8 = sld [smem:[%s11131_s0 + %s9953_s4]]   ;;  %s9957_s26 = smov 12  }
   0xb   :  { %11147 = sst [smem:[#allocation65_spill]] %s10044_s21  ;;  %s9958_s1 = smov 13  }
   0xc   :  { %s10069_s14 = sld [smem:[%s11131_s0 + %s9954_s10]]   ;;  %s9959_s7 = smov 14  }
   0xd   :  { %11148 = sst [smem:[#allocation66_spill]] %s10054_s29  ;;  %s9961_s22 = smov 16  }
   0xe   :  { %s10074_s19 = sld [smem:[%s11131_s0 + %s9955_s15]]   ;;  %s9960_s15 = smov 15  }
   0xf   :  { %s10079_s24 = sld [smem:[%s11131_s0 + %s9956_s20]]   ;;  %s9962_s28 = smov 17  }
  0x10   :  { %11149 = sst [smem:[#allocation67_spill]] %s10064_s8 }
  0x11   :  { %s10084_s30 = sld [smem:[%s11131_s0 + %s9957_s26]]  }
  0x12   :  { %s10089_s6 = sld [smem:[%s11131_s0 + %s9958_s1]]  }
  0x13   :  { %s10094_s12 = sld [smem:[%s11131_s0 + %s9959_s7]]   ;;  %s9963_s7 = smov 18  }
  0x14   :  { %11150 = sst [smem:[#allocation68_spill]] %s10074_s19 }
  0x15   :  { %s10099_s20 = sld [smem:[%s11131_s0 + %s9960_s15]]   ;;  %s9964_s15 = smov 19  }
  0x16   :  { %s10104_s27 = sld [smem:[%s11131_s0 + %s9961_s22]]   ;;  %s9965_s22 = smov 20  }
  0x17   :  { %11151 = sst [smem:[#allocation69_spill]] %s10084_s30 }
  0x18   :  { %s10109_s4 = sld [smem:[%s11131_s0 + %s9962_s28]]   ;;  %s9966_s28 = smov 21  }
  0x19   :  { %11152 = sst [smem:[#allocation70_spill]] %s10094_s12 }
  0x1a   :  { %s10114_s12 = sld [smem:[%s11131_s0 + %s9963_s7]]   ;;  %s9967_s7 = smov 22  }
  0x1b   :  { %s10119_s30 = sld [smem:[%s11131_s0 + %s9964_s15]]   ;;  %s9968_s15 = smov 23  }
  0x1c   :  { %11153 = sst [smem:[#allocation71_spill]] %s10104_s27 }
  0x1d   :  { %s10124_s27 = sld [smem:[%s11131_s0 + %s9965_s22]]   ;;  %s9969_s22 = smov 24  }
  0x1e   :  { %11154 = sst [smem:[#allocation72_spill]] %s10109_s4 }
  0x1f   :  { %s10129_s4 = sld [smem:[%s11131_s0 + %s9966_s28]]   ;;  %s9970_s28 = smov 25  }
  0x20   :  { %s10134_s19 = sld [smem:[%s11131_s0 + %s9967_s7]]   ;;  %s9971_s7 = smov 26  }
  0x21   :  { %11155 = sst [smem:[#allocation73_spill]] %s10119_s30 }
  0x22   :  { %s10139_s30 = sld [smem:[%s11131_s0 + %s9968_s15]]   ;;  %s9972_s15 = smov 27  }
  0x23   :  { %s10144_s8 = sld [smem:[%s11131_s0 + %s9969_s22]]   ;;  %s9973_s22 = smov 28  }
  0x24   :  { %s10154_s29 = sld [smem:[%s11131_s0 + %s9971_s7]]   ;;  %s9975_s7 = smov 30  }
  0x25   :  { %11156 = sst [smem:[#allocation74_spill]] %s10129_s4 }
  0x26   :  { %s10149_s4 = sld [smem:[%s11131_s0 + %s9970_s28]]   ;;  %s9974_s28 = smov 29  }
  0x27   :  { %s10164_s21 = sld [smem:[%s11131_s0 + %s9973_s22]]   ;;  %s9977_s22 = smov 32  }
  0x28   :  { %11157 = sst [smem:[#allocation75_spill]] %s10139_s30 }
  0x29   :  { %s10159_s30 = sld [smem:[%s11131_s0 + %s9972_s15]]   ;;  %s9976_s15 = smov 31  }
  0x2a   :  { %s10174_s13 = sld [smem:[%s11131_s0 + %s9975_s7]]  }
  0x2c   :  { %11158 = sst [smem:[#allocation76_spill]] %s10149_s4 }
  0x2d   :  { %11160 = sst [smem:[#allocation78_spill]] %s10164_s21 }
  0x2e   :  { %s10169_s4 = sld [smem:[%s11131_s0 + %s9974_s28]]  }
  0x2f   :  { %11159 = sst [smem:[#allocation77_spill]] %s10159_s30 }
  0x30   :  { %s10179_s30 = sld [smem:[%s11131_s0 + %s9976_s15]]  }
  0x31   :  { %s10184_s21 = sld [smem:[%s11131_s0 + %s9977_s22]]  }
  0x32   :  { %70 = vsyncpa [#allocation3], 0 }
  0x33   :  { %71 = vsyncpa [#allocation6], 0 }
  0x34   :  { %72 = vsyncpa [#allocation9], 0 }
  0x35   :  { %73 = vsyncpa [#allocation12], 0 }
  0x36   :  { %74 = vsyncpa [#allocation15], 0 }
  0x37   :  { %75 = vsyncpa [#allocation18], 0 }
  0x38   :  { %76 = vsyncpa [#allocation21], 0 }
  0x39   :  { %77 = vsyncpa [#allocation24], 0 }
  0x3a   :  { %78 = vsyncpa [#allocation27], 0 }
  0x3b   :  { %79 = vsyncpa [#allocation30], 0 }
  0x3c   :  { %80 = vsyncpa [#allocation33], 0 }
  0x3d   :  { %81 = vsyncpa [#allocation36], 0 }
  0x3e   :  { %82 = vsyncpa [#allocation39], 0 }
  0x3f   :  { %83 = vsyncpa [#allocation42], 0 }
  0x40   :  { %84 = vsyncpa [#allocation45], 0 }
  0x41   :  { %85 = vsyncpa [#allocation4], 0  ;;  %s9978_s0 = smov [#allocation5]   ;;  %s9979_s1 = smov [#allocation8]  }
  0x42   :  { %s103_s28 = sshll.u32 %s9978_s0, 4  ;;  %s128_s2 = sshll.u32 %s9979_s1, 4  ;;  %s104_s28 = int_to_ptr.vmem [resolvable:$true] %s103_s28  ;;  %s10186_s2 = int_to_ptr.vmem [resolvable:$true] %s128_s2 }
  0x43   :  { %s9254_s7 = scalar_lea.hbm %s10029_s9, 1536 }
  0x44   :  { %p9255_p0 = scmp.ne.s32.totalorder %s10029_s9, %s9254_s7  ;;  %p9258_p1 = scmp.lt.u32.totalorder %s9254_s7, %s10029_s9 }
  0x46   :  { %p9260_p2 = pnand %p9258_p1, %p9255_p0 }
  0x48   :  { %9263 = shalt.err (!%p9260_p2)
}
  0x49   :  { %s9264_s10 = scalar_lea.vmem %s104_s28, 1536  ;;  %p9269_p4 = scmp.lt.s32.totalorder %s104_s28, %s104_s28 }
  0x4a   :  { %p9265_p3 = scmp.ne.s32.totalorder %s104_s28, %s9264_s10  ;;  %p9270_p5 = scmp.lt.s32.totalorder %s9264_s10, %s9264_s10 }
  0x4c   :  { %p9271_p6 = por %p9270_p5, %p9269_p4 }
  0x4e   :  { %p9272_p7 = pnand %p9271_p6, %p9265_p3 }
  0x50   :  { %9275 = shalt.err (!%p9272_p7)
}
  0x51   :  { %s9980_s11 = smov 128   ;;  %s9981_s15 = smov 8  }
  0x52   :  { %109 = dma.hbm_to_vmem [thread:$0]  %s10029_s9, 1536, %s104_s28, [#allocation6], %s9980_s11, %s9980_s11, %s9981_s15  }
  0x53   :  { %s9276_s16 = scalar_lea.hbm %s10039_s17, 16 }
  0x54   :  { %p9277_p8 = scmp.ne.s32.totalorder %s10039_s17, %s9276_s16  ;;  %p9280_p9 = scmp.lt.u32.totalorder %s9276_s16, %s10039_s17 }
  0x56   :  { %p9282_p10 = pnand %p9280_p9, %p9277_p8 }
  0x58   :  { %9285 = shalt.err (!%p9282_p10)
}
  0x59   :  { %s9286_s18 = scalar_lea.vmem %s10186_s2, 16  ;;  %s9290_s22 = scalar_lea.vmem %s10186_s2, 32 }
  0x5a   :  { %p9287_p11 = scmp.ne.s32.totalorder %s10186_s2, %s9286_s18  ;;  %p9291_p12 = scmp.lt.s32.totalorder %s10186_s2, %s10186_s2 }
  0x5b   :  { %p9292_p13 = scmp.lt.s32.totalorder %s9290_s22, %s9286_s18 }
  0x5d   :  { %p9293_p0 = por %p9292_p13, %p9291_p12 }
  0x5f   :  { %p9294_p1 = pnand %p9293_p0, %p9287_p11 }
  0x61   :  { %9297 = shalt.err (!%p9294_p1)
}
  0x62   :  { %131 = dma.hbm_to_vmem [thread:$0]  %s10039_s17, 16, %s10186_s2, [#allocation9]  }
  0x63   :  { %s9982_s9 = smov [#allocation11]   ;;  %s9983_s26 = smov [#allocation14]  }
  0x64   :  { %s149_s23 = sshll.u32 %s9982_s9, 4  ;;  %s171_s0 = sshll.u32 %s9983_s26, 4  ;;  %s150_s23 = int_to_ptr.vmem [resolvable:$true] %s149_s23  ;;  %s10205_s0 = int_to_ptr.vmem [resolvable:$true] %s171_s0 }
  0x65   :  { %s9298_s28 = scalar_lea.hbm %s10049_s25, 5376 }
  0x66   :  { %p9299_p2 = scmp.ne.s32.totalorder %s10049_s25, %s9298_s28  ;;  %p9302_p3 = scmp.lt.u32.totalorder %s9298_s28, %s10049_s25 }
  0x68   :  { %p9304_p4 = pnand %p9302_p3, %p9299_p2 }
  0x6a   :  { %9307 = shalt.err (!%p9304_p4)
}
  0x6b   :  { %s9308_s1 = scalar_lea.vmem %s150_s23, 5376  ;;  %p9313_p6 = scmp.lt.s32.totalorder %s150_s23, %s150_s23 }
  0x6c   :  { %p9309_p5 = scmp.ne.s32.totalorder %s150_s23, %s9308_s1  ;;  %p9314_p7 = scmp.lt.s32.totalorder %s9308_s1, %s9308_s1 }
  0x6e   :  { %p9315_p8 = por %p9314_p7, %p9313_p6 }
  0x70   :  { %p9316_p9 = pnand %p9315_p8, %p9309_p5 }
  0x72   :  { %9319 = shalt.err (!%p9316_p9)
}
  0x73   :  { %155 = dma.hbm_to_vmem [thread:$0]  %s10049_s25, 5376, %s150_s23, [#allocation12], %s9980_s11, %s9980_s11, %s9981_s15  }
  0x74   :  { %s9320_s17 = scalar_lea.hbm %s10059_s3, 1792 }
  0x75   :  { %p9321_p10 = scmp.ne.s32.totalorder %s10059_s3, %s9320_s17  ;;  %p9324_p11 = scmp.lt.u32.totalorder %s9320_s17, %s10059_s3 }
  0x77   :  { %p9326_p12 = pnand %p9324_p11, %p9321_p10 }
  0x79   :  { %9329 = shalt.err (!%p9326_p12)
}
  0x7a   :  { %s9330_s2 = scalar_lea.vmem %s10205_s0, 1792  ;;  %p9335_p0 = scmp.lt.s32.totalorder %s10205_s0, %s10205_s0 }
  0x7b   :  { %p9331_p13 = scmp.ne.s32.totalorder %s10205_s0, %s9330_s2  ;;  %p9336_p1 = scmp.lt.s32.totalorder %s9330_s2, %s9330_s2 }
  0x7d   :  { %p9337_p2 = por %p9336_p1, %p9335_p0 }
  0x7f   :  { %p9338_p3 = pnand %p9337_p2, %p9331_p13 }
  0x81   :  { %9341 = shalt.err (!%p9338_p3)
}
  0x82   :  { %177 = dma.hbm_to_vmem [thread:$0]  %s10059_s3, 1792, %s10205_s0, [#allocation15], %s9980_s11, %s9980_s11, %s9981_s15  }
  0x83   :  { %s9984_s25 = smov [#allocation17]   ;;  %s9985_s10 = smov [#allocation20]  }
  0x84   :  { %s195_s7 = sshll.u32 %s9984_s25, 4  ;;  %s217_s16 = sshll.u32 %s9985_s10, 4  ;;  %s196_s7 = int_to_ptr.vmem [resolvable:$true] %s195_s7  ;;  %s10226_s16 = int_to_ptr.vmem [resolvable:$true] %s217_s16 }
  0x85   :  { %s9342_s18 = scalar_lea.hbm %s10069_s14, 5376 }
  0x86   :  { %p9343_p4 = scmp.ne.s32.totalorder %s10069_s14, %s9342_s18  ;;  %p9346_p5 = scmp.lt.u32.totalorder %s9342_s18, %s10069_s14 }
  0x88   :  { %p9348_p6 = pnand %p9346_p5, %p9343_p4 }
  0x8a   :  { %9351 = shalt.err (!%p9348_p6)
}
  0x8b   :  { %s9352_s22 = scalar_lea.vmem %s196_s7, 5376  ;;  %p9357_p8 = scmp.lt.s32.totalorder %s196_s7, %s196_s7 }
  0x8c   :  { %p9353_p7 = scmp.ne.s32.totalorder %s196_s7, %s9352_s22  ;;  %p9358_p9 = scmp.lt.s32.totalorder %s9352_s22, %s9352_s22 }
  0x8e   :  { %p9359_p10 = por %p9358_p9, %p9357_p8 }
  0x90   :  { %p9360_p11 = pnand %p9359_p10, %p9353_p7 }
  0x92   :  { %9363 = shalt.err (!%p9360_p11)
}
  0x93   :  { %201 = dma.hbm_to_vmem [thread:$0]  %s10069_s14, 5376, %s196_s7, [#allocation18], %s9980_s11, %s9980_s11, %s9981_s15  }
  0x94   :  { %s9364_s3 = scalar_lea.hbm %s10079_s24, 96 }
  0x95   :  { %p9365_p12 = scmp.ne.s32.totalorder %s10079_s24, %s9364_s3  ;;  %p9368_p13 = scmp.lt.u32.totalorder %s9364_s3, %s10079_s24 }
  0x97   :  { %p9370_p0 = pnand %p9368_p13, %p9365_p12 }
  0x99   :  { %9373 = shalt.err (!%p9370_p0)
}
  0x9a   :  { %s9374_s9 = scalar_lea.vmem %s10226_s16, 96  ;;  %p9379_p2 = scmp.lt.s32.totalorder %s10226_s16, %s10226_s16 }
  0x9b   :  { %p9375_p1 = scmp.ne.s32.totalorder %s10226_s16, %s9374_s9  ;;  %p9380_p3 = scmp.lt.s32.totalorder %s9374_s9, %s9374_s9 }
  0x9d   :  { %p9381_p4 = por %p9380_p3, %p9379_p2 }
  0x9f   :  { %p9382_p5 = pnand %p9381_p4, %p9375_p1 }
  0xa1   :  { %9385 = shalt.err (!%p9382_p5)
}
  0xa2   :  { %s9986_s23 = smov 32   ;;  %s9987_s14 = smov 2  }
  0xa3   :  { %223 = dma.hbm_to_vmem [thread:$0]  %s10079_s24, 96, %s10226_s16, [#allocation21], %s9986_s23, %s9986_s23, %s9987_s14  }
  0xa4   :  { %s9988_s26 = smov [#allocation23]   ;;  %s9989_s28 = smov [#allocation26]  }
  0xa5   :  { %s242_s0 = sshll.u32 %s9988_s26, 4  ;;  %s264_s1 = sshll.u32 %s9989_s28, 4  ;;  %s243_s0 = int_to_ptr.vmem [resolvable:$true] %s242_s0  ;;  %s265_s1 = int_to_ptr.vmem [resolvable:$true] %s264_s1 }
  0xa6   :  { %s9386_s17 = scalar_lea.hbm %s10089_s6, 16 }
  0xa7   :  { %p9387_p6 = scmp.ne.s32.totalorder %s10089_s6, %s9386_s17  ;;  %p9390_p7 = scmp.lt.u32.totalorder %s9386_s17, %s10089_s6 }
  0xa9   :  { %p9392_p8 = pnand %p9390_p7, %p9387_p6 }
  0xab   :  { %9395 = shalt.err (!%p9392_p8)
}
  0xac   :  { %s9396_s2 = scalar_lea.vmem %s243_s0, 16  ;;  %s9400_s25 = scalar_lea.vmem %s243_s0, 32 }
  0xad   :  { %p9397_p9 = scmp.ne.s32.totalorder %s243_s0, %s9396_s2  ;;  %p9401_p10 = scmp.lt.s32.totalorder %s243_s0, %s243_s0 }
  0xae   :  { %p9402_p11 = scmp.lt.s32.totalorder %s9400_s25, %s9396_s2 }
  0xb0   :  { %p9403_p12 = por %p9402_p11, %p9401_p10 }
  0xb2   :  { %p9404_p13 = pnand %p9403_p12, %p9397_p9 }
  0xb4   :  { %9407 = shalt.err (!%p9404_p13)
}
  0xb5   :  { %245 = dma.hbm_to_vmem [thread:$0]  %s10089_s6, 16, %s243_s0, [#allocation24]  }
  0xb6   :  { %s9408_s24 = scalar_lea.hbm %s10099_s20, 16 }
  0xb7   :  { %p9409_p0 = scmp.ne.s32.totalorder %s10099_s20, %s9408_s24  ;;  %p9412_p1 = scmp.lt.u32.totalorder %s9408_s24, %s10099_s20 }
  0xb9   :  { %p9414_p2 = pnand %p9412_p1, %p9409_p0 }
  0xbb   :  { %9417 = shalt.err (!%p9414_p2)
}
  0xbc   :  { %s9418_s7 = scalar_lea.vmem %s265_s1, 16  ;;  %s9422_s10 = scalar_lea.vmem %s265_s1, 32 }
  0xbd   :  { %p9419_p3 = scmp.ne.s32.totalorder %s265_s1, %s9418_s7  ;;  %p9423_p4 = scmp.lt.s32.totalorder %s265_s1, %s265_s1 }
  0xbe   :  { %p9424_p5 = scmp.lt.s32.totalorder %s9422_s10, %s9418_s7 }
  0xc0   :  { %p9425_p6 = por %p9424_p5, %p9423_p4 }
  0xc2   :  { %p9426_p7 = pnand %p9425_p6, %p9419_p3 }
  0xc4   :  { %9429 = shalt.err (!%p9426_p7)
}
  0xc5   :  { %267 = dma.hbm_to_vmem [thread:$0]  %s10099_s20, 16, %s265_s1, [#allocation27]  }
  0xc6   :  { %s9990_s16 = smov [#allocation29]   ;;  %s9991_s18 = smov [#allocation32]  }
  0xc7   :  { %s287_s6 = sshll.u32 %s9990_s16, 4  ;;  %s312_s22 = sshll.u32 %s9991_s18, 4  ;;  %s288_s6 = int_to_ptr.vmem [resolvable:$true] %s287_s6  ;;  %s313_s22 = int_to_ptr.vmem [resolvable:$true] %s312_s22 }
  0xc8   :  { %s9430_s3 = scalar_lea.hbm %s10114_s12, 384 }
  0xc9   :  { %p9431_p8 = scmp.ne.s32.totalorder %s10114_s12, %s9430_s3  ;;  %p9434_p9 = scmp.lt.u32.totalorder %s9430_s3, %s10114_s12 }
  0xcb   :  { %p9436_p10 = pnand %p9434_p9, %p9431_p8 }
  0xcd   :  { %9439 = shalt.err (!%p9436_p10)
}
  0xce   :  { %s9440_s9 = scalar_lea.vmem %s288_s6, 384  ;;  %p9445_p12 = scmp.lt.s32.totalorder %s288_s6, %s288_s6 }
  0xcf   :  { %p9441_p11 = scmp.ne.s32.totalorder %s288_s6, %s9440_s9  ;;  %p9446_p13 = scmp.lt.s32.totalorder %s9440_s9, %s9440_s9 }
  0xd1   :  { %p9447_p0 = por %p9446_p13, %p9445_p12 }
  0xd3   :  { %p9448_p1 = pnand %p9447_p0, %p9441_p11 }
  0xd5   :  { %9451 = shalt.err (!%p9448_p1)
}
  0xd6   :  { %293 = dma.hbm_to_vmem [thread:$0]  %s10114_s12, 384, %s288_s6, [#allocation30], %s9980_s11, %s9980_s11, %s9981_s15  }
  0xd7   :  { %s9452_s20 = scalar_lea.hbm %s10124_s27, 64 }
  0xd8   :  { %p9453_p2 = scmp.ne.s32.totalorder %s10124_s27, %s9452_s20  ;;  %p9456_p3 = scmp.lt.u32.totalorder %s9452_s20, %s10124_s27 }
  0xda   :  { %p9458_p4 = pnand %p9456_p3, %p9453_p2 }
  0xdc   :  { %9461 = shalt.err (!%p9458_p4)
}
  0xdd   :  { %s9462_s23 = scalar_lea.vmem %s313_s22, 64  ;;  %p9467_p6 = scmp.lt.s32.totalorder %s313_s22, %s313_s22 }
  0xde   :  { %p9463_p5 = scmp.ne.s32.totalorder %s313_s22, %s9462_s23  ;;  %p9468_p7 = scmp.lt.s32.totalorder %s9462_s23, %s9462_s23 }
  0xe0   :  { %p9469_p8 = por %p9468_p7, %p9467_p6 }
  0xe2   :  { %p9470_p9 = pnand %p9469_p8, %p9463_p5 }
  0xe4   :  { %9473 = shalt.err (!%p9470_p9)
}
  0xe5   :  { %315 = dma.hbm_to_vmem [thread:$0]  %s10124_s27, 64, %s313_s22, [#allocation33]  }
  0xe6   :  { %s9992_s14 = smov [#allocation35]   ;;  %s9993_s12 = smov [#allocation38]  }
  0xe7   :  { %s333_s26 = sshll.u32 %s9992_s14, 4  ;;  %s355_s0 = sshll.u32 %s9993_s12, 4  ;;  %s334_s26 = int_to_ptr.vmem [resolvable:$true] %s333_s26  ;;  %s10263_s0 = int_to_ptr.vmem [resolvable:$true] %s355_s0 }
  0xe8   :  { %s9474_s28 = scalar_lea.hbm %s10134_s19, 4608 }
  0xe9   :  { %p9475_p10 = scmp.ne.s32.totalorder %s10134_s19, %s9474_s28  ;;  %p9478_p11 = scmp.lt.u32.totalorder %s9474_s28, %s10134_s19 }
  0xeb   :  { %p9480_p12 = pnand %p9478_p11, %p9475_p10 }
  0xed   :  { %9483 = shalt.err (!%p9480_p12)
}
  0xee   :  { %s9484_s1 = scalar_lea.vmem %s334_s26, 4608  ;;  %p9489_p0 = scmp.lt.s32.totalorder %s334_s26, %s334_s26 }
  0xef   :  { %p9485_p13 = scmp.ne.s32.totalorder %s334_s26, %s9484_s1  ;;  %p9490_p1 = scmp.lt.s32.totalorder %s9484_s1, %s9484_s1 }
  0xf1   :  { %p9491_p2 = por %p9490_p1, %p9489_p0 }
  0xf3   :  { %p9492_p3 = pnand %p9491_p2, %p9485_p13 }
  0xf5   :  { %9495 = shalt.err (!%p9492_p3)
}
  0xf6   :  { %339 = dma.hbm_to_vmem [thread:$0]  %s10134_s19, 4608, %s334_s26, [#allocation36], %s9980_s11, %s9980_s11, %s9981_s15  }
  0xf7   :  { %s9496_s27 = scalar_lea.hbm %s10144_s8, 1792 }
  0xf8   :  { %p9497_p4 = scmp.ne.s32.totalorder %s10144_s8, %s9496_s27  ;;  %p9500_p5 = scmp.lt.u32.totalorder %s9496_s27, %s10144_s8 }
  0xfa   :  { %p9502_p6 = pnand %p9500_p5, %p9497_p4 }
  0xfc   :  { %9505 = shalt.err (!%p9502_p6)
}
  0xfd   :  { %s9506_s17 = scalar_lea.vmem %s10263_s0, 1792  ;;  %p9511_p8 = scmp.lt.s32.totalorder %s10263_s0, %s10263_s0 }
  0xfe   :  { %p9507_p7 = scmp.ne.s32.totalorder %s10263_s0, %s9506_s17  ;;  %p9512_p9 = scmp.lt.s32.totalorder %s9506_s17, %s9506_s17 }
 0x100   :  { %p9513_p10 = por %p9512_p9, %p9511_p8 }
 0x102   :  { %p9514_p11 = pnand %p9513_p10, %p9507_p7 }
 0x104   :  { %9517 = shalt.err (!%p9514_p11)
}
 0x105   :  { %361 = dma.hbm_to_vmem [thread:$0]  %s10144_s8, 1792, %s10263_s0, [#allocation39], %s9980_s11, %s9980_s11, %s9981_s15  }
 0x106   :  { %s9994_s19 = smov [#allocation41]   ;;  %s9995_s25 = smov [#allocation44]  }
 0x107   :  { %s379_s2 = sshll.u32 %s9994_s19, 4  ;;  %s403_s24 = sshll.u32 %s9995_s25, 4  ;;  %s380_s2 = int_to_ptr.vmem [resolvable:$true] %s379_s2  ;;  %s10284_s24 = int_to_ptr.vmem [resolvable:$true] %s403_s24 }
 0x108   :  { %s9518_s7 = scalar_lea.hbm %s10154_s29, 5376 }
 0x109   :  { %p9519_p12 = scmp.ne.s32.totalorder %s10154_s29, %s9518_s7  ;;  %p9522_p13 = scmp.lt.u32.totalorder %s9518_s7, %s10154_s29 }
 0x10b   :  { %p9524_p0 = pnand %p9522_p13, %p9519_p12 }
 0x10d   :  { %9527 = shalt.err (!%p9524_p0)
}
 0x10e   :  { %s9528_s10 = scalar_lea.vmem %s380_s2, 5376  ;;  %p9533_p2 = scmp.lt.s32.totalorder %s380_s2, %s380_s2 }
 0x10f   :  { %p9529_p1 = scmp.ne.s32.totalorder %s380_s2, %s9528_s10  ;;  %p9534_p3 = scmp.lt.s32.totalorder %s9528_s10, %s9528_s10 }
 0x111   :  { %p9535_p4 = por %p9534_p3, %p9533_p2 }
 0x113   :  { %p9536_p5 = pnand %p9535_p4, %p9529_p1 }
 0x115   :  { %9539 = shalt.err (!%p9536_p5)
}
 0x116   :  { %385 = dma.hbm_to_vmem [thread:$0]  %s10154_s29, 5376, %s380_s2, [#allocation42], %s9980_s11, %s9980_s11, %s9981_s15  }
 0x117   :  { %s9540_s8 = scalar_lea.hbm %s10169_s4, 2688 }
 0x118   :  { %p9541_p6 = scmp.ne.s32.totalorder %s10169_s4, %s9540_s8  ;;  %p9544_p7 = scmp.lt.u32.totalorder %s9540_s8, %s10169_s4 }
 0x11a   :  { %p9546_p8 = pnand %p9544_p7, %p9541_p6 }
 0x11c   :  { %9549 = shalt.err (!%p9546_p8)
}
 0x11d   :  { %s9550_s16 = scalar_lea.vmem %s10284_s24, 2688  ;;  %p9555_p10 = scmp.lt.s32.totalorder %s10284_s24, %s10284_s24 }
 0x11e   :  { %p9551_p9 = scmp.ne.s32.totalorder %s10284_s24, %s9550_s16  ;;  %p9556_p11 = scmp.lt.s32.totalorder %s9550_s16, %s9550_s16 }
 0x120   :  { %p9557_p12 = por %p9556_p11, %p9555_p10 }
 0x122   :  { %p9558_p13 = pnand %p9557_p12, %p9551_p9 }
 0x124   :  { %9561 = shalt.err (!%p9558_p13)
}
 0x125   :  { %409 = dma.hbm_to_vmem [thread:$0]  %s10169_s4, 2688, %s10284_s24, [#allocation45], %s9980_s11, %s9980_s11, %s9981_s15  }
 0x126   :  { %s9996_s29 = smov [#allocation2]   ;;  %s9997_s18 = smov [#allocation7]  }
 0x127   :  { %s91_s6 = sshll.u32 %s9996_s29, 4  ;;  %s115_s22 = sshll.u32 %s9997_s18, 4  ;;  %s92_s6 = int_to_ptr.vmem [resolvable:$true] %s91_s6  ;;  %s10305_s22 = int_to_ptr.vmem [resolvable:$true] %s115_s22 }
 0x128   :  { %s9562_s3 = scalar_lea.hbm %s10024_s5, 896 }
 0x129   :  { %p9563_p0 = scmp.ne.s32.totalorder %s10024_s5, %s9562_s3  ;;  %p9566_p1 = scmp.lt.u32.totalorder %s9562_s3, %s10024_s5 }
 0x12b   :  { %p9568_p2 = pnand %p9566_p1, %p9563_p0 }
 0x12d   :  { %9571 = shalt.err (!%p9568_p2)
}
 0x12e   :  { %s9572_s9 = scalar_lea.vmem %s92_s6, 896  ;;  %p9577_p4 = scmp.lt.s32.totalorder %s92_s6, %s92_s6 }
 0x12f   :  { %p9573_p3 = scmp.ne.s32.totalorder %s92_s6, %s9572_s9  ;;  %p9578_p5 = scmp.lt.s32.totalorder %s9572_s9, %s9572_s9 }
 0x131   :  { %p9579_p6 = por %p9578_p5, %p9577_p4 }
 0x133   :  { %p9580_p7 = pnand %p9579_p6, %p9573_p3 }
 0x135   :  { %9583 = shalt.err (!%p9580_p7)
}
 0x136   :  { %s11161_s4 = sld [smem:[#allocation64_spill]] }
 0x137   :  { %97 = dma.hbm_to_vmem [thread:$0]  %s10024_s5, 896, %s92_s6, [#allocation3], %s9980_s11, %s9980_s11, %s9981_s15  }
 0x13c   :  { %s9584_s20 = scalar_lea.hbm %s11161_s4, 1536 }
 0x13d   :  { %p9585_p8 = scmp.ne.s32.totalorder %s11161_s4, %s9584_s20  ;;  %p9588_p9 = scmp.lt.u32.totalorder %s9584_s20, %s11161_s4 }
 0x13f   :  { %p9590_p10 = pnand %p9588_p9, %p9585_p8 }
 0x141   :  { %9593 = shalt.err (!%p9590_p10)
}
 0x142   :  { %s9594_s23 = scalar_lea.vmem %s10305_s22, 1536  ;;  %p9599_p12 = scmp.lt.s32.totalorder %s10305_s22, %s10305_s22 }
 0x143   :  { %p9595_p11 = scmp.ne.s32.totalorder %s10305_s22, %s9594_s23  ;;  %p9600_p13 = scmp.lt.s32.totalorder %s9594_s23, %s9594_s23 }
 0x145   :  { %p9601_p0 = por %p9600_p13, %p9599_p12 }
 0x147   :  { %p9602_p1 = pnand %p9601_p0, %p9595_p11 }
 0x149   :  { %9605 = shalt.err (!%p9602_p1)
}
 0x14a   :  { %s11162_s5 = sld [smem:[#allocation65_spill]]  ;;  %s9998_s14 = smov [#allocation10]  }
 0x14b   :  { %121 = dma.hbm_to_vmem [thread:$0]  %s11161_s4, 1536, %s10305_s22, [#allocation6], %s9980_s11, %s9980_s11, %s9981_s15  }
 0x14c   :  { %s137_s26 = sshll.u32 %s9998_s14, 4  ;;  %s9999_s12 = smov [#allocation13]   ;;  %s138_s26 = int_to_ptr.vmem [resolvable:$true] %s137_s26 }
 0x14d   :  { %s162_s0 = sshll.u32 %s9999_s12, 4  ;;  %s163_s0 = int_to_ptr.vmem [resolvable:$true] %s162_s0 }
 0x150   :  { %s9606_s28 = scalar_lea.hbm %s11162_s5, 768 }
 0x151   :  { %p9607_p2 = scmp.ne.s32.totalorder %s11162_s5, %s9606_s28  ;;  %p9610_p3 = scmp.lt.u32.totalorder %s9606_s28, %s11162_s5 }
 0x153   :  { %p9612_p4 = pnand %p9610_p3, %p9607_p2 }
 0x155   :  { %9615 = shalt.err (!%p9612_p4)
}
 0x156   :  { %s9616_s1 = scalar_lea.vmem %s138_s26, 768  ;;  %p9621_p6 = scmp.lt.s32.totalorder %s138_s26, %s138_s26 }
 0x157   :  { %p9617_p5 = scmp.ne.s32.totalorder %s138_s26, %s9616_s1  ;;  %p9622_p7 = scmp.lt.s32.totalorder %s9616_s1, %s9616_s1 }
 0x159   :  { %p9623_p8 = por %p9622_p7, %p9621_p6 }
 0x15b   :  { %p9624_p9 = pnand %p9623_p8, %p9617_p5 }
 0x15d   :  { %9627 = shalt.err (!%p9624_p9)
}
 0x15e   :  { %s11163_s27 = sld [smem:[#allocation66_spill]] }
 0x15f   :  { %143 = dma.hbm_to_vmem [thread:$0]  %s11162_s5, 768, %s138_s26, [#allocation9], %s9980_s11, %s9980_s11, %s9981_s15  }
 0x164   :  { %s9628_s17 = scalar_lea.hbm %s11163_s27, 64 }
 0x165   :  { %p9629_p10 = scmp.ne.s32.totalorder %s11163_s27, %s9628_s17  ;;  %p9632_p11 = scmp.lt.u32.totalorder %s9628_s17, %s11163_s27 }
 0x167   :  { %p9634_p12 = pnand %p9632_p11, %p9629_p10 }
 0x169   :  { %9637 = shalt.err (!%p9634_p12)
}
 0x16a   :  { %s9638_s19 = scalar_lea.vmem %s163_s0, 64  ;;  %p9643_p0 = scmp.lt.s32.totalorder %s163_s0, %s163_s0 }
 0x16b   :  { %p9639_p13 = scmp.ne.s32.totalorder %s163_s0, %s9638_s19  ;;  %p9644_p1 = scmp.lt.s32.totalorder %s9638_s19, %s9638_s19 }
 0x16d   :  { %p9645_p2 = por %p9644_p1, %p9643_p0 }
 0x16f   :  { %p9646_p3 = pnand %p9645_p2, %p9639_p13 }
 0x171   :  { %9649 = shalt.err (!%p9646_p3)
}
 0x172   :  { %s11164_s2 = sld [smem:[#allocation67_spill]]  ;;  %s10000_s25 = smov [#allocation16]  }
 0x173   :  { %165 = dma.hbm_to_vmem [thread:$0]  %s11163_s27, 64, %s163_s0, [#allocation12]  }
 0x174   :  { %s183_s24 = sshll.u32 %s10000_s25, 4  ;;  %s10001_s7 = smov [#allocation19]   ;;  %s184_s24 = int_to_ptr.vmem [resolvable:$true] %s183_s24 }
 0x175   :  { %s208_s10 = sshll.u32 %s10001_s7, 4  ;;  %s209_s10 = int_to_ptr.vmem [resolvable:$true] %s208_s10 }
 0x178   :  { %s9650_s8 = scalar_lea.hbm %s11164_s2, 384 }
 0x179   :  { %p9651_p4 = scmp.ne.s32.totalorder %s11164_s2, %s9650_s8  ;;  %p9654_p5 = scmp.lt.u32.totalorder %s9650_s8, %s11164_s2 }
 0x17b   :  { %p9656_p6 = pnand %p9654_p5, %p9651_p4 }
 0x17d   :  { %9659 = shalt.err (!%p9656_p6)
}
 0x17e   :  { %s9660_s16 = scalar_lea.vmem %s184_s24, 384  ;;  %p9665_p8 = scmp.lt.s32.totalorder %s184_s24, %s184_s24 }
 0x17f   :  { %p9661_p7 = scmp.ne.s32.totalorder %s184_s24, %s9660_s16  ;;  %p9666_p9 = scmp.lt.s32.totalorder %s9660_s16, %s9660_s16 }
 0x181   :  { %p9667_p10 = por %p9666_p9, %p9665_p8 }
 0x183   :  { %p9668_p11 = pnand %p9667_p10, %p9661_p7 }
 0x185   :  { %9671 = shalt.err (!%p9668_p11)
}
 0x186   :  { %s11165_s29 = sld [smem:[#allocation68_spill]] }
 0x187   :  { %189 = dma.hbm_to_vmem [thread:$0]  %s11164_s2, 384, %s184_s24, [#allocation15], %s9980_s11, %s9980_s11, %s9981_s15  }
 0x18c   :  { %s9672_s6 = scalar_lea.hbm %s11165_s29, 16 }
 0x18d   :  { %p9673_p12 = scmp.ne.s32.totalorder %s11165_s29, %s9672_s6  ;;  %p9676_p13 = scmp.lt.u32.totalorder %s9672_s6, %s11165_s29 }
 0x18f   :  { %p9678_p0 = pnand %p9676_p13, %p9673_p12 }
 0x191   :  { %9681 = shalt.err (!%p9678_p0)
}
 0x192   :  { %s9682_s18 = scalar_lea.vmem %s209_s10, 16  ;;  %s9686_s22 = scalar_lea.vmem %s209_s10, 32 }
 0x193   :  { %p9683_p1 = scmp.ne.s32.totalorder %s209_s10, %s9682_s18  ;;  %p9687_p2 = scmp.lt.s32.totalorder %s209_s10, %s209_s10 }
 0x194   :  { %p9688_p3 = scmp.lt.s32.totalorder %s9686_s22, %s9682_s18 }
 0x196   :  { %p9689_p4 = por %p9688_p3, %p9687_p2 }
 0x198   :  { %p9690_p5 = pnand %p9689_p4, %p9683_p1 }
 0x19a   :  { %9693 = shalt.err (!%p9690_p5)
}
 0x19b   :  { %s11166_s3 = sld [smem:[#allocation69_spill]]  ;;  %s10002_s9 = smov [#allocation22]  }
 0x19c   :  { %211 = dma.hbm_to_vmem [thread:$0]  %s11165_s29, 16, %s209_s10, [#allocation18]  }
 0x19d   :  { %s229_s4 = sshll.u32 %s10002_s9, 4  ;;  %s10003_s20 = smov [#allocation25]   ;;  %s230_s4 = int_to_ptr.vmem [resolvable:$true] %s229_s4 }
 0x19e   :  { %s251_s23 = sshll.u32 %s10003_s20, 4  ;;  %s10348_s23 = int_to_ptr.vmem [resolvable:$true] %s251_s23 }
 0x1a1   :  { %s9694_s5 = scalar_lea.hbm %s11166_s3, 4608 }
 0x1a2   :  { %p9695_p6 = scmp.ne.s32.totalorder %s11166_s3, %s9694_s5  ;;  %p9698_p7 = scmp.lt.u32.totalorder %s9694_s5, %s11166_s3 }
 0x1a4   :  { %p9700_p8 = pnand %p9698_p7, %p9695_p6 }
 0x1a6   :  { %9703 = shalt.err (!%p9700_p8)
}
 0x1a7   :  { %s9704_s14 = scalar_lea.vmem %s230_s4, 4608  ;;  %p9709_p10 = scmp.lt.s32.totalorder %s230_s4, %s230_s4 }
 0x1a8   :  { %p9705_p9 = scmp.ne.s32.totalorder %s230_s4, %s9704_s14  ;;  %p9710_p11 = scmp.lt.s32.totalorder %s9704_s14, %s9704_s14 }
 0x1aa   :  { %p9711_p12 = por %p9710_p11, %p9709_p10 }
 0x1ac   :  { %p9712_p13 = pnand %p9711_p12, %p9705_p9 }
 0x1ae   :  { %9715 = shalt.err (!%p9712_p13)
}
 0x1af   :  { %s11167_s26 = sld [smem:[#allocation70_spill]] }
 0x1b0   :  { %235 = dma.hbm_to_vmem [thread:$0]  %s11166_s3, 4608, %s230_s4, [#allocation21], %s9980_s11, %s9980_s11, %s9981_s15  }
 0x1b5   :  { %s9716_s12 = scalar_lea.hbm %s11167_s26, 2048 }
 0x1b6   :  { %p9717_p0 = scmp.ne.s32.totalorder %s11167_s26, %s9716_s12  ;;  %p9720_p1 = scmp.lt.u32.totalorder %s9716_s12, %s11167_s26 }
 0x1b8   :  { %p9722_p2 = pnand %p9720_p1, %p9717_p0 }
 0x1ba   :  { %9725 = shalt.err (!%p9722_p2)
}
 0x1bb   :  { %s9726_s0 = scalar_lea.vmem %s10348_s23, 2048  ;;  %p9731_p4 = scmp.lt.s32.totalorder %s10348_s23, %s10348_s23 }
 0x1bc   :  { %p9727_p3 = scmp.ne.s32.totalorder %s10348_s23, %s9726_s0  ;;  %p9732_p5 = scmp.lt.s32.totalorder %s9726_s0, %s9726_s0 }
 0x1be   :  { %p9733_p6 = por %p9732_p5, %p9731_p4 }
 0x1c0   :  { %p9734_p7 = pnand %p9733_p6, %p9727_p3 }
 0x1c2   :  { %9737 = shalt.err (!%p9734_p7)
}
 0x1c3   :  { %s11168_s28 = sld [smem:[#allocation71_spill]]  ;;  %s10004_s1 = smov [#allocation28]  }
 0x1c4   :  { %257 = dma.hbm_to_vmem [thread:$0]  %s11167_s26, 2048, %s10348_s23, [#allocation24], %s9980_s11, %s9980_s11, %s9981_s15  }
 0x1c5   :  { %s273_s27 = sshll.u32 %s10004_s1, 4  ;;  %s10005_s17 = smov [#allocation31]   ;;  %s274_s27 = int_to_ptr.vmem [resolvable:$true] %s273_s27 }
 0x1c6   :  { %s299_s19 = sshll.u32 %s10005_s17, 4  ;;  %s10369_s19 = int_to_ptr.vmem [resolvable:$true] %s299_s19 }
 0x1c9   :  { %s9738_s2 = scalar_lea.hbm %s11168_s28, 256 }
 0x1ca   :  { %p9739_p8 = scmp.ne.s32.totalorder %s11168_s28, %s9738_s2  ;;  %p9742_p9 = scmp.lt.u32.totalorder %s9738_s2, %s11168_s28 }
 0x1cc   :  { %p9744_p10 = pnand %p9742_p9, %p9739_p8 }
 0x1ce   :  { %9747 = shalt.err (!%p9744_p10)
}
 0x1cf   :  { %s9748_s25 = scalar_lea.vmem %s274_s27, 256  ;;  %p9753_p12 = scmp.lt.s32.totalorder %s274_s27, %s274_s27 }
 0x1d0   :  { %p9749_p11 = scmp.ne.s32.totalorder %s274_s27, %s9748_s25  ;;  %p9754_p13 = scmp.lt.s32.totalorder %s9748_s25, %s9748_s25 }
 0x1d2   :  { %p9755_p0 = por %p9754_p13, %p9753_p12 }
 0x1d4   :  { %p9756_p1 = pnand %p9755_p0, %p9749_p11 }
 0x1d6   :  { %9759 = shalt.err (!%p9756_p1)
}
 0x1d7   :  { %s11169_s24 = sld [smem:[#allocation73_spill]] }
 0x1d8   :  { %279 = dma.hbm_to_vmem [thread:$0]  %s11168_s28, 256, %s274_s27, [#allocation27], %s9980_s11, %s9980_s11, %s9981_s15  }
 0x1dd   :  { %s9760_s7 = scalar_lea.hbm %s11169_s24, 6144 }
 0x1de   :  { %p9761_p2 = scmp.ne.s32.totalorder %s11169_s24, %s9760_s7  ;;  %p9764_p3 = scmp.lt.u32.totalorder %s9760_s7, %s11169_s24 }
 0x1e0   :  { %p9766_p4 = pnand %p9764_p3, %p9761_p2 }
 0x1e2   :  { %9769 = shalt.err (!%p9766_p4)
}
 0x1e3   :  { %s9770_s10 = scalar_lea.vmem %s10369_s19, 6144  ;;  %p9775_p6 = scmp.lt.s32.totalorder %s10369_s19, %s10369_s19 }
 0x1e4   :  { %p9771_p5 = scmp.ne.s32.totalorder %s10369_s19, %s9770_s10  ;;  %p9776_p7 = scmp.lt.s32.totalorder %s9770_s10, %s9770_s10 }
 0x1e6   :  { %p9777_p8 = por %p9776_p7, %p9775_p6 }
 0x1e8   :  { %p9778_p9 = pnand %p9777_p8, %p9771_p5 }
 0x1ea   :  { %9781 = shalt.err (!%p9778_p9)
}
 0x1eb   :  { %s11170_s8 = sld [smem:[#allocation74_spill]]  ;;  %s10006_s16 = smov [#allocation34]  }
 0x1ec   :  { %305 = dma.hbm_to_vmem [thread:$0]  %s11169_s24, 6144, %s10369_s19, [#allocation30], %s9980_s11, %s9980_s11, %s9981_s15  }
 0x1ed   :  { %s321_s29 = sshll.u32 %s10006_s16, 4  ;;  %s10007_s6 = smov [#allocation37]   ;;  %s322_s29 = int_to_ptr.vmem [resolvable:$true] %s321_s29 }
 0x1ee   :  { %s346_s18 = sshll.u32 %s10007_s6, 4  ;;  %s347_s18 = int_to_ptr.vmem [resolvable:$true] %s346_s18 }
 0x1f1   :  { %s9782_s22 = scalar_lea.hbm %s11170_s8, 768 }
 0x1f2   :  { %p9783_p10 = scmp.ne.s32.totalorder %s11170_s8, %s9782_s22  ;;  %p9786_p11 = scmp.lt.u32.totalorder %s9782_s22, %s11170_s8 }
 0x1f4   :  { %p9788_p12 = pnand %p9786_p11, %p9783_p10 }
 0x1f6   :  { %9791 = shalt.err (!%p9788_p12)
}
 0x1f7   :  { %s9792_s3 = scalar_lea.vmem %s322_s29, 768  ;;  %p9797_p0 = scmp.lt.s32.totalorder %s322_s29, %s322_s29 }
 0x1f8   :  { %p9793_p13 = scmp.ne.s32.totalorder %s322_s29, %s9792_s3  ;;  %p9798_p1 = scmp.lt.s32.totalorder %s9792_s3, %s9792_s3 }
 0x1fa   :  { %p9799_p2 = por %p9798_p1, %p9797_p0 }
 0x1fc   :  { %p9800_p3 = pnand %p9799_p2, %p9793_p13 }
 0x1fe   :  { %9803 = shalt.err (!%p9800_p3)
}
 0x1ff   :  { %s11171_s9 = sld [smem:[#allocation75_spill]] }
 0x200   :  { %327 = dma.hbm_to_vmem [thread:$0]  %s11170_s8, 768, %s322_s29, [#allocation33], %s9980_s11, %s9980_s11, %s9981_s15  }
 0x205   :  { %s9804_s4 = scalar_lea.hbm %s11171_s9, 64 }
 0x206   :  { %p9805_p4 = scmp.ne.s32.totalorder %s11171_s9, %s9804_s4  ;;  %p9808_p5 = scmp.lt.u32.totalorder %s9804_s4, %s11171_s9 }
 0x208   :  { %p9810_p6 = pnand %p9808_p5, %p9805_p4 }
 0x20a   :  { %9813 = shalt.err (!%p9810_p6)
}
 0x20b   :  { %s9814_s20 = scalar_lea.vmem %s347_s18, 64  ;;  %p9819_p8 = scmp.lt.s32.totalorder %s347_s18, %s347_s18 }
 0x20c   :  { %p9815_p7 = scmp.ne.s32.totalorder %s347_s18, %s9814_s20  ;;  %p9820_p9 = scmp.lt.s32.totalorder %s9814_s20, %s9814_s20 }
 0x20e   :  { %p9821_p10 = por %p9820_p9, %p9819_p8 }
 0x210   :  { %p9822_p11 = pnand %p9821_p10, %p9815_p7 }
 0x212   :  { %9825 = shalt.err (!%p9822_p11)
}
 0x213   :  { %s11172_s23 = sld [smem:[#allocation76_spill]]  ;;  %s10008_s5 = smov [#allocation40]  }
 0x214   :  { %349 = dma.hbm_to_vmem [thread:$0]  %s11171_s9, 64, %s347_s18, [#allocation36]  }
 0x215   :  { %s367_s14 = sshll.u32 %s10008_s5, 4  ;;  %s10009_s26 = smov [#allocation43]   ;;  %s368_s14 = int_to_ptr.vmem [resolvable:$true] %s367_s14 }
 0x216   :  { %s392_s12 = sshll.u32 %s10009_s26, 4  ;;  %s393_s12 = int_to_ptr.vmem [resolvable:$true] %s392_s12 }
 0x219   :  { %s9826_s0 = scalar_lea.hbm %s11172_s23, 1536 }
 0x21a   :  { %p9827_p12 = scmp.ne.s32.totalorder %s11172_s23, %s9826_s0  ;;  %p9830_p13 = scmp.lt.u32.totalorder %s9826_s0, %s11172_s23 }
 0x21c   :  { %p9832_p0 = pnand %p9830_p13, %p9827_p12 }
 0x21e   :  { %9835 = shalt.err (!%p9832_p0)
}
 0x21f   :  { %s9836_s28 = scalar_lea.vmem %s368_s14, 1536  ;;  %p9841_p2 = scmp.lt.s32.totalorder %s368_s14, %s368_s14 }
 0x220   :  { %p9837_p1 = scmp.ne.s32.totalorder %s368_s14, %s9836_s28  ;;  %p9842_p3 = scmp.lt.s32.totalorder %s9836_s28, %s9836_s28 }
 0x222   :  { %p9843_p4 = por %p9842_p3, %p9841_p2 }
 0x224   :  { %p9844_p5 = pnand %p9843_p4, %p9837_p1 }
 0x226   :  { %9847 = shalt.err (!%p9844_p5)
}
 0x227   :  { %s11173_s1 = sld [smem:[#allocation77_spill]] }
 0x228   :  { %373 = dma.hbm_to_vmem [thread:$0]  %s11172_s23, 1536, %s368_s14, [#allocation39], %s9980_s11, %s9980_s11, %s9981_s15  }
 0x22d   :  { %s9848_s27 = scalar_lea.hbm %s11173_s1, 64 }
 0x22e   :  { %p9849_p6 = scmp.ne.s32.totalorder %s11173_s1, %s9848_s27  ;;  %p9852_p7 = scmp.lt.u32.totalorder %s9848_s27, %s11173_s1 }
 0x230   :  { %p9854_p8 = pnand %p9852_p7, %p9849_p6 }
 0x232   :  { %9857 = shalt.err (!%p9854_p8)
}
 0x233   :  { %s9858_s17 = scalar_lea.vmem %s393_s12, 64  ;;  %p9863_p10 = scmp.lt.s32.totalorder %s393_s12, %s393_s12 }
 0x234   :  { %p9859_p9 = scmp.ne.s32.totalorder %s393_s12, %s9858_s17  ;;  %p9864_p11 = scmp.lt.s32.totalorder %s9858_s17, %s9858_s17 }
 0x236   :  { %p9865_p12 = por %p9864_p11, %p9863_p10 }
 0x238   :  { %p9866_p13 = pnand %p9865_p12, %p9859_p9 }
 0x23a   :  { %9869 = shalt.err (!%p9866_p13)
}
 0x23b   :  { %395 = dma.hbm_to_vmem [thread:$0]  %s11173_s1, 64, %s393_s12, [#allocation42]  }
 0x23c   :  { %s10010_s19 = smov [#allocation46]   ;;  %s9870_s25 = scalar_lea.hbm %s10174_s13, 5376 }
 0x23d   :  { %s415_s2 = sshll.u32 %s10010_s19, 4  ;;  %p9871_p0 = scmp.ne.s32.totalorder %s10174_s13, %s9870_s25  ;;  %s416_s2 = int_to_ptr.vmem [resolvable:$true] %s415_s2 }
 0x23e   :  { %p9874_p1 = scmp.lt.u32.totalorder %s9870_s25, %s10174_s13 }
 0x240   :  { %p9876_p2 = pnand %p9874_p1, %p9871_p0 }
 0x242   :  { %9879 = shalt.err (!%p9876_p2)
}
 0x243   :  { %s9880_s24 = scalar_lea.vmem %s416_s2, 5376  ;;  %p9885_p4 = scmp.lt.s32.totalorder %s416_s2, %s416_s2 }
 0x244   :  { %p9881_p3 = scmp.ne.s32.totalorder %s416_s2, %s9880_s24  ;;  %p9886_p5 = scmp.lt.s32.totalorder %s9880_s24, %s9880_s24 }
 0x246   :  { %p9887_p6 = por %p9886_p5, %p9885_p4 }
 0x248   :  { %p9888_p7 = pnand %p9887_p6, %p9881_p3 }
 0x24a   :  { %9891 = shalt.err (!%p9888_p7)
}
 0x24b   :  { %421 = dma.hbm_to_vmem [thread:$0]  %s10174_s13, 5376, %s416_s2, [#allocation45], %s9980_s11, %s9980_s11, %s9981_s15  }
 0x24c   :  { %9914 = dma.done.wait [#allocation3], 896  }
 0x24d   :  { %9915 = vsyncadd [#allocation3], 4294966400 }
 0x24e   :  { %9916 = dma.done.wait [#allocation6], 3072  }
 0x24f   :  { %9917 = vsyncadd [#allocation6], 4294964224 }
 0x250   :  { %9918 = dma.done.wait [#allocation9], 784  }
 0x251   :  { %9919 = vsyncadd [#allocation9], 4294966512 }
 0x252   :  { %9920 = dma.done.wait [#allocation12], 5440  }
 0x253   :  { %9921 = vsyncadd [#allocation12], 4294961856 }
 0x254   :  { %9922 = dma.done.wait [#allocation15], 2176  }
 0x255   :  { %9923 = vsyncadd [#allocation15], 4294965120 }
 0x256   :  { %9924 = dma.done.wait [#allocation18], 5392  }
 0x257   :  { %9925 = vsyncadd [#allocation18], 4294961904 }
 0x258   :  { %9926 = dma.done.wait [#allocation21], 4704  }
 0x259   :  { %9927 = vsyncadd [#allocation21], 4294962592 }
 0x25a   :  { %9928 = dma.done.wait [#allocation24], 2064  }
 0x25b   :  { %9929 = vsyncadd [#allocation24], 4294965232 }
 0x25c   :  { %9930 = dma.done.wait [#allocation27], 272  }
 0x25d   :  { %9931 = vsyncadd [#allocation27], 4294967024 }
 0x25e   :  { %9932 = dma.done.wait [#allocation30], 6528  }
 0x25f   :  { %9933 = vsyncadd [#allocation30], 4294960768 }
 0x260   :  { %9934 = dma.done.wait [#allocation33], 832  }
 0x261   :  { %9935 = vsyncadd [#allocation33], 4294966464 }
 0x262   :  { %9936 = dma.done.wait [#allocation36], 4672  }
 0x263   :  { %9937 = vsyncadd [#allocation36], 4294962624 }
 0x264   :  { %9938 = dma.done.wait [#allocation39], 3328  }
 0x265   :  { %9939 = vsyncadd [#allocation39], 4294963968 }
 0x266   :  { %9940 = dma.done.wait [#allocation42], 5440  }
 0x267   :  { %9941 = vsyncadd [#allocation42], 4294961856 }
 0x268   :  { %9942 = dma.done.wait [#allocation45], 8064  }
 0x269   :  { %9943 = vsyncadd [#allocation45], 4294959232  ;;  %v511_v0 = vld [vmem:[#allocation2] sm:$0xff]  ;;  %v512_v1 = vld [vmem:[#allocation2 + $0x8] sm:$0xff]  ;;  %vm523_vm0 = vcmask 457728   ;;  %vm745_vm1 = vcmask 1043456  }
 0x26a   :  { %v513_v2 = vld [vmem:[#allocation2 + $0x10] sm:$0xff]  ;;  %v8288_v3 = vpack.c.bf16 %v512_v1, %v511_v0  ;;  %v514_v4 = vld [vmem:[#allocation2 + $0x18] sm:$0xff]  ;;  %v515_v6 = vld [vmem:[#allocation2 + $0x20] sm:$0xff]  ;;  %vm10011_vm2 = vmmov 1   ;;  %vm732_vm4 = vcmask 228352   ;;  %vm1359_vm5 = vcmask 916480  }
 0x26b   :  { %v8292_v5 = vpack.c.bf16 %v514_v4, %v513_v2  ;;  %v516_v7 = vld [vmem:[#allocation2 + $0x28] sm:$0xff]  ;;  %v626_v8 = vld [vmem:[#allocation5 + $0x20] sm:$0xff]  ;;  %v517_v11 = vld [vmem:[#allocation2 + $0x30] sm:$0xff]  ;;  %vm10013_vm6 = vmmov 0   ;;  %vm1806_vm7 = vcmask 914432   ;;  %vm1938_vm8 = vcmask 1045504  }
 0x26c   :  { %8301 = vmatprep.subr.bf16.mxu1 %v8288_v3  ;;  %8289 = vmatprep.subr.bf16.mxu0 %v8288_v3  ;;  %v519_v9 = vld [vmem:[#allocation5] sm:$0xff]  ;;  %v8296_v10 = vpack.c.bf16 %v516_v7, %v515_v6  ;;  %v729_v13 = vld [vmem:[#allocation7 + $0x28] sm:$0xff]  ;;  %v628_v15 = vld [vmem:[#allocation5 + $0x30] sm:$0xff]  ;;  %vm1934_vm10 = vcmask 113664   ;;  %vm2435_vm11 = vcmask 48128   ;;  %vm2612_vm12 = vcmask 785408  }
 0x26d   :  { %8303 = vmatpush3.bf16.msra.mxu1 %v8288_v3  ;;  %8291 = vmatpush3.bf16.msra.mxu0 %v8288_v3  ;;  %v728_v12 = vld [vmem:[#allocation7 + $0x20] sm:$0xff]  ;;  %v627_v14 = vld [vmem:[#allocation5 + $0x28] sm:$0xff]  ;;  %v521_v18 = vld [vmem:[#allocation5 + $0x10] sm:$0xff]  ;;  %vm3032_vm13 = vcmask 130048   ;;  %s11178_s13 = sld [smem:[#allocation72_spill]]  ;;  %vm3296_vm14 = vcmask 1041408  }
 0x26e   :  { %8305 = vmatprep.subr.bf16.mxu1 %v8292_v5  ;;  %8293 = vmatprep.subr.bf16.mxu0 %v8292_v5  ;;  %v520_v16 = vld [vmem:[#allocation5 + $0x8] sm:$0xff]  ;;  %v8312_v17 = vpack.c.bf16 %v729_v13, %v728_v12  ;;  %v730_v19 = vld [vmem:[#allocation7 + $0x30] sm:$0xff]  ;;  %v731_v20 = vld [vmem:[#allocation7 + $0x38] sm:$0xf]  ;;  %vm3292_vm15 = vcmask 15360   ;;  %s11179_s7 = sld [smem:[#allocation78_spill]] }
 0x26f   :  { %7068 = vmatprep.mubr.msk.f32.mxu1 %vm523_vm0, %v626_v8  ;;  %7048 = vmatprep.mubr.msk.f32.mxu0 %vm523_vm0, %v519_v9  ;;  %v629_v21 = vld [vmem:[#allocation5 + $0x38] sm:$0xf]  ;;  %v935_v22 = vld [vmem:[#allocation5 + $0x40] sm:$0xff]  ;;  %v8316_v24 = vpack.c.bf16 %v731_v20, %v730_v19  ;;  %vm10427_vm3 = vmpackc.low %vm745_vm1, %vm10011_vm2 }
 0x270   :  { %v522_v23 = vld [vmem:[#allocation5 + $0x18] sm:$0xf]  ;;  %v936_v26 = vld [vmem:[#allocation5 + $0x48] sm:$0xff]  ;;  %v937_v27 = vld [vmem:[#allocation5 + $0x50] sm:$0xff] }
 0x271   :  { %8307 = vmatpush3.bf16.msra.mxu1 %v8292_v5  ;;  %8295 = vmatpush3.bf16.msra.mxu0 %v8292_v5  ;;  %v938_v28 = vld [vmem:[#allocation5 + $0x58] sm:$0xf]  ;;  %v621_v29 = vld [vmem:[#allocation7] sm:$0xff]  ;;  %v622_v30 = vld [vmem:[#allocation7 + $0x8] sm:$0xff] }
 0x272   :  { %8309 = vmatprep.subr.bf16.mxu1 %v8296_v10  ;;  %8297 = vmatprep.subr.bf16.mxu0 %v8296_v10  ;;  %v8322_v31 = vpack.c.bf16 %v622_v30, %v621_v29  ;;  %v623_v32 = vld [vmem:[#allocation7 + $0x10] sm:$0xff]  ;;  %v624_v33 = vld [vmem:[#allocation7 + $0x18] sm:$0xf]  ;;  %v1037_v38 = vld [vmem:[#allocation7 + $0x40] sm:$0xff] }
 0x273   :  { %v8326_v36 = vpack.c.bf16 %v624_v33, %v623_v32  ;;  %v1038_v39 = vld [vmem:[#allocation7 + $0x48] sm:$0xff]  ;;  %v1039_v45 = vld [vmem:[#allocation7 + $0x50] sm:$0xff]  ;;  %v1040_v46 = vld [vmem:[#allocation7 + $0x58] sm:$0xf] }
 0x274   :  { %v8344_v43 = vpack.c.bf16 %v1038_v39, %v1037_v38  ;;  %v8348_v48 = vpack.c.bf16 %v1040_v46, %v1039_v45  ;;  %v1261_v53 = vld [vmem:[#allocation10 + $0x10] sm:$0xff]  ;;  %v1160_v54 = vld [vmem:[#allocation10] sm:$0xff]  ;;  %v6267_v55 = vld [vmem:[#allocation8] ss:$0 sm:$0xff] }
 0x275   :  { %8311 = vmatpush3.bf16.msra.mxu1 %v8296_v10  ;;  %8299 = vmatpush3.bf16.msra.mxu0 %v8296_v10  ;;  %v1345_v4 = vld [vmem:[#allocation11 + $0x70] sm:$0xff]  ;;  %v1347_v9 = vld [vmem:[#allocation11 + $0x80] sm:$0xff]  ;;  %v1161_v12 = vld [vmem:[#allocation10 + $0x8] sm:$0x3f] }
 0x276   :  { %7066 = vmatprep.subr.mxu1 %v517_v11  ;;  %7046 = vmatprep.subr.mxu0 %v517_v11  ;;  %v1523_v13 = vld [vmem:[#allocation10 + $0x20] sm:$0xff]  ;;  %v1352_v19 = vld [vmem:[#allocation11 + $0xa8] sm:$0xff]  ;;  %v1524_v20 = vld [vmem:[#allocation10 + $0x28] sm:$0x3f] }
 0x277   :  { %v1357_v29 = vld [vmem:[#allocation11 + $0xd0] sm:$0xff]  ;;  %v1358_v30 = vld [vmem:[#allocation11 + $0xd8] sm:$0xff]  ;;  %v1246_v32 = vld [vmem:[#allocation11] sm:$0xff] }
 0x278   :  { %v1247_v33 = vld [vmem:[#allocation11 + $0x8] sm:$0xff]  ;;  %vm10574_vm9 = vmpackc.low %vm1938_vm8, %vm10011_vm2 }
 0x279   :  { %7067 = vmatpush3.msra.mxu1 %v517_v11  ;;  %7047 = vmatpush3.msra.mxu0 %v517_v11  ;;  %v1713_v39 = vld [vmem:[#allocation14 + $0x18] sm:$0xff] }
 0x27a   :  { %7069 = vmatmul.mubr.msk.f32.vlgmr.msra.gmra.mrb[0].mxu1 %vm523_vm0, %v627_v14  ;;  %8333 = vmatprep.subr.bf16.mxu1 %v8288_v3  ;;  %v1717_v45 = vld [vmem:[#allocation14 + $0x38] sm:$0xff] }
 0x27b   :  { %8335 = vmatpush3.bf16.msra.mxu1 %v8288_v3  ;;  %7071 = vmatprep.mubr.msk.f32.mxu1 %vm523_vm0, %v628_v15  ;;  %v1349_v15 = vld [vmem:[#allocation11 + $0x90] sm:$0xff] }
 0x27c   :  { %8337 = vmatprep.subr.bf16.mxu1 %v8292_v5  ;;  %7049 = vmatmul.mubr.msk.f32.vlgmr.msra.gmra.mrb[0].mxu0 %vm523_vm0, %v520_v16  ;;  %v1350_v16 = vld [vmem:[#allocation11 + $0x98] sm:$0xff] }
 0x27d   :  { %7051 = vmatprep.mubr.msk.f32.mxu0 %vm523_vm0, %v521_v18  ;;  %8313 = vmatprep.subr.bf16.mxu0 %v8312_v17  ;;  %v1351_v18 = vld [vmem:[#allocation11 + $0xa0] sm:$0xff] }
 0x27e   :  { %7072 = vmatmul.mubr.msk.f32.gmra.mrb[2].mxu1 %vm523_vm0, %v629_v21  ;;  %8315 = vmatpush3.bf16.msra.mxu0 %v8312_v17  ;;  %v8382_v17 = vpack.c.bf16 %v1350_v16, %v1349_v15  ;;  %v8386_v21 = vpack.c.bf16 %v1352_v19, %v1351_v18  ;;  %v1609_v16 = vld [vmem:[#allocation11 + $0xf0] sm:$0xff]  ;;  %v1611_v19 = vld [vmem:[#allocation11 + $0x100] sm:$0xff] }
 0x27f   :  { %8339 = vmatpush3.bf16.msra.mxu1 %v8292_v5  ;;  %7116 = vmatprep.mubr.msk.f32.mxu1 %vm523_vm0, %v935_v22  ;;  %v1346_v5 = vld [vmem:[#allocation11 + $0x78] sm:$0xff]  ;;  %v1353_v22 = vld [vmem:[#allocation11 + $0xb0] sm:$0xff] }
 0x280   :  { %8341 = vmatprep.subr.bf16.mxu1 %v8296_v10  ;;  %7052 = vmatmul.mubr.msk.f32.gmra.mrb[2].mxu0 %vm523_vm0, %v522_v23  ;;  %v8374_v8 = vpack.c.bf16 %v1346_v5, %v1345_v4  ;;  %v1354_v23 = vld [vmem:[#allocation11 + $0xb8] sm:$0xff]  ;;  %v1254_v4 = vld [vmem:[#allocation11 + $0x40] sm:$0xff]  ;;  %v1255_v5 = vld [vmem:[#allocation11 + $0x48] sm:$0xff] }
 0x281   :  { %8318 = vmatprep.subr.msk.bf16.mxu0 %vm10427_vm3, %v8316_v24 }
 0x282   :  { %8321 = vmatpush3.bf16.msk.msra.mxu0 %vm10427_vm3, %v8316_v24  ;;  %v8390_v24 = vpack.c.bf16 %v1354_v23, %v1353_v22  ;;  %v1613_v22 = vld [vmem:[#allocation11 + $0x110] sm:$0xff]  ;;  %v1614_v23 = vld [vmem:[#allocation11 + $0x118] sm:$0xff] }
 0x283   :  { %8343 = vmatpush3.bf16.msra.mxu1 %v8296_v10  ;;  %8323 = vmatprep.subr.bf16.mxu0 %v8322_v31  ;;  %v1348_v10 = vld [vmem:[#allocation11 + $0x88] sm:$0xff] }
 0x284   :  { %7114 = vmatprep.subr.mxu1 %v517_v11  ;;  %v8378_v14 = vpack.c.bf16 %v1348_v10, %v1347_v9  ;;  %v1258_v10 = vld [vmem:[#allocation11 + $0x60] sm:$0xff] }
 0x287   :  { %7115 = vmatpush3.msra.mxu1 %v517_v11  ;;  %v1262_v11 = vld [vmem:[#allocation10 + $0x18] sm:$0x3f] }
 0x288   :  { %7117 = vmatmul.mubr.msk.f32.vlgmr.msra.gmra.mrb[4].mxu1 %vm523_vm0, %v936_v26  ;;  %v1355_v26 = vld [vmem:[#allocation11 + $0xc0] sm:$0xff] }
 0x289   :  { %7119 = vmatprep.mubr.msk.f32.mxu1 %vm523_vm0, %v937_v27  ;;  %v1356_v27 = vld [vmem:[#allocation11 + $0xc8] sm:$0xff] }
 0x28c   :  { %7120 = vmatmul.mubr.msk.f32.gmra.mrb[6].mxu1 %vm523_vm0, %v938_v28  ;;  %v8394_v28 = vpack.c.bf16 %v1356_v27, %v1355_v26  ;;  %v1615_v26 = vld [vmem:[#allocation11 + $0x120] sm:$0xff]  ;;  %v1616_v27 = vld [vmem:[#allocation11 + $0x128] sm:$0xff]  ;;  %vm5153_vm0 = vcmask 912384  }
 0x28d   :  { %7155 = vmatprep.mubr.msk.f32.mxu1 %vm732_vm4, %v1261_v53  ;;  %v1248_v53 = vld [vmem:[#allocation11 + $0x10] sm:$0xff] }
 0x34d   :  { %v7070_v34 = vpop.f32.mrb[0].mxu1 }
 0x34e   :  { %v708_v35 = vpop.f32.mrb[1].mxu1 }
 0x34f   :  { %7082 = vmatprep.mubr.msk.f32.mxu0 %vm732_vm4, %v708_v35  ;;  %v7050_v37 = vpop.f32.mrb[0].mxu0  ;;  %v1710_v35 = vld [vmem:[#allocation14] sm:$0xff] }
 0x350   :  { %7083 = vmatmul.mubr.msk.f32.vlgmr.msra.gmra.mrb[4].mxu0 %vm732_vm4, %v7070_v34  ;;  %v602_v40 = vpop.f32.mrb[1].mxu0  ;;  %v8402_v34 = vpack.c.bf16 %v1247_v33, %v1246_v32  ;;  %v1619_v32 = vld [vmem:[#allocation11 + $0x140] sm:$0xff]  ;;  %v1620_v33 = vld [vmem:[#allocation11 + $0x148] sm:$0xff] }
 0x351   :  { %v7073_v41 = vpop.f32.mrb[2].mxu1  ;;  %8325 = vmatpush3.bf16.msra.mxu0 %v8322_v31  ;;  %v8398_v31 = vpack.c.bf16 %v1358_v30, %v1357_v29  ;;  %v1617_v29 = vld [vmem:[#allocation11 + $0x130] sm:$0xff]  ;;  %v1618_v30 = vld [vmem:[#allocation11 + $0x138] sm:$0xff] }
 0x352   :  { %v718_v42 = vpop.f32.mrb[3].mxu1  ;;  %8328 = vmatprep.subr.msk.bf16.mxu0 %vm10427_vm3, %v8326_v36 }
 0x353   :  { %7085 = vmatprep.mubr.msk.f32.mxu0 %vm732_vm4, %v718_v42  ;;  %v7053_v44 = vpop.f32.mrb[2].mxu0  ;;  %v1715_v42 = vld [vmem:[#allocation14 + $0x28] sm:$0xff] }
 0x354   :  { %7086 = vmatmul.mubr.msk.f32.gmra.mrb[6].mxu0 %vm732_vm4, %v7073_v41  ;;  %v612_v47 = vpop.f32.mrb[3].mxu0  ;;  %v1714_v41 = vld [vmem:[#allocation14 + $0x20] sm:$0xff] }
 0x355   :  { %8331 = vmatpush3.bf16.msk.msra.mxu0 %vm10427_vm3, %v8326_v36  ;;  %7096 = vmatprep.mubr.msk.f32.mxu0 %vm732_vm4, %v602_v40  ;;  %v1711_v36 = vld [vmem:[#allocation14 + $0x8] sm:$0xff] }
 0x356   :  { %8345 = vmatprep.subr.bf16.mxu0 %v8344_v43  ;;  %v10478_v38 = vpack.c.bf16 %v1711_v36, %v1710_v35  ;;  %v1722_v35 = vld [vmem:[#allocation14 + $0x60] sm:$0xff]  ;;  %v1723_v36 = vld [vmem:[#allocation14 + $0x68] sm:$0xff] }
 0x358   :  { %7097 = vmatmul.mubr.msk.f32.vlgmr.msra.gmra.mrb[4].mxu0 %vm732_vm4, %v7050_v37  ;;  %v1712_v37 = vld [vmem:[#allocation14 + $0x10] sm:$0xff] }
 0x359   :  { %8347 = vmatpush3.bf16.msra.mxu0 %v8344_v43  ;;  %7099 = vmatprep.mubr.msk.f32.mxu0 %vm732_vm4, %v612_v47  ;;  %v10480_v40 = vpack.c.bf16 %v1713_v39, %v1712_v37  ;;  %v10485_v43 = vpack.c.bf16 %v1715_v42, %v1714_v41  ;;  %v1718_v47 = vld [vmem:[#allocation14 + $0x40] sm:$0xff]  ;;  %v8492_v37 = vpack.c.bf16 %v1723_v36, %v1722_v35  ;;  %v1704_v39 = vlaneseq }
 0x35a   :  { %8350 = vmatprep.subr.msk.bf16.mxu0 %vm10427_vm3, %v8348_v48 }
 0x35b   :  { %v7118_v49 = vpop.f32.mrb[4].mxu1  ;;  %v10509_v41 = vshrl.u32 %v1704_v39, 7 }
 0x35c   :  { %7100 = vmatmul.mubr.msk.f32.gmra.mrb[6].mxu0 %vm732_vm4, %v7053_v44  ;;  %v1017_v50 = vpop.f32.mrb[5].mxu1  ;;  %v1716_v44 = vld [vmem:[#allocation14 + $0x30] sm:$0xff] }
 0x35d   :  { %8353 = vmatpush3.bf16.msk.msra.mxu0 %vm10427_vm3, %v8348_v48  ;;  %7130 = vmatprep.mubr.msk.f32.mxu0 %vm732_vm4, %v1017_v50  ;;  %v10489_v46 = vpack.c.bf16 %v1717_v45, %v1716_v44  ;;  %v1719_v48 = vld [vmem:[#allocation14 + $0x48] sm:$0xff]  ;;  %v1720_v50 = vld [vmem:[#allocation14 + $0x50] sm:$0xff]  ;;  %v10512_v42 = vsub.s32 0, %v10509_v41  ;;  %v10514_v44 = vld [vmem:[#allocation13] sm:$0x7]  ;;  %v10561_v36 = vsub.s32 1, %v10509_v41 }
 0x35f   :  { %v7121_v51 = vpop.f32.mrb[6].mxu1  ;;  %v1707_v45 = vrot.slane %v10514_v44, %v10512_v42  ;;  %v1921_v39 = vrot.slane %v10514_v44, %v10561_v36 }
 0x360   :  { %7131 = vmatmul.mubr.msk.f32.vlgmr.msra.gmra.mrb[4].mxu0 %vm732_vm4, %v7118_v49  ;;  %v1027_v52 = vpop.f32.mrb[7].mxu1  ;;  %v10493_v49 = vpack.c.bf16 %v1719_v48, %v1718_v47 }
 0x361   :  { %7133 = vmatprep.mubr.msk.f32.mxu0 %vm732_vm4, %v1027_v52 }
 0x364   :  { %7134 = vmatmul.mubr.msk.f32.gmra.mrb[6].mxu0 %vm732_vm4, %v7121_v51  ;;  %v1721_v51 = vld [vmem:[#allocation14 + $0x58] sm:$0xff] }
 0x365   :  { %7144 = vmatprep.mubr.msk.f32.mxu0 %vm732_vm4, %v1160_v54  ;;  %v10497_v52 = vpack.c.bf16 %v1721_v51, %v1720_v50  ;;  %v1249_v54 = vld [vmem:[#allocation11 + $0x18] sm:$0xff] }
 0x433   :  { %v7132_v56 = vpop.f32.mrb[4].mxu0 }
 0x434   :  { %v1152_v57 = vadd.f32 %v7132_v56, %v6267_v55  ;;  %v1122_v58 = vpop.f32.mrb[5].mxu0 }
 0x435   :  { %v1151_v59 = vadd.f32 %v6267_v55, %v1122_v58  ;;  %v8406_v58 = vpack.c.bf16 %v1249_v54, %v1248_v53  ;;  %v2014_v54 = vld [vmem:[#allocation17 + $0x10] sm:$0xff] }
 0x436   :  { %v1156_v60 = vmax.f32 %v1152_v57, 0.0 }
 0x437   :  { %v1155_v61 = vmax.f32 %v1151_v59, 0.0  ;;  %v7135_v62 = vpop.f32.mrb[6].mxu0 }
 0x438   :  { %v1154_v63 = vadd.f32 %v7135_v62, %v6267_v55  ;;  %v1132_v0 = vpop.f32.mrb[7].mxu0 }
 0x439   :  { %v8354_v1 = vpack.c.bf16 %v1156_v60, %v1155_v61  ;;  %v1153_v2 = vadd.f32 %v6267_v55, %v1132_v0  ;;  %v1250_v60 = vld [vmem:[#allocation11 + $0x20] sm:$0xff]  ;;  %v1251_v61 = vld [vmem:[#allocation11 + $0x28] sm:$0xff]  ;;  %v1253_v0 = vld [vmem:[#allocation11 + $0x38] sm:$0xff] }
 0x43a   :  { %v1158_v3 = vmax.f32 %v1154_v63, 0.0  ;;  %v8410_v62 = vpack.c.bf16 %v1251_v61, %v1250_v60  ;;  %v1252_v63 = vld [vmem:[#allocation11 + $0x30] sm:$0xff] }
 0x43b   :  { %v1157_v6 = vmax.f32 %v1153_v2, 0.0  ;;  %8355 = vmatprep.subr.bf16.mxu0 %v8354_v1  ;;  %8365 = vmatprep.subr.bf16.mxu1 %v8354_v1  ;;  %v8414_v2 = vpack.c.bf16 %v1253_v0, %v1252_v63  ;;  %v2018_v60 = vld [vmem:[#allocation17 + $0x30] sm:$0xff]  ;;  %v2019_v61 = vld [vmem:[#allocation17 + $0x38] sm:$0xff]  ;;  %v2020_v63 = vld [vmem:[#allocation17 + $0x40] sm:$0xff] }
 0x43c   :  { %8357 = vmatpush3.bf16.msra.mxu0 %v8354_v1  ;;  %8367 = vmatpush3.bf16.msra.mxu1 %v8354_v1  ;;  %v2021_v0 = vld [vmem:[#allocation17 + $0x48] sm:$0xff] }
 0x43d   :  { %v8358_v7 = vpack.c.bf16 %v1158_v3, %v1157_v6  ;;  %v8418_v6 = vpack.c.bf16 %v1255_v5, %v1254_v4  ;;  %v2024_v5 = vld [vmem:[#allocation17 + $0x60] sm:$0xff] }
 0x43f   :  { %8360 = vmatprep.subr.msk.bf16.mxu0 %vm10427_vm3, %v8358_v7  ;;  %8370 = vmatprep.subr.msk.bf16.mxu1 %vm10427_vm3, %v8358_v7 }
 0x440   :  { %8363 = vmatpush3.bf16.msk.msra.mxu0 %vm10427_vm3, %v8358_v7  ;;  %8373 = vmatpush3.bf16.msk.msra.mxu1 %vm10427_vm3, %v8358_v7 }
 0x441   :  { %8431 = vmatprep.subr.bf16.mxu1 %v8354_v1  ;;  %8375 = vmatprep.subr.bf16.mxu0 %v8374_v8 }
 0x443   :  { %7156 = vmatmul.mubr.msk.f32.vlgmr.msra.gmra.mrb[8].mxu1 %vm732_vm4, %v1262_v11  ;;  %7145 = vmatmul.mubr.msk.f32.vlgmr.msra.gmra.mrb[8].mxu0 %vm732_vm4, %v1161_v12  ;;  %v1259_v11 = vld [vmem:[#allocation11 + $0x68] sm:$0xff] }
 0x444   :  { %8433 = vmatpush3.bf16.msra.mxu1 %v8354_v1  ;;  %7228 = vmatprep.mubr.msk.f32.mxu1 %vm732_vm4, %v1523_v13  ;;  %v8426_v12 = vpack.c.bf16 %v1259_v11, %v1258_v10  ;;  %v1607_v13 = vld [vmem:[#allocation11 + $0xe0] sm:$0xff] }
 0x445   :  { %8436 = vmatprep.subr.msk.bf16.mxu1 %vm10427_vm3, %v8358_v7  ;;  %8377 = vmatpush3.bf16.msra.mxu0 %v8374_v8  ;;  %v1257_v8 = vld [vmem:[#allocation11 + $0x58] sm:$0xff] }
 0x446   :  { %8379 = vmatprep.subr.bf16.mxu0 %v8378_v14 }
 0x448   :  { %8439 = vmatpush3.bf16.msk.msra.mxu1 %vm10427_vm3, %v8358_v7  ;;  %v1256_v7 = vld [vmem:[#allocation11 + $0x50] sm:$0xff] }
 0x449   :  { %8381 = vmatpush3.bf16.msra.mxu0 %v8378_v14  ;;  %8469 = vmatprep.subr.bf16.mxu1 %v10478_v38  ;;  %v8422_v9 = vpack.c.bf16 %v1257_v8, %v1256_v7  ;;  %v1608_v14 = vld [vmem:[#allocation11 + $0xe8] sm:$0xff] }
 0x44a   :  { %8383 = vmatprep.subr.bf16.mxu0 %v8382_v17  ;;  %v8440_v15 = vpack.c.bf16 %v1608_v14, %v1607_v13 }
 0x44b   :  { %7229 = vmatmul.mubr.msk.f32.vlgmr.msra.gmra.mrb[10].mxu1 %vm732_vm4, %v1524_v20  ;;  %v1612_v20 = vld [vmem:[#allocation11 + $0x108] sm:$0xff] }
 0x44c   :  { %8471 = vmatpush3.bf16.msra.mxu1 %v10478_v38 }
 0x44d   :  { %8385 = vmatpush3.bf16.msra.mxu0 %v8382_v17  ;;  %8473 = vmatprep.subr.bf16.mxu1 %v10480_v40  ;;  %v1610_v17 = vld [vmem:[#allocation11 + $0xf8] sm:$0xff] }
 0x44e   :  { %8387 = vmatprep.subr.bf16.mxu0 %v8386_v21  ;;  %v8444_v18 = vpack.c.bf16 %v1610_v17, %v1609_v16 }
 0x450   :  { %8475 = vmatpush3.bf16.msra.mxu1 %v10480_v40 }
 0x451   :  { %8389 = vmatpush3.bf16.msra.mxu0 %v8386_v21  ;;  %8477 = vmatprep.subr.bf16.mxu1 %v10485_v43  ;;  %v8448_v21 = vpack.c.bf16 %v1612_v20, %v1611_v19 }
 0x452   :  { %8391 = vmatprep.subr.bf16.mxu0 %v8390_v24 }
 0x454   :  { %8479 = vmatpush3.bf16.msra.mxu1 %v10485_v43 }
 0x455   :  { %8393 = vmatpush3.bf16.msra.mxu0 %v8390_v24  ;;  %8481 = vmatprep.subr.bf16.mxu1 %v10489_v46  ;;  %v8452_v24 = vpack.c.bf16 %v1614_v23, %v1613_v22 }
 0x456   :  { %8395 = vmatprep.subr.bf16.mxu0 %v8394_v28 }
 0x458   :  { %8483 = vmatpush3.bf16.msra.mxu1 %v10489_v46 }
 0x459   :  { %8397 = vmatpush3.bf16.msra.mxu0 %v8394_v28  ;;  %8485 = vmatprep.subr.bf16.mxu1 %v10493_v49  ;;  %v8456_v28 = vpack.c.bf16 %v1616_v27, %v1615_v26 }
 0x45a   :  { %8399 = vmatprep.subr.bf16.mxu0 %v8398_v31 }
 0x45c   :  { %8487 = vmatpush3.bf16.msra.mxu1 %v10493_v49 }
 0x45d   :  { %8401 = vmatpush3.bf16.msra.mxu0 %v8398_v31  ;;  %8489 = vmatprep.subr.bf16.mxu1 %v10497_v52  ;;  %v8460_v31 = vpack.c.bf16 %v1618_v30, %v1617_v29 }
 0x45e   :  { %8403 = vmatprep.subr.bf16.mxu0 %v8402_v34 }
 0x460   :  { %8491 = vmatpush3.bf16.msra.mxu1 %v10497_v52 }
 0x461   :  { %8493 = vmatprep.subr.bf16.mxu1 %v8492_v37 }
 0x464   :  { %8495 = vmatpush3.bf16.msra.mxu1 %v8492_v37 }
 0x465   :  { %8497 = vmatprep.subr.bf16.mxu1 %v10478_v38 }
 0x516   :  { %v7157_v55 = vpop.f32.mrb[8].mxu1  ;;  %v7146_v56 = vpop.f32.mrb[8].mxu0 }
 0x517   :  { %v1335_v57 = vpop.f32.mrb[9].mxu1  ;;  %v1237_v59 = vpop.f32.mrb[9].mxu0 }
 0x518   :  { %7186 = vmatprep.mubr.msk.f32.mxu0 %vm1359_vm5, %v1335_v57  ;;  %v2016_v57 = vld [vmem:[#allocation17 + $0x20] sm:$0xff] }
 0x519   :  { %7187 = vmatmul.mubr.msk.f32.vlgmr.msra.gmra.mrb[10].mxu0 %vm1359_vm5, %v7157_v55  ;;  %v2015_v55 = vld [vmem:[#allocation17 + $0x18] sm:$0xff] }
 0x51a   :  { %8405 = vmatpush3.bf16.msra.mxu0 %v8402_v34  ;;  %7217 = vmatprep.mubr.msk.f32.mxu0 %vm1359_vm5, %v1237_v59  ;;  %v8464_v34 = vpack.c.bf16 %v1620_v33, %v1619_v32 }
 0x51b   :  { %8407 = vmatprep.subr.bf16.mxu0 %v8406_v58 }
 0x51e   :  { %8409 = vmatpush3.bf16.msra.mxu0 %v8406_v58  ;;  %v7230_v1 = vpop.f32.mrb[10].mxu1  ;;  %v2017_v58 = vld [vmem:[#allocation17 + $0x28] sm:$0xff] }
 0x51f   :  { %8411 = vmatprep.subr.bf16.mxu0 %v8410_v62  ;;  %v1597_v3 = vpop.f32.mrb[11].mxu1  ;;  %v8560_v59 = vpack.c.bf16 %v2017_v58, %v2016_v57  ;;  %v2103_v58 = vld [vmem:[#allocation17 + $0x78] sm:$0xff] }
 0x520   :  { %v4813_v57 = vld [vmem:[#allocation40 + $0x48] sm:$0xff] }
 0x522   :  { %8413 = vmatpush3.bf16.msra.mxu0 %v8410_v62  ;;  %v8563_v62 = vpack.c.bf16 %v2019_v61, %v2018_v60  ;;  %v2104_v61 = vld [vmem:[#allocation17 + $0x80] sm:$0xff] }
 0x523   :  { %8415 = vmatprep.subr.bf16.mxu0 %v8414_v2 }
 0x526   :  { %8417 = vmatpush3.bf16.msra.mxu0 %v8414_v2  ;;  %v2022_v2 = vld [vmem:[#allocation17 + $0x50] sm:$0xff] }
 0x527   :  { %8419 = vmatprep.subr.bf16.mxu0 %v8418_v6 }
 0x52a   :  { %8421 = vmatpush3.bf16.msra.mxu0 %v8418_v6  ;;  %v2025_v6 = vld [vmem:[#allocation17 + $0x68] sm:$0xff] }
 0x52b   :  { %8423 = vmatprep.subr.bf16.mxu0 %v8422_v9  ;;  %v8572_v7 = vpack.c.bf16 %v2025_v6, %v2024_v5  ;;  %v2110_v6 = vld [vmem:[#allocation17 + $0xb0] sm:$0xff] }
 0x52e   :  { %8425 = vmatpush3.bf16.msra.mxu0 %v8422_v9 }
 0x52f   :  { %8427 = vmatprep.subr.bf16.mxu0 %v8426_v12 }
 0x532   :  { %8429 = vmatpush3.bf16.msra.mxu0 %v8426_v12 }
 0x533   :  { %8441 = vmatprep.subr.bf16.mxu0 %v8440_v15 }
 0x535   :  { %7218 = vmatmul.mubr.msk.f32.vlgmr.msra.gmra.mrb[10].mxu0 %vm1359_vm5, %v7146_v56  ;;  %v8557_v56 = vpack.c.bf16 %v2015_v55, %v2014_v54 }
 0x536   :  { %8443 = vmatpush3.bf16.msra.mxu0 %v8440_v15  ;;  %7259 = vmatprep.mubr.msk.f32.mxu0 %vm1359_vm5, %v1597_v3  ;;  %v2023_v3 = vld [vmem:[#allocation17 + $0x58] sm:$0xff] }
 0x537   :  { %8445 = vmatprep.subr.bf16.mxu0 %v8444_v18  ;;  %v8569_v4 = vpack.c.bf16 %v2023_v3, %v2022_v2  ;;  %v2108_v3 = vld [vmem:[#allocation17 + $0xa0] sm:$0xff] }
 0x53a   :  { %8447 = vmatpush3.bf16.msra.mxu0 %v8444_v18 }
 0x53b   :  { %8449 = vmatprep.subr.bf16.mxu0 %v8448_v21 }
 0x53e   :  { %8451 = vmatpush3.bf16.msra.mxu0 %v8448_v21 }
 0x53f   :  { %8453 = vmatprep.subr.bf16.mxu0 %v8452_v24 }
 0x542   :  { %8455 = vmatpush3.bf16.msra.mxu0 %v8452_v24 }
 0x543   :  { %8457 = vmatprep.subr.bf16.mxu0 %v8456_v28 }
 0x546   :  { %8459 = vmatpush3.bf16.msra.mxu0 %v8456_v28 }
 0x547   :  { %8461 = vmatprep.subr.bf16.mxu0 %v8460_v31 }
 0x54a   :  { %8463 = vmatpush3.bf16.msra.mxu0 %v8460_v31 }
 0x54b   :  { %8465 = vmatprep.subr.bf16.mxu0 %v8464_v34 }
 0x54e   :  { %8467 = vmatpush3.bf16.msra.mxu0 %v8464_v34 }
 0x551   :  { %7260 = vmatmul.mubr.msk.f32.vlgmr.msra.gmra.mrb[10].mxu0 %vm1359_vm5, %v7230_v1  ;;  %v8566_v1 = vpack.c.bf16 %v2021_v0, %v2020_v63  ;;  %v2106_v0 = vld [vmem:[#allocation17 + $0x90] sm:$0xff] }
 0x624   :  { %v7261_v47 = vpop.f32.mrb[10].mxu0 }
 0x625   :  { %v1693_v48 = vpop.f32.mrb[11].mxu0  ;;  %v10520_v51 = vadd.f32 %v7261_v47, %v1707_v45 }
 0x626   :  { %v10518_v50 = vadd.f32 %v1707_v45, %v1693_v48 }
 0x628   :  { %v1817_v53 = vmul.f32 %v10518_v50, %v10518_v50  ;;  %7290 = vmatprep.mubr.msk.f32.mxu1 %vm1359_vm5, %v10518_v50 }
 0x629   :  { %7291 = vmatmul.mubr.msk.f32.vlgmr.msra.gmra.mrb[12].mxu1 %vm1359_vm5, %v10520_v51 }
 0x62a   :  { %8499 = vmatpush3.bf16.msra.mxu1 %v10478_v38  ;;  %7321 = vmatprep.mubr.msk.f32.mxu1 %vm1359_vm5, %v1817_v53  ;;  %v1818_v38 = vmul.f32 %v10520_v51, %v10520_v51 }
 0x62b   :  { %8501 = vmatprep.subr.bf16.mxu1 %v10480_v40 }
 0x62e   :  { %8503 = vmatpush3.bf16.msra.mxu1 %v10480_v40  ;;  %v10012_v40 = vmov 0.0|0.0  }
 0x62f   :  { %8505 = vmatprep.subr.bf16.mxu1 %v10485_v43  ;;  %8553 = vmatprep.subr.bf16.mxu0 %v10012_v40 }
 0x632   :  { %8507 = vmatpush3.bf16.msra.mxu1 %v10485_v43  ;;  %v10014_v43 = vmov 0.0  }
 0x633   :  { %8509 = vmatprep.subr.bf16.mxu1 %v10489_v46  ;;  %7397 = vmatprep.mubr.msk.f32.mxu0 %vm10013_vm6, %v10014_v43 }
 0x636   :  { %8511 = vmatpush3.bf16.msra.mxu1 %v10489_v46  ;;  %v2012_v46 = vld [vmem:[#allocation17] sm:$0xff] }
 0x637   :  { %8513 = vmatprep.subr.bf16.mxu1 %v10493_v49 }
 0x63a   :  { %8515 = vmatpush3.bf16.msra.mxu1 %v10493_v49  ;;  %v2013_v49 = vld [vmem:[#allocation17 + $0x8] sm:$0xff] }
 0x63b   :  { %8517 = vmatprep.subr.bf16.mxu1 %v10497_v52 }
 0x63e   :  { %8519 = vmatpush3.bf16.msra.mxu1 %v10497_v52  ;;  %v8554_v52 = vpack.c.bf16 %v2013_v49, %v2012_v46 }
 0x63f   :  { %8521 = vmatprep.subr.bf16.mxu1 %v8492_v37 }
 0x640   :  { %8555 = vmatpush3.bf16.msra.mxu0 %v8554_v52 }
 0x641   :  { %8556 = vmatprep.subr.bf16.mxu0 %v10012_v40 }
 0x642   :  { %8523 = vmatpush3.bf16.msra.mxu1 %v8492_v37  ;;  %v10564_v37 = vsub.s32 2, %v10509_v41 }
 0x643   :  { %8524 = vmatprep.subr.bf16.mxu1 %v10012_v40 }
 0x644   :  { %8558 = vmatpush3.bf16.msra.mxu0 %v8557_v56  ;;  %v1927_v53 = vrot.slane %v10514_v44, %v10564_v37  ;;  %v1933_v44 = vld [vmem:[#allocation16] sm:$0x3f] }
 0x645   :  { %7322 = vmatmul.mubr.msk.f32.vlgmr.msra.gmra.mrb[14].mxu1 %vm1359_vm5, %v1818_v38  ;;  %8559 = vmatprep.subr.bf16.mxu0 %v10012_v40 }
 0x646   :  { %7328 = vmatprep.mubr.msk.f32.mxu1 %vm10013_vm6, %v10014_v43 }
 0x648   :  { %8561 = vmatpush3.bf16.msra.mxu0 %v8560_v59  ;;  %v2027_v59 = vld [vmem:[#allocation16 + $0x8] sm:$0x3f] }
 0x649   :  { %8562 = vmatprep.subr.bf16.mxu0 %v10012_v40 }
 0x64c   :  { %8564 = vmatpush3.bf16.msra.mxu0 %v8563_v62  ;;  %v2105_v62 = vld [vmem:[#allocation17 + $0x88] sm:$0xff] }
 0x64d   :  { %8565 = vmatprep.subr.bf16.mxu0 %v10012_v40  ;;  %v8536_v63 = vpack.c.bf16 %v2105_v62, %v2104_v61  ;;  %v2516_v61 = vld [vmem:[#allocation22 + $0x20] sm:$0xff]  ;;  %v2517_v62 = vld [vmem:[#allocation22 + $0x28] sm:$0xff] }
 0x650   :  { %8567 = vmatpush3.bf16.msra.mxu0 %v8566_v1  ;;  %v2107_v1 = vld [vmem:[#allocation17 + $0x98] sm:$0xff] }
 0x651   :  { %8568 = vmatprep.subr.bf16.mxu0 %v10012_v40  ;;  %v8539_v2 = vpack.c.bf16 %v2107_v1, %v2106_v0  ;;  %v2518_v0 = vld [vmem:[#allocation22 + $0x30] sm:$0xff]  ;;  %v2519_v1 = vld [vmem:[#allocation22 + $0x38] sm:$0xff] }
 0x654   :  { %8570 = vmatpush3.bf16.msra.mxu0 %v8569_v4  ;;  %v2109_v4 = vld [vmem:[#allocation17 + $0xa8] sm:$0xff] }
 0x655   :  { %8571 = vmatprep.subr.bf16.mxu0 %v10012_v40  ;;  %v8542_v5 = vpack.c.bf16 %v2109_v4, %v2108_v3  ;;  %v2520_v3 = vld [vmem:[#allocation22 + $0x40] sm:$0xff]  ;;  %v2521_v4 = vld [vmem:[#allocation22 + $0x48] sm:$0xff] }
 0x658   :  { %8573 = vmatpush3.bf16.msra.mxu0 %v8572_v7  ;;  %v2111_v7 = vld [vmem:[#allocation17 + $0xb8] sm:$0xff] }
 0x659   :  { %7438 = vmatprep.subr.mxu0 %v10014_v43 }
 0x6fc   :  { %v7292_v8 = vpop.f32.mrb[12].mxu1 }
 0x6fd   :  { %v1807_v9 = vsel %vm1806_vm7, %v7292_v8, 0.0  ;;  %v1796_v10 = vpop.f32.mrb[13].mxu1  ;;  %v8545_v8 = vpack.c.bf16 %v2111_v7, %v2110_v6  ;;  %v2522_v6 = vld [vmem:[#allocation22 + $0x50] sm:$0xff]  ;;  %v2523_v7 = vld [vmem:[#allocation22 + $0x58] sm:$0xff] }
 0x6fe   :  { %v1805_v11 = vsel %vm1359_vm5, %v1796_v10, 0.0  ;;  %v2113_v10 = vld [vmem:[#allocation17 + $0xc8] sm:$0xff] }
 0x6ff   :  { %v1808_v12 = vadd.f32 %v1807_v9, %v1805_v11  ;;  %v2112_v9 = vld [vmem:[#allocation17 + $0xc0] sm:$0xff] }
 0x700   :  { %v8548_v11 = vpack.c.bf16 %v2113_v10, %v2112_v9  ;;  %v6296_v9 = vld [vmem:[#allocation19] ss:$0 sm:$0xff] }
 0x701   :  { %v1809_v13 = vrot.slane %v1808_v12, 4 }
 0x703   :  { %v1810_v14 = vadd.f32 %v1809_v13, %v1808_v12  ;;  %v2114_v12 = vld [vmem:[#allocation17 + $0xd0] sm:$0xff]  ;;  %v2115_v13 = vld [vmem:[#allocation17 + $0xd8] sm:$0xff] }
 0x705   :  { %v1811_v15 = vrot.slane %v1810_v14, 2 }
 0x707   :  { %v1812_v17 = vadd.f32 %v1811_v15, %v1810_v14  ;;  %v8551_v14 = vpack.c.bf16 %v2115_v13, %v2114_v12 }
 0x709   :  { %v1813_v22 = vrot.slane %v1812_v17, 1 }
 0x70b   :  { %v1814_v26 = vadd.f32 %v1813_v22, %v1812_v17  ;;  %v2338_v17 = vld [vmem:[#allocation17 + $0xe0] sm:$0xff] }
 0x70d   :  { %v1816_v29 = vmul.f32 0.071428575, %v1814_v26 }
 0x70f   :  { %v1910_v33 = vmul.f32 %v1816_v29, %v1816_v29  ;;  %v1912_v45 = vsub.f32 %v10518_v50, %v1816_v29  ;;  %v1913_v47 = vsub.f32 %v10520_v51, %v1816_v29  ;;  %v2102_v51 = vld [vmem:[#allocation17 + $0x70] sm:$0xff] }
 0x710   :  { %v8533_v60 = vpack.c.bf16 %v2103_v58, %v2102_v51  ;;  %v2514_v58 = vld [vmem:[#allocation22 + $0x10] sm:$0xff] }
 0x718   :  { %v7323_v16 = vpop.f32.mrb[14].mxu1 }
 0x719   :  { %v1901_v18 = vsel %vm1806_vm7, %v7323_v16, 0.0  ;;  %v1891_v19 = vpop.f32.mrb[15].mxu1 }
 0x71a   :  { %v1900_v20 = vsel %vm1359_vm5, %v1891_v19, 0.0 }
 0x71b   :  { %v1902_v21 = vadd.f32 %v1901_v18, %v1900_v20  ;;  %v2339_v18 = vld [vmem:[#allocation17 + $0xe8] sm:$0xff] }
 0x71c   :  { %v8579_v22 = vpack.c.bf16 %v2339_v18, %v2338_v17  ;;  %v2601_v17 = vld [vmem:[#allocation22 + $0x68] sm:$0xff]  ;;  %v2525_v18 = vld [vmem:[#allocation20 + $0x2] sm:$0x3] }
 0x71d   :  { %v1903_v23 = vrot.slane %v1902_v21, 4 }
 0x71f   :  { %v1904_v24 = vadd.f32 %v1903_v23, %v1902_v21  ;;  %v2263_v21 = vld [vmem:[#allocation16 + $0x10] sm:$0x3f]  ;;  %v2340_v23 = vld [vmem:[#allocation17 + $0xf0] sm:$0xff] }
 0x721   :  { %v1905_v27 = vrot.slane %v1904_v24, 2 }
 0x723   :  { %v1906_v28 = vadd.f32 %v1905_v27, %v1904_v24  ;;  %v2341_v24 = vld [vmem:[#allocation17 + $0xf8] sm:$0xff]  ;;  %v2342_v27 = vld [vmem:[#allocation17 + $0x100] sm:$0xff] }
 0x724   :  { %v8582_v26 = vpack.c.bf16 %v2341_v24, %v2340_v23  ;;  %v2604_v23 = vld [vmem:[#allocation22 + $0x80] sm:$0xff]  ;;  %v2605_v24 = vld [vmem:[#allocation22 + $0x88] sm:$0xff] }
 0x725   :  { %v1907_v30 = vrot.slane %v1906_v28, 1 }
 0x727   :  { %v1908_v31 = vadd.f32 %v1907_v30, %v1906_v28  ;;  %v2343_v28 = vld [vmem:[#allocation17 + $0x108] sm:$0xff]  ;;  %v2344_v30 = vld [vmem:[#allocation17 + $0x110] sm:$0xff] }
 0x728   :  { %v8585_v29 = vpack.c.bf16 %v2343_v28, %v2342_v27  ;;  %v2606_v27 = vld [vmem:[#allocation22 + $0x90] sm:$0xff]  ;;  %v2607_v28 = vld [vmem:[#allocation22 + $0x98] sm:$0xff] }
 0x729   :  { %v1909_v32 = vmul.f32 0.071428575, %v1908_v31  ;;  %v2345_v31 = vld [vmem:[#allocation17 + $0x118] sm:$0xff] }
 0x72b   :  { %v1911_v34 = vsub.f32 %v1909_v32, %v1910_v33  ;;  %v8588_v32 = vpack.c.bf16 %v2345_v31, %v2344_v30  ;;  %v2346_v33 = vld [vmem:[#allocation17 + $0x120] sm:$0xff]  ;;  %v2608_v30 = vld [vmem:[#allocation22 + $0xa0] sm:$0xff] }
 0x72c   :  { %v2609_v31 = vld [vmem:[#allocation22 + $0xa8] sm:$0xff] }
 0x72d   :  { %v1914_v35 = vadd.f32 1e-05, %v1911_v34  ;;  %v2347_v34 = vld [vmem:[#allocation17 + $0x128] sm:$0xff] }
 0x72f   :  { %9220 = vrsqrt.f32 %v1914_v35  ;;  %v8591_v35 = vpack.c.bf16 %v2347_v34, %v2346_v33  ;;  %v2610_v33 = vld [vmem:[#allocation22 + $0xb0] sm:$0xff]  ;;  %v2611_v34 = vld [vmem:[#allocation22 + $0xb8] sm:$0xff] }
 0x739   :  { %v9221_v48 = vpop.eup %9220 }
 0x73a   :  { %v1916_v38 = vmul.f32 %v9221_v48, %v1912_v45  ;;  %v1917_v46 = vmul.f32 %v9221_v48, %v1913_v47  ;;  %v2349_v45 = vld [vmem:[#allocation17 + $0x138] sm:$0xff]  ;;  %v2350_v48 = vld [vmem:[#allocation17 + $0x140] sm:$0xff] }
 0x73c   :  { %v1922_v49 = vmul.f32 %v1921_v39, %v1916_v38  ;;  %v1923_v52 = vmul.f32 %v1921_v39, %v1917_v46  ;;  %v2348_v39 = vld [vmem:[#allocation17 + $0x130] sm:$0xff] }
 0x73d   :  { %v8594_v47 = vpack.c.bf16 %v2349_v45, %v2348_v39 }
 0x73e   :  { %v1928_v54 = vadd.f32 %v1927_v53, %v1922_v49  ;;  %v1929_v55 = vadd.f32 %v1927_v53, %v1923_v52  ;;  %v2351_v53 = vld [vmem:[#allocation17 + $0x148] sm:$0xff] }
 0x73f   :  { %v8597_v38 = vpack.c.bf16 %v2351_v53, %v2350_v48  ;;  %v2836_v48 = vld [vmem:[#allocation22 + $0xc8] sm:$0xff] }
 0x740   :  { %v1930_v41 = vmax.f32 %v1928_v54, 0.0  ;;  %v1931_v56 = vmax.f32 %v1929_v55, 0.0 }
 0x742   :  { %v8525_v50 = vpack.c.bf16 %v1931_v56, %v1930_v41 }
 0x744   :  { %8527 = vmatpush3.bf16.msk.msra.mxu1 %vm10574_vm9, %v8525_v50 }
 0x745   :  { %8528 = vmatprep.subr.bf16.mxu1 %v10012_v40 }
 0x747   :  { %7329 = vmatmul.mubr.msk.f32.vlgmr.msra.gmra.mrb[16].mxu1 %vm1934_vm10, %v1933_v44  ;;  %v2513_v44 = vld [vmem:[#allocation22 + $0x8] sm:$0xff] }
 0x748   :  { %8531 = vmatpush3.bf16.msk.msra.mxu1 %vm10574_vm9, %v8525_v50  ;;  %7335 = vmatprep.mubr.msk.f32.mxu1 %vm10013_vm6, %v10014_v43 }
 0x749   :  { %8532 = vmatprep.subr.bf16.mxu1 %v10012_v40 }
 0x74b   :  { %7336 = vmatmul.mubr.msk.f32.vlgmr.msra.gmra.mrb[18].mxu1 %vm1934_vm10, %v2027_v59  ;;  %v2515_v59 = vld [vmem:[#allocation22 + $0x18] sm:$0xff] }
 0x74c   :  { %8534 = vmatpush3.bf16.msra.mxu1 %v8533_v60  ;;  %7366 = vmatprep.mubr.msk.f32.mxu1 %vm10013_vm6, %v10014_v43  ;;  %v8621_v60 = vpack.c.bf16 %v2515_v59, %v2514_v58  ;;  %v2843_v59 = vld [vmem:[#allocation22 + $0x100] sm:$0xff] }
 0x74d   :  { %8535 = vmatprep.subr.bf16.mxu1 %v10012_v40 }
 0x750   :  { %8537 = vmatpush3.bf16.msra.mxu1 %v8536_v63  ;;  %v8624_v63 = vpack.c.bf16 %v2517_v62, %v2516_v61  ;;  %v2845_v62 = vld [vmem:[#allocation22 + $0x110] sm:$0xff] }
 0x751   :  { %8538 = vmatprep.subr.bf16.mxu1 %v10012_v40 }
 0x754   :  { %8540 = vmatpush3.bf16.msra.mxu1 %v8539_v2  ;;  %v8627_v2 = vpack.c.bf16 %v2519_v1, %v2518_v0  ;;  %v2930_v1 = vld [vmem:[#allocation25] sm:$0xff] }
 0x755   :  { %8541 = vmatprep.subr.bf16.mxu1 %v10012_v40 }
 0x758   :  { %8543 = vmatpush3.bf16.msra.mxu1 %v8542_v5  ;;  %v8630_v5 = vpack.c.bf16 %v2521_v4, %v2520_v3  ;;  %v2932_v3 = vld [vmem:[#allocation25 + $0x10] sm:$0xff] }
 0x759   :  { %8544 = vmatprep.subr.bf16.mxu1 %v10012_v40 }
 0x75c   :  { %8546 = vmatpush3.bf16.msra.mxu1 %v8545_v8  ;;  %v8633_v8 = vpack.c.bf16 %v2523_v7, %v2522_v6  ;;  %v2934_v7 = vld [vmem:[#allocation25 + $0x20] sm:$0xff] }
 0x75d   :  { %8547 = vmatprep.subr.bf16.mxu1 %v10012_v40 }
 0x760   :  { %8549 = vmatpush3.bf16.msra.mxu1 %v8548_v11 }
 0x761   :  { %8550 = vmatprep.subr.bf16.mxu1 %v10012_v40 }
 0x764   :  { %8552 = vmatpush3.bf16.msra.mxu1 %v8551_v14 }
 0x765   :  { %8574 = vmatprep.subr.bf16.mxu1 %v10012_v40 }
 0x81a   :  { %v2008_v15 = vpop.f32.mrb[16].mxu1 }
 0x81b   :  { %v7330_v16 = vpop.f32.mrb[17].mxu1  ;;  %7398 = vmatmul.mubr.msk.f32.vlgmr.msra.gmra.mrb[12].mxu0 %vm1359_vm5, %v2008_v15  ;;  %v2434_v15 = vld [vmem:[#allocation20] sm:$0x3] }
 0x81c   :  { %7440 = vmatprep.mubr.msk.f32.mxu0 %vm10013_vm6, %v10014_v43  ;;  %v2600_v16 = vld [vmem:[#allocation22 + $0x60] sm:$0xff] }
 0x81e   :  { %v2097_v19 = vpop.f32.mrb[18].mxu1 }
 0x81f   :  { %v7337_v20 = vpop.f32.mrb[19].mxu1  ;;  %7367 = vmatmul.mubr.msk.f32.vlgmr.msra.gmra.mrb[20].mxu1 %vm1359_vm5, %v2097_v19  ;;  %v8600_v19 = vpack.c.bf16 %v2601_v17, %v2600_v16  ;;  %v2940_v16 = vld [vmem:[#allocation25 + $0x50] sm:$0xff]  ;;  %v2941_v17 = vld [vmem:[#allocation25 + $0x58] sm:$0xff] }
 0x820   :  { %8577 = vmatpush3.bf16.msk.msra.mxu1 %vm10574_vm9, %v8525_v50  ;;  %7404 = vmatprep.mubr.msk.f32.mxu1 %vm10013_vm6, %v10014_v43  ;;  %v2512_v50 = vld [vmem:[#allocation22] sm:$0xff]  ;;  %v2602_v20 = vld [vmem:[#allocation22 + $0x70] sm:$0xff] }
 0x821   :  { %8578 = vmatprep.subr.bf16.mxu1 %v10012_v40  ;;  %v8618_v51 = vpack.c.bf16 %v2513_v44, %v2512_v50  ;;  %v2841_v44 = vld [vmem:[#allocation22 + $0xf0] sm:$0xff] }
 0x823   :  { %7405 = vmatmul.mubr.msk.f32.vlgmr.msra.gmra.mrb[22].mxu1 %vm1934_vm10, %v2263_v21  ;;  %v2603_v21 = vld [vmem:[#allocation22 + $0x78] sm:$0xff] }
 0x824   :  { %8580 = vmatpush3.bf16.msra.mxu1 %v8579_v22  ;;  %7435 = vmatprep.mubr.msk.f32.mxu1 %vm10013_vm6, %v10014_v43  ;;  %v8603_v22 = vpack.c.bf16 %v2603_v21, %v2602_v20 }
 0x825   :  { %8581 = vmatprep.subr.bf16.mxu1 %v10012_v40 }
 0x828   :  { %8583 = vmatpush3.bf16.msra.mxu1 %v8582_v26  ;;  %v8606_v26 = vpack.c.bf16 %v2605_v24, %v2604_v23 }
 0x829   :  { %8584 = vmatprep.subr.bf16.mxu1 %v10012_v40 }
 0x82c   :  { %8586 = vmatpush3.bf16.msra.mxu1 %v8585_v29  ;;  %v8609_v29 = vpack.c.bf16 %v2607_v28, %v2606_v27  ;;  %v2942_v27 = vld [vmem:[#allocation25 + $0x60] sm:$0xff]  ;;  %v2943_v28 = vld [vmem:[#allocation25 + $0x68] sm:$0xff] }
 0x82d   :  { %8587 = vmatprep.subr.bf16.mxu1 %v10012_v40 }
 0x830   :  { %8589 = vmatpush3.bf16.msra.mxu1 %v8588_v32  ;;  %v8612_v32 = vpack.c.bf16 %v2609_v31, %v2608_v30  ;;  %v2944_v30 = vld [vmem:[#allocation25 + $0x70] sm:$0xff]  ;;  %v2945_v31 = vld [vmem:[#allocation25 + $0x78] sm:$0xff] }
 0x831   :  { %8590 = vmatprep.subr.bf16.mxu1 %v10012_v40 }
 0x834   :  { %8592 = vmatpush3.bf16.msra.mxu1 %v8591_v35  ;;  %v8615_v35 = vpack.c.bf16 %v2611_v34, %v2610_v33  ;;  %v6306_v34 = vld [vmem:[#allocation23] ss:$0 sm:$0xff] }
 0x835   :  { %8593 = vmatprep.subr.bf16.mxu1 %v10012_v40 }
 0x838   :  { %8595 = vmatpush3.bf16.msra.mxu1 %v8594_v47  ;;  %v2835_v47 = vld [vmem:[#allocation22 + $0xc0] sm:$0xff] }
 0x839   :  { %8596 = vmatprep.subr.bf16.mxu1 %v10012_v40 }
 0x83c   :  { %8598 = vmatpush3.bf16.msra.mxu1 %v8597_v38 }
 0x83d   :  { %8617 = vmatprep.subr.bf16.mxu1 %v10012_v40 }
 0x8ee   :  { %v2258_v46 = vpop.f32.mrb[12].mxu0 }
 0x8ef   :  { %v7399_v49 = vpop.f32.mrb[13].mxu0 }
 0x8f0   :  { %v8636_v49 = vpack.c.bf16 %v2836_v48, %v2835_v47  ;;  %v3023_v48 = vld [vmem:[#allocation28] sm:$0xff] }
 0x8f2   :  { %v2185_v52 = vpop.f32.mrb[20].mxu1 }
 0x8f3   :  { %v2259_v54 = vadd.f32 %v2258_v46, %v2185_v52  ;;  %v7368_v55 = vpop.f32.mrb[21].mxu1  ;;  %v2760_v46 = vld [vmem:[#allocation20 + $0x4] sm:$0x3]  ;;  %v2837_v52 = vld [vmem:[#allocation22 + $0xd0] sm:$0xff] }
 0x8f6   :  { %v2333_v41 = vpop.f32.mrb[22].mxu1 }
 0x8f7   :  { %v7406_v56 = vpop.f32.mrb[23].mxu1  ;;  %7436 = vmatmul.mubr.msk.f32.vlgmr.msra.gmra.mrb[24].mxu1 %vm1359_vm5, %v2333_v41  ;;  %v2839_v41 = vld [vmem:[#allocation22 + $0xe0] sm:$0xff] }
 0x8f8   :  { %7499 = vmatprep.mubr.msk.f32.mxu1 %vm10013_vm6, %v10014_v43  ;;  %8619 = vmatpush3.bf16.msra.mxu1 %v8618_v51  ;;  %v2840_v56 = vld [vmem:[#allocation22 + $0xe8] sm:$0xff]  ;;  %v2842_v51 = vld [vmem:[#allocation22 + $0xf8] sm:$0xff] }
 0x8f9   :  { %8620 = vmatprep.subr.bf16.mxu1 %v10012_v40  ;;  %v8642_v50 = vpack.c.bf16 %v2840_v56, %v2839_v41  ;;  %v8645_v58 = vpack.c.bf16 %v2842_v51, %v2841_v44  ;;  %v3204_v56 = vld [vmem:[#allocation31 + $0xa0] sm:$0xff]  ;;  %v3206_v51 = vld [vmem:[#allocation31 + $0xb0] sm:$0xff] }
 0x8fc   :  { %8622 = vmatpush3.bf16.msra.mxu1 %v8621_v60  ;;  %v2844_v60 = vld [vmem:[#allocation22 + $0x108] sm:$0xff] }
 0x8fd   :  { %8623 = vmatprep.subr.bf16.mxu1 %v10012_v40  ;;  %v8648_v61 = vpack.c.bf16 %v2844_v60, %v2843_v59  ;;  %v3208_v60 = vld [vmem:[#allocation31 + $0xc0] sm:$0xff] }
 0x900   :  { %8625 = vmatpush3.bf16.msra.mxu1 %v8624_v63  ;;  %v2846_v63 = vld [vmem:[#allocation22 + $0x118] sm:$0xff] }
 0x901   :  { %8626 = vmatprep.subr.bf16.mxu1 %v10012_v40  ;;  %v8651_v0 = vpack.c.bf16 %v2846_v63, %v2845_v62  ;;  %v3210_v63 = vld [vmem:[#allocation31 + $0xd0] sm:$0xff] }
 0x904   :  { %8628 = vmatpush3.bf16.msra.mxu1 %v8627_v2  ;;  %v2931_v2 = vld [vmem:[#allocation25 + $0x8] sm:$0xff] }
 0x905   :  { %8629 = vmatprep.subr.bf16.mxu1 %v10012_v40  ;;  %v8654_v4 = vpack.c.bf16 %v2931_v2, %v2930_v1  ;;  %v3212_v2 = vld [vmem:[#allocation31 + $0xe0] sm:$0xff] }
 0x908   :  { %8631 = vmatpush3.bf16.msra.mxu1 %v8630_v5  ;;  %v2933_v5 = vld [vmem:[#allocation25 + $0x18] sm:$0xff] }
 0x909   :  { %8632 = vmatprep.subr.bf16.mxu1 %v10012_v40  ;;  %v8657_v6 = vpack.c.bf16 %v2933_v5, %v2932_v3  ;;  %v3213_v3 = vld [vmem:[#allocation31 + $0xe8] sm:$0xff]  ;;  %v3108_v5 = vld [vmem:[#allocation31] sm:$0xff] }
 0x90c   :  { %8634 = vmatpush3.bf16.msra.mxu1 %v8633_v8  ;;  %v2935_v8 = vld [vmem:[#allocation25 + $0x28] sm:$0xff] }
 0x90d   :  { %8653 = vmatprep.subr.bf16.mxu1 %v10012_v40 }
 0x9ca   :  { %v2421_v10 = vpop.f32.mrb[24].mxu1 }
 0x9cb   :  { %v2425_v11 = vadd.f32 %v2421_v10, %v2259_v54  ;;  %v7437_v12 = vpop.f32.mrb[25].mxu1  ;;  %v2838_v54 = vld [vmem:[#allocation22 + $0xd8] sm:$0xff] }
 0x9cc   :  { %v8639_v55 = vpack.c.bf16 %v2838_v54, %v2837_v52  ;;  %v2936_v10 = vld [vmem:[#allocation25 + $0x30] sm:$0xff]  ;;  %v3202_v54 = vld [vmem:[#allocation31 + $0x90] sm:$0xff] }
 0x9cd   :  { %v2432_v13 = vadd.f32 %v6296_v9, %v2425_v11  ;;  %v8660_v9 = vpack.c.bf16 %v2935_v8, %v2934_v7  ;;  %v2937_v11 = vld [vmem:[#allocation25 + $0x38] sm:$0xff]  ;;  %v6307_v7 = vld [vmem:[#allocation26] ss:$0 sm:$0xff] }
 0x9ce   :  { %v8663_v12 = vpack.c.bf16 %v2937_v11, %v2936_v10 }
 0x9cf   :  { %v2433_v14 = vmax.f32 %v2432_v13, 0.0  ;;  %v2938_v13 = vld [vmem:[#allocation25 + $0x40] sm:$0xff] }
 0x9d1   :  { %7439 = vmatpush3.msk.msra.mxu0 %vm1938_vm8, %v2433_v14 }
 0x9d2   :  { %7441 = vmatmul.mubr.msk.f32.vlgmr.msra.gmra.mrb[14].mxu0 %vm2435_vm11, %v2434_v15  ;;  %7443 = vmatprep.subr.mxu0 %v10014_v43 }
 0x9d3   :  { %7444 = vmatpush3.msk.msra.mxu0 %vm1938_vm8, %v2433_v14  ;;  %7445 = vmatprep.mubr.msk.f32.mxu0 %vm10013_vm6, %v10014_v43 }
 0x9d4   :  { %8599 = vmatprep.subr.bf16.mxu0 %v10012_v40 }
 0x9d6   :  { %7446 = vmatmul.mubr.msk.f32.vlgmr.msra.gmra.mrb[16].mxu0 %vm2435_vm11, %v2525_v18  ;;  %v8669_v18 = vpack.c.bf16 %v2941_v17, %v2940_v16  ;;  %v3113_v16 = vld [vmem:[#allocation31 + $0x28] sm:$0xff] }
 0x9d7   :  { %8601 = vmatpush3.bf16.msra.mxu0 %v8600_v19  ;;  %7472 = vmatprep.mubr.msk.f32.mxu0 %vm10013_vm6, %v10014_v43 }
 0x9d8   :  { %8602 = vmatprep.subr.bf16.mxu0 %v10012_v40 }
 0x9db   :  { %8604 = vmatpush3.bf16.msra.mxu0 %v8603_v22 }
 0x9dc   :  { %8605 = vmatprep.subr.bf16.mxu0 %v10012_v40 }
 0x9df   :  { %8607 = vmatpush3.bf16.msra.mxu0 %v8606_v26 }
 0x9e0   :  { %8608 = vmatprep.subr.bf16.mxu0 %v10012_v40 }
 0x9e3   :  { %8610 = vmatpush3.bf16.msra.mxu0 %v8609_v29  ;;  %v8672_v29 = vpack.c.bf16 %v2943_v28, %v2942_v27  ;;  %v3120_v28 = vld [vmem:[#allocation31 + $0x60] sm:$0xff] }
 0x9e4   :  { %8611 = vmatprep.subr.bf16.mxu0 %v10012_v40 }
 0x9e7   :  { %8613 = vmatpush3.bf16.msra.mxu0 %v8612_v32  ;;  %v8675_v32 = vpack.c.bf16 %v2945_v31, %v2944_v30  ;;  %v3122_v31 = vld [vmem:[#allocation31 + $0x70] sm:$0xff] }
 0x9e8   :  { %8614 = vmatprep.subr.bf16.mxu0 %v10012_v40 }
 0x9eb   :  { %8616 = vmatpush3.bf16.msra.mxu0 %v8615_v35 }
 0x9ec   :  { %7502 = vmatprep.subr.mxu0 %v10014_v43 }
 0xaa5   :  { %v2508_v39 = vpop.f32.mrb[14].mxu0 }
 0xaa6   :  { %v7442_v45 = vpop.f32.mrb[15].mxu0  ;;  %7500 = vmatmul.mubr.msk.f32.vlgmr.msra.gmra.mrb[26].mxu1 %vm2612_vm12, %v2508_v39 }
 0xaa7   :  { %7566 = vmatprep.mubr.msk.f32.mxu1 %vm10013_vm6, %v10014_v43  ;;  %8655 = vmatpush3.bf16.msra.mxu1 %v8654_v4  ;;  %v8723_v4 = vpack.c.bf16 %v3213_v3, %v3212_v2  ;;  %v3452_v2 = vld [vmem:[#allocation31 + $0x128] sm:$0xff] }
 0xaa8   :  { %8656 = vmatprep.subr.bf16.mxu1 %v10012_v40 }
 0xaa9   :  { %v2595_v53 = vpop.f32.mrb[16].mxu0 }
 0xaaa   :  { %v7447_v38 = vpop.f32.mrb[17].mxu0  ;;  %7473 = vmatmul.mubr.msk.f32.vlgmr.msra.gmra.mrb[18].mxu0 %vm2612_vm12, %v2595_v53  ;;  %v3024_v53 = vld [vmem:[#allocation28 + $0x8] sm:$0xff] }
 0xaab   :  { %7503 = vmatpush3.msk.msra.mxu0 %vm1938_vm8, %v2433_v14  ;;  %7504 = vmatprep.mubr.msk.f32.mxu0 %vm10013_vm6, %v10014_v43  ;;  %v2939_v14 = vld [vmem:[#allocation25 + $0x48] sm:$0xff]  ;;  %v8678_v38 = vpack.c.bf16 %v3024_v53, %v3023_v48 }
 0xaac   :  { %8635 = vmatprep.subr.bf16.mxu0 %v10012_v40  ;;  %8658 = vmatpush3.bf16.msra.mxu1 %v8657_v6  ;;  %v8666_v15 = vpack.c.bf16 %v2939_v14, %v2938_v13  ;;  %v3109_v6 = vld [vmem:[#allocation31 + $0x8] sm:$0xff]  ;;  %v3111_v13 = vld [vmem:[#allocation31 + $0x18] sm:$0xff] }
 0xaad   :  { %8659 = vmatprep.subr.bf16.mxu1 %v10012_v40 }
 0xaae   :  { %7505 = vmatmul.mubr.msk.f32.vlgmr.msra.gmra.mrb[20].mxu0 %vm2435_vm11, %v2760_v46  ;;  %v3200_v46 = vld [vmem:[#allocation31 + $0x80] sm:$0xff] }
 0xaaf   :  { %8637 = vmatpush3.bf16.msra.mxu0 %v8636_v49  ;;  %7531 = vmatprep.mubr.msk.f32.mxu0 %vm10013_vm6, %v10014_v43  ;;  %v3201_v49 = vld [vmem:[#allocation31 + $0x88] sm:$0xff] }
 0xab0   :  { %8638 = vmatprep.subr.bf16.mxu0 %v10012_v40  ;;  %8661 = vmatpush3.bf16.msra.mxu1 %v8660_v9  ;;  %v8705_v52 = vpack.c.bf16 %v3201_v49, %v3200_v46  ;;  %v8681_v9 = vpack.c.bf16 %v3109_v6, %v3108_v5  ;;  %v10696_v46 = vld [vmem:[#allocation32] sm:$0x7]  ;;  %v3454_v5 = vld [vmem:[#allocation31 + $0x138] sm:$0xff] }
 0xab1   :  { %8662 = vmatprep.subr.bf16.mxu1 %v10012_v40  ;;  %v3219_v49 = vrot.slane %v10696_v46, %v10561_v36 }
 0xab3   :  { %8640 = vmatpush3.bf16.msra.mxu0 %v8639_v55  ;;  %v3203_v55 = vld [vmem:[#allocation31 + $0x98] sm:$0xff] }
 0xab4   :  { %8641 = vmatprep.subr.bf16.mxu0 %v10012_v40  ;;  %8664 = vmatpush3.bf16.msra.mxu1 %v8663_v12  ;;  %v8708_v41 = vpack.c.bf16 %v3203_v55, %v3202_v54  ;;  %v3110_v12 = vld [vmem:[#allocation31 + $0x10] sm:$0xff] }
 0xab5   :  { %8665 = vmatprep.subr.bf16.mxu1 %v10012_v40  ;;  %v8684_v14 = vpack.c.bf16 %v3111_v13, %v3110_v12  ;;  %v3459_v13 = vld [vmem:[#allocation31 + $0x160] sm:$0xff] }
 0xab7   :  { %8643 = vmatpush3.bf16.msra.mxu0 %v8642_v50  ;;  %v3205_v50 = vld [vmem:[#allocation31 + $0xa8] sm:$0xff] }
 0xab8   :  { %8644 = vmatprep.subr.bf16.mxu0 %v10012_v40  ;;  %8667 = vmatpush3.bf16.msra.mxu1 %v8666_v15  ;;  %v8711_v44 = vpack.c.bf16 %v3205_v50, %v3204_v56  ;;  %v3112_v15 = vld [vmem:[#allocation31 + $0x20] sm:$0xff] }
 0xab9   :  { %8668 = vmatprep.subr.bf16.mxu1 %v10012_v40  ;;  %v8687_v17 = vpack.c.bf16 %v3113_v16, %v3112_v15  ;;  %v3461_v16 = vld [vmem:[#allocation31 + $0x170] sm:$0xff] }
 0xabb   :  { %8646 = vmatpush3.bf16.msra.mxu0 %v8645_v58  ;;  %v3207_v58 = vld [vmem:[#allocation31 + $0xb8] sm:$0xff] }
 0xabc   :  { %8647 = vmatprep.subr.bf16.mxu0 %v10012_v40  ;;  %8670 = vmatpush3.bf16.msra.mxu1 %v8669_v18  ;;  %v8714_v59 = vpack.c.bf16 %v3207_v58, %v3206_v51  ;;  %v3114_v18 = vld [vmem:[#allocation31 + $0x30] sm:$0xff]  ;;  %v3447_v58 = vld [vmem:[#allocation31 + $0x100] sm:$0xff] }
 0xabd   :  { %8671 = vmatprep.subr.bf16.mxu1 %v10012_v40 }
 0xabf   :  { %8649 = vmatpush3.bf16.msra.mxu0 %v8648_v61  ;;  %v3209_v61 = vld [vmem:[#allocation31 + $0xc8] sm:$0xff] }
 0xac0   :  { %8650 = vmatprep.subr.bf16.mxu0 %v10012_v40  ;;  %8673 = vmatpush3.bf16.msra.mxu1 %v8672_v29  ;;  %v8717_v62 = vpack.c.bf16 %v3209_v61, %v3208_v60  ;;  %v3121_v29 = vld [vmem:[#allocation31 + $0x68] sm:$0xff] }
 0xac1   :  { %8674 = vmatprep.subr.bf16.mxu1 %v10012_v40  ;;  %v8699_v30 = vpack.c.bf16 %v3121_v29, %v3120_v28  ;;  %v3198_v60 = vld [vmem:[#allocation29] sm:$0x3f]  ;;  %v3801_v28 = vld [vmem:[#allocation35 + $0x60] sm:$0xff]  ;;  %v3802_v29 = vld [vmem:[#allocation35 + $0x68] sm:$0xff] }
 0xac3   :  { %8652 = vmatpush3.bf16.msra.mxu0 %v8651_v0  ;;  %v3211_v0 = vld [vmem:[#allocation31 + $0xd8] sm:$0xff] }
 0xac4   :  { %8677 = vmatprep.subr.bf16.mxu0 %v10012_v40  ;;  %8676 = vmatpush3.bf16.msra.mxu1 %v8675_v32  ;;  %v8720_v1 = vpack.c.bf16 %v3211_v0, %v3210_v63  ;;  %v3123_v32 = vld [vmem:[#allocation31 + $0x78] sm:$0xff] }
 0xac5   :  { %8704 = vmatprep.subr.bf16.mxu1 %v10012_v40  ;;  %v3450_v63 = vld [vmem:[#allocation31 + $0x118] sm:$0xff] }
 0xb79   :  { %v2755_v19 = vpop.f32.mrb[26].mxu1 }
 0xb7a   :  { %v7501_v20 = vpop.f32.mrb[27].mxu1 }
 0xb7d   :  { %v2682_v21 = vpop.f32.mrb[18].mxu0 }
 0xb7e   :  { %v2756_v22 = vadd.f32 %v2755_v19, %v2682_v21  ;;  %v7474_v23 = vpop.f32.mrb[19].mxu0  ;;  %v3115_v19 = vld [vmem:[#allocation31 + $0x38] sm:$0xff]  ;;  %v3116_v21 = vld [vmem:[#allocation31 + $0x40] sm:$0xff] }
 0xb7f   :  { %v8690_v20 = vpack.c.bf16 %v3115_v19, %v3114_v18  ;;  %v3466_v19 = vrot.slane %v10696_v46, %v10564_v37 }
 0xb81   :  { %v2830_v24 = vpop.f32.mrb[20].mxu0 }
 0xb82   :  { %v7506_v26 = vpop.f32.mrb[21].mxu0  ;;  %7532 = vmatmul.mubr.msk.f32.vlgmr.msra.gmra.mrb[22].mxu0 %vm2612_vm12, %v2830_v24  ;;  %v3118_v24 = vld [vmem:[#allocation31 + $0x50] sm:$0xff] }
 0xb83   :  { %7573 = vmatprep.mubr.msk.f32.mxu0 %vm10013_vm6, %v10014_v43  ;;  %8679 = vmatpush3.bf16.msra.mxu0 %v8678_v38  ;;  %v3119_v26 = vld [vmem:[#allocation31 + $0x58] sm:$0xff] }
 0xb84   :  { %8680 = vmatprep.subr.bf16.mxu0 %v10012_v40  ;;  %v8696_v27 = vpack.c.bf16 %v3119_v26, %v3118_v24  ;;  %v3618_v24 = vld [vmem:[#allocation34] sm:$0xff] }
 0xb85   :  { %v3976_v26 = vld [vmem:[#allocation34 + $0x20] sm:$0xff] }
 0xc55   :  { %v2916_v33 = vpop.f32.mrb[22].mxu0 }
 0xc56   :  { %v2920_v35 = vadd.f32 %v2916_v33, %v2756_v22  ;;  %v7533_v39 = vpop.f32.mrb[23].mxu0  ;;  %v3117_v22 = vld [vmem:[#allocation31 + $0x48] sm:$0xff]  ;;  %v3214_v33 = vld [vmem:[#allocation31 + $0xf0] sm:$0xff] }
 0xc57   :  { %v8693_v23 = vpack.c.bf16 %v3117_v22, %v3116_v21 }
 0xc58   :  { %v2928_v45 = vadd.f32 %v6306_v34, %v2920_v35  ;;  %v8702_v34 = vpack.c.bf16 %v3123_v32, %v3122_v31  ;;  %v3215_v35 = vld [vmem:[#allocation31 + $0xf8] sm:$0xff]  ;;  %v3619_v32 = vld [vmem:[#allocation34 + $0x8] sm:$0x3f] }
 0xc59   :  { %v8726_v39 = vpack.c.bf16 %v3215_v35, %v3214_v33  ;;  %v3717_v33 = vld [vmem:[#allocation34 + $0x10] sm:$0xff]  ;;  %v3977_v35 = vld [vmem:[#allocation34 + $0x28] sm:$0x3f] }
 0xc5a   :  { %v2929_v47 = vmax.f32 %v2928_v45, 0.0  ;;  %v6308_v45 = vld [vmem:[%s11178_s13] ss:$0 sm:$0xff] }
 0xc5c   :  { %7567 = vmatmul.mubr.f32.vlgmr.msra.gmra.mrb[28].mxu1 %v2929_v47 }
 0xc5d   :  { %7643 = vmatprep.mubr.msk.f32.mxu1 %vm10013_vm6, %v10014_v43  ;;  %8706 = vmatpush3.bf16.msra.mxu1 %v8705_v52  ;;  %v3127_v52 = vrot.slane %v10696_v46, %v10512_v42 }
 0xc5e   :  { %8707 = vmatprep.subr.bf16.mxu1 %v10012_v40 }
 0xc61   :  { %8709 = vmatpush3.bf16.msra.mxu1 %v8708_v41 }
 0xc62   :  { %8710 = vmatprep.subr.bf16.mxu1 %v10012_v40 }
 0xc65   :  { %8712 = vmatpush3.bf16.msra.mxu1 %v8711_v44  ;;  %v3291_v44 = vld [vmem:[#allocation29 + $0x8] sm:$0x3f] }
 0xc66   :  { %8713 = vmatprep.subr.bf16.mxu1 %v10012_v40 }
 0xc69   :  { %8715 = vmatpush3.bf16.msra.mxu1 %v8714_v59  ;;  %v3448_v59 = vld [vmem:[#allocation31 + $0x108] sm:$0xff] }
 0xc6a   :  { %8716 = vmatprep.subr.bf16.mxu1 %v10012_v40  ;;  %v8729_v61 = vpack.c.bf16 %v3448_v59, %v3447_v58  ;;  %v3704_v58 = vld [vmem:[#allocation35] sm:$0xff]  ;;  %v3705_v59 = vld [vmem:[#allocation35 + $0x8] sm:$0xff] }
 0xc6d   :  { %8718 = vmatpush3.bf16.msra.mxu1 %v8717_v62  ;;  %v3449_v62 = vld [vmem:[#allocation31 + $0x110] sm:$0xff] }
 0xc6e   :  { %8719 = vmatprep.subr.bf16.mxu1 %v10012_v40  ;;  %v8732_v0 = vpack.c.bf16 %v3450_v63, %v3449_v62  ;;  %v4162_v62 = vld [vmem:[#allocation38 + $0x8] sm:$0xff]  ;;  %v4163_v63 = vld [vmem:[#allocation38 + $0x10] sm:$0xff] }
 0xc71   :  { %8721 = vmatpush3.bf16.msra.mxu1 %v8720_v1  ;;  %v3451_v1 = vld [vmem:[#allocation31 + $0x120] sm:$0xff] }
 0xc72   :  { %8722 = vmatprep.subr.bf16.mxu1 %v10012_v40  ;;  %v8735_v3 = vpack.c.bf16 %v3452_v2, %v3451_v1  ;;  %v4164_v1 = vld [vmem:[#allocation38 + $0x18] sm:$0xff] }
 0xc73   :  { %v10741_v2 = vpack.c.bf16 %v4164_v1, %v4163_v63  ;;  %v3617_v1 = vld [vmem:[#allocation37] sm:$0x7] }
 0xc75   :  { %8724 = vmatpush3.bf16.msra.mxu1 %v8723_v4  ;;  %v3453_v4 = vld [vmem:[#allocation31 + $0x130] sm:$0xff] }
 0xc76   :  { %8725 = vmatprep.subr.bf16.mxu1 %v10012_v40  ;;  %v8738_v6 = vpack.c.bf16 %v3454_v5, %v3453_v4  ;;  %v4166_v4 = vld [vmem:[#allocation38 + $0x28] sm:$0xff] }
 0xc79   :  { %8727 = vmatpush3.bf16.msra.mxu1 %v8726_v39  ;;  %v3803_v39 = vld [vmem:[#allocation35 + $0x70] sm:$0xff] }
 0xd2f   :  { %v3019_v8 = vpop.f32.mrb[28].mxu1 }
 0xd30   :  { %v3020_v10 = vadd.f32 %v6307_v7, %v3019_v8  ;;  %v7568_v11 = vpop.f32.mrb[29].mxu1  ;;  %v3455_v7 = vld [vmem:[#allocation31 + $0x140] sm:$0xff]  ;;  %v3456_v8 = vld [vmem:[#allocation31 + $0x148] sm:$0xff] }
 0xd31   :  { %v3458_v11 = vld [vmem:[#allocation31 + $0x158] sm:$0xff] }
 0xd32   :  { %7574 = vmatmul.mubr.msk.f32.vlgmr.msra.gmra.mrb[24].mxu0 %vm3032_vm13, %v3020_v10  ;;  %v3457_v10 = vld [vmem:[#allocation31 + $0x150] sm:$0xff] }
 0xd33   :  { %8682 = vmatpush3.bf16.msra.mxu0 %v8681_v9  ;;  %7608 = vmatprep.mubr.msk.f32.mxu0 %vm10013_vm6, %v10014_v43  ;;  %v8741_v9 = vpack.c.bf16 %v3456_v8, %v3455_v7  ;;  %v8744_v12 = vpack.c.bf16 %v3458_v11, %v3457_v10  ;;  %v4168_v7 = vld [vmem:[#allocation38 + $0x38] sm:$0xff]  ;;  %v4170_v10 = vld [vmem:[#allocation38 + $0x48] sm:$0xff] }
 0xd34   :  { %8683 = vmatprep.subr.bf16.mxu0 %v10012_v40 }
 0xd37   :  { %8685 = vmatpush3.bf16.msra.mxu0 %v8684_v14  ;;  %v3460_v14 = vld [vmem:[#allocation31 + $0x168] sm:$0xff] }
 0xd38   :  { %8686 = vmatprep.subr.bf16.mxu0 %v10012_v40  ;;  %v8747_v15 = vpack.c.bf16 %v3460_v14, %v3459_v13  ;;  %v4172_v13 = vld [vmem:[#allocation38 + $0x58] sm:$0xff] }
 0xd3b   :  { %8688 = vmatpush3.bf16.msra.mxu0 %v8687_v17  ;;  %v3462_v17 = vld [vmem:[#allocation31 + $0x178] sm:$0xff] }
 0xd3c   :  { %8689 = vmatprep.subr.bf16.mxu0 %v10012_v40  ;;  %v8750_v18 = vpack.c.bf16 %v3462_v17, %v3461_v16  ;;  %v3706_v17 = vld [vmem:[#allocation35 + $0x10] sm:$0xff] }
 0xd3f   :  { %8691 = vmatpush3.bf16.msra.mxu0 %v8690_v20 }
 0xd40   :  { %8692 = vmatprep.subr.bf16.mxu0 %v10012_v40 }
 0xd43   :  { %8694 = vmatpush3.bf16.msra.mxu0 %v8693_v23  ;;  %v3538_v23 = vld [vmem:[#allocation29 + $0x10] sm:$0x3f] }
 0xd44   :  { %8695 = vmatprep.subr.bf16.mxu0 %v10012_v40 }
 0xd47   :  { %8697 = vmatpush3.bf16.msra.mxu0 %v8696_v27 }
 0xd48   :  { %8698 = vmatprep.subr.bf16.mxu0 %v10012_v40 }
 0xd4b   :  { %8700 = vmatpush3.bf16.msra.mxu0 %v8699_v30 }
 0xd4c   :  { %8701 = vmatprep.subr.bf16.mxu0 %v10012_v40 }
 0xd4f   :  { %8703 = vmatpush3.bf16.msra.mxu0 %v8702_v34  ;;  %v8752_v34 = vpack.c.bf16 %v3802_v29, %v3801_v28  ;;  %v3710_v28 = vld [vmem:[#allocation35 + $0x30] sm:$0xff]  ;;  %v3711_v29 = vld [vmem:[#allocation35 + $0x38] sm:$0xff] }
 0xd50   :  { %7646 = vmatprep.subr.mxu0 %v10014_v43 }
 0xe05   :  { %v3102_v47 = vpop.f32.mrb[24].mxu0 }
 0xe06   :  { %v3103_v48 = vadd.f32 %v6308_v45, %v3102_v47  ;;  %v7575_v53 = vpop.f32.mrb[25].mxu0  ;;  %v3804_v45 = vld [vmem:[#allocation35 + $0x78] sm:$0xff]  ;;  %v3718_v47 = vld [vmem:[#allocation34 + $0x18] sm:$0x3f] }
 0xe07   :  { %v3805_v53 = vld [vmem:[#allocation35 + $0x80] sm:$0xff] }
 0xe08   :  { %v10690_v38 = vmax.f32 %v3103_v48, 0.0  ;;  %v8756_v48 = vpack.c.bf16 %v3804_v45, %v3803_v39  ;;  %v4060_v45 = vld [vmem:[#allocation35 + $0xc0] sm:$0xff] }
 0xe0a   :  { %7609 = vmatmul.mubr.f32.vlgmr.msra.gmra.mrb[26].mxu0 %v10690_v38  ;;  %7644 = vmatmul.mubr.f32.vlgmr.msra.gmra.mrb[30].mxu1 %v10690_v38 }
 0xe0b   :  { %7648 = vmatprep.mubr.msk.f32.mxu0 %vm10013_vm6, %v10014_v43  ;;  %7698 = vmatprep.mubr.msk.f32.mxu1 %vm2435_vm11, %v3618_v24  ;;  %v3708_v24 = vld [vmem:[#allocation35 + $0x20] sm:$0xff] }
 0xedd   :  { %v3194_v54 = vpop.f32.mrb[26].mxu0  ;;  %v3286_v55 = vpop.f32.mrb[30].mxu1 }
 0xede   :  { %v3287_v41 = vadd.f32 %v3286_v55, %v3219_v49  ;;  %v7610_v56 = vpop.f32.mrb[27].mxu0  ;;  %v7645_v50 = vpop.f32.mrb[31].mxu1  ;;  %v3195_v51 = vadd.f32 %v3194_v54, %v3127_v52  ;;  %v3807_v49 = vld [vmem:[#allocation35 + $0x90] sm:$0xff]  ;;  %v3808_v52 = vld [vmem:[#allocation35 + $0x98] sm:$0xff]  ;;  %v3809_v55 = vld [vmem:[#allocation35 + $0xa0] sm:$0xff] }
 0xedf   :  { %v8764_v54 = vpack.c.bf16 %v3808_v52, %v3807_v49  ;;  %v3811_v50 = vld [vmem:[#allocation35 + $0xb0] sm:$0xff]  ;;  %v4064_v49 = vld [vmem:[#allocation35 + $0xe0] sm:$0xff]  ;;  %v4065_v52 = vld [vmem:[#allocation35 + $0xe8] sm:$0xff] }
 0xee0   :  { %7647 = vmatpush3.msk.msra.mxu0 %vm3296_vm14, %v3287_v41  ;;  %v3810_v41 = vld [vmem:[#allocation35 + $0xa8] sm:$0xff] }
 0xee1   :  { %7649 = vmatmul.mubr.msk.f32.vlgmr.msra.gmra.mrb[28].mxu0 %vm3292_vm15, %v3291_v44  ;;  %7651 = vmatprep.subr.mxu0 %v10014_v43  ;;  %v8768_v56 = vpack.c.bf16 %v3810_v41, %v3809_v55  ;;  %v3812_v44 = vld [vmem:[#allocation35 + $0xb8] sm:$0xff]  ;;  %v4066_v55 = vld [vmem:[#allocation35 + $0xf0] sm:$0xff] }
 0xee2   :  { %7652 = vmatpush3.msk.msra.mxu0 %vm3296_vm14, %v3195_v51  ;;  %7653 = vmatprep.mubr.msk.f32.mxu0 %vm10013_vm6, %v10014_v43  ;;  %v8772_v51 = vpack.c.bf16 %v3812_v44, %v3811_v50  ;;  %v4067_v41 = vld [vmem:[#allocation35 + $0xf8] sm:$0xff]  ;;  %v4068_v50 = vld [vmem:[#allocation35 + $0x100] sm:$0xff]  ;;  %v4069_v44 = vld [vmem:[#allocation35 + $0x108] sm:$0xff] }
 0xee3   :  { %8728 = vmatprep.subr.bf16.mxu0 %v10012_v40 }
 0xee9   :  { %7654 = vmatmul.mubr.msk.f32.vlgmr.msra.gmra.mrb[28].mxu0 %vm3292_vm15, %v3198_v60  ;;  %v8776_v60 = vpack.c.bf16 %v3705_v59, %v3704_v58  ;;  %v4070_v58 = vld [vmem:[#allocation35 + $0x110] sm:$0xff]  ;;  %v4071_v59 = vld [vmem:[#allocation35 + $0x118] sm:$0xff] }
 0xeea   :  { %8730 = vmatpush3.bf16.msra.mxu0 %v8729_v61  ;;  %7688 = vmatprep.mubr.msk.f32.mxu0 %vm10013_vm6, %v10014_v43  ;;  %v4161_v61 = vld [vmem:[#allocation38] sm:$0xff] }
 0xeeb   :  { %8731 = vmatprep.subr.bf16.mxu0 %v10012_v40 }
 0xeee   :  { %8733 = vmatpush3.bf16.msra.mxu0 %v8732_v0  ;;  %v10739_v0 = vpack.c.bf16 %v4162_v62, %v4161_v61  ;;  %v4173_v61 = vld [vmem:[#allocation38 + $0x60] sm:$0xff]  ;;  %v4174_v62 = vld [vmem:[#allocation38 + $0x68] sm:$0xff] }
 0xeef   :  { %8734 = vmatprep.subr.bf16.mxu0 %v10012_v40  ;;  %v8848_v63 = vpack.c.bf16 %v4174_v62, %v4173_v61  ;;  %v4605_v61 = vld [vmem:[#allocation41 + $0x80] sm:$0xff]  ;;  %v4606_v62 = vld [vmem:[#allocation41 + $0x88] sm:$0xff] }
 0xef2   :  { %8736 = vmatpush3.bf16.msra.mxu0 %v8735_v3  ;;  %v4165_v3 = vld [vmem:[#allocation38 + $0x20] sm:$0xff] }
 0xef3   :  { %8737 = vmatprep.subr.bf16.mxu0 %v10012_v40  ;;  %v10746_v5 = vpack.c.bf16 %v4166_v4, %v4165_v3  ;;  %v4158_v3 = vrot.slane %v3617_v1, %v10512_v42 }
 0xef6   :  { %8739 = vmatpush3.bf16.msra.mxu0 %v8738_v6  ;;  %v4167_v6 = vld [vmem:[#allocation38 + $0x30] sm:$0xff] }
 0xef7   :  { %8740 = vmatprep.subr.bf16.mxu0 %v10012_v40  ;;  %v10750_v8 = vpack.c.bf16 %v4168_v7, %v4167_v6 }
 0xefa   :  { %8742 = vmatpush3.bf16.msra.mxu0 %v8741_v9  ;;  %v4169_v9 = vld [vmem:[#allocation38 + $0x40] sm:$0xff] }
 0xefb   :  { %8743 = vmatprep.subr.bf16.mxu0 %v10012_v40  ;;  %v10754_v11 = vpack.c.bf16 %v4170_v10, %v4169_v9 }
 0xefe   :  { %8745 = vmatpush3.bf16.msra.mxu0 %v8744_v12  ;;  %v4171_v12 = vld [vmem:[#allocation38 + $0x50] sm:$0xff] }
 0xeff   :  { %8746 = vmatprep.subr.bf16.mxu0 %v10012_v40  ;;  %v10758_v14 = vpack.c.bf16 %v4172_v13, %v4171_v12 }
 0xf02   :  { %8748 = vmatpush3.bf16.msra.mxu0 %v8747_v15 }
 0xf03   :  { %8749 = vmatprep.subr.bf16.mxu0 %v10012_v40 }
 0xf06   :  { %8751 = vmatpush3.bf16.msra.mxu0 %v8750_v18  ;;  %v3707_v18 = vld [vmem:[#allocation35 + $0x18] sm:$0xff] }
 0xf07   :  { %7691 = vmatprep.subr.mxu0 %v10014_v43 }
 0xf09   :  { %7689 = vmatmul.mubr.f32.vlgmr.msra.gmra.mrb[30].mxu0 %v10690_v38  ;;  %v3806_v38 = vld [vmem:[#allocation35 + $0x88] sm:$0xff] }
 0xf0a   :  { %7693 = vmatprep.mubr.msk.f32.mxu0 %vm10013_vm6, %v10014_v43  ;;  %v8760_v46 = vpack.c.bf16 %v3806_v38, %v3805_v53  ;;  %v4062_v53 = vld [vmem:[#allocation35 + $0xd0] sm:$0xff]  ;;  %v4063_v38 = vld [vmem:[#allocation35 + $0xd8] sm:$0xff] }
 0xfdc   :  { %v3533_v20 = vpop.f32.mrb[30].mxu0 }
 0xfdd   :  { %v3534_v21 = vadd.f32 %v3533_v20, %v3466_v19  ;;  %v7690_v22 = vpop.f32.mrb[31].mxu0 }
 0xfdf   :  { %7692 = vmatpush3.msk.msra.mxu0 %vm3296_vm14, %v3534_v21 }
 0xfe0   :  { %7694 = vmatmul.mubr.msk.f32.vlgmr.msra.gmra.mrb[28].mxu0 %vm3292_vm15, %v3538_v23  ;;  %v8780_v23 = vpack.c.bf16 %v3707_v18, %v3706_v17 }
 0xfe1   :  { %7762 = vmatprep.mubr.msk.f32.mxu0 %vm2435_vm11, %v3976_v26  ;;  %v3709_v26 = vld [vmem:[#allocation35 + $0x28] sm:$0xff] }
0x10b3   :  { %v3611_v27 = vpop.f32.mrb[28].mxu0 }
0x10b4   :  { %v3616_v30 = vmax.f32 %v3611_v27, 0.0  ;;  %v7695_v31 = vpop.f32.mrb[29].mxu0  ;;  %v8784_v27 = vpack.c.bf16 %v3709_v26, %v3708_v24 }
0x10b5   :  { %v3712_v31 = vld [vmem:[#allocation35 + $0x40] sm:$0xff] }
0x10b6   :  { %7696 = vmatprep.subr.msk.mxu1 %vm1938_vm8, %v3616_v30  ;;  %7760 = vmatprep.subr.msk.mxu0 %vm1938_vm8, %v3616_v30 }
0x10b7   :  { %7697 = vmatpush3.msk.msra.mxu1 %vm1938_vm8, %v3616_v30  ;;  %7761 = vmatpush3.msk.msra.mxu0 %vm1938_vm8, %v3616_v30 }
0x10b8   :  { %7699 = vmatmul.mubr.msk.f32.vlgmr.msra.gmra.mrb[32].mxu1 %vm2435_vm11, %v3619_v32  ;;  %7701 = vmatprep.subr.msk.mxu1 %vm1938_vm8, %v3616_v30  ;;  %v3713_v32 = vld [vmem:[#allocation35 + $0x48] sm:$0xff] }
0x10b9   :  { %7702 = vmatpush3.msk.msra.mxu1 %vm1938_vm8, %v3616_v30  ;;  %7703 = vmatprep.mubr.msk.f32.mxu1 %vm2435_vm11, %v3717_v33  ;;  %v8788_v30 = vpack.c.bf16 %v3711_v29, %v3710_v28  ;;  %v8792_v33 = vpack.c.bf16 %v3713_v32, %v3712_v31 }
0x10ba   :  { %7763 = vmatmul.mubr.msk.f32.vlgmr.msra.gmra.mrb[32].mxu0 %vm2435_vm11, %v3977_v35  ;;  %8753 = vmatprep.subr.bf16.mxu1 %v8752_v34  ;;  %v3715_v35 = vld [vmem:[#allocation35 + $0x58] sm:$0xff] }
0x10bb   :  { %8825 = vmatprep.subr.bf16.mxu0 %v10739_v0 }
0x10bc   :  { %7704 = vmatmul.mubr.msk.f32.vlgmr.msra.gmra.mrb[34].mxu1 %vm2435_vm11, %v3718_v47  ;;  %8827 = vmatpush3.bf16.msra.mxu0 %v10739_v0  ;;  %v4061_v47 = vld [vmem:[#allocation35 + $0xc8] sm:$0xff] }
0x10bd   :  { %8755 = vmatpush3.bf16.msra.mxu1 %v8752_v34  ;;  %8829 = vmatprep.subr.bf16.mxu0 %v10741_v2  ;;  %v3714_v34 = vld [vmem:[#allocation35 + $0x50] sm:$0xff] }
0x10be   :  { %8757 = vmatprep.subr.bf16.mxu1 %v8756_v48  ;;  %v8796_v39 = vpack.c.bf16 %v3715_v35, %v3714_v34 }
0x10c0   :  { %8831 = vmatpush3.bf16.msra.mxu0 %v10741_v2 }
0x10c1   :  { %8759 = vmatpush3.bf16.msra.mxu1 %v8756_v48  ;;  %8833 = vmatprep.subr.bf16.mxu0 %v10746_v5  ;;  %v8800_v48 = vpack.c.bf16 %v4061_v47, %v4060_v45  ;;  %v4370_v47 = vrot.slane %v3617_v1, %v10561_v36 }
0x10c2   :  { %8761 = vmatprep.subr.bf16.mxu1 %v8760_v46 }
0x10c4   :  { %8835 = vmatpush3.bf16.msra.mxu0 %v10746_v5 }
0x10c5   :  { %8763 = vmatpush3.bf16.msra.mxu1 %v8760_v46  ;;  %8837 = vmatprep.subr.bf16.mxu0 %v10750_v8  ;;  %v8804_v46 = vpack.c.bf16 %v4063_v38, %v4062_v53 }
0x10c6   :  { %8765 = vmatprep.subr.bf16.mxu1 %v8764_v54 }
0x10c8   :  { %8839 = vmatpush3.bf16.msra.mxu0 %v10750_v8 }
0x10c9   :  { %8767 = vmatpush3.bf16.msra.mxu1 %v8764_v54  ;;  %8841 = vmatprep.subr.bf16.mxu0 %v10754_v11  ;;  %v8808_v54 = vpack.c.bf16 %v4065_v52, %v4064_v49 }
0x10ca   :  { %8769 = vmatprep.subr.bf16.mxu1 %v8768_v56 }
0x10cc   :  { %8843 = vmatpush3.bf16.msra.mxu0 %v10754_v11 }
0x10cd   :  { %8771 = vmatpush3.bf16.msra.mxu1 %v8768_v56  ;;  %8845 = vmatprep.subr.bf16.mxu0 %v10758_v14  ;;  %v8812_v56 = vpack.c.bf16 %v4067_v41, %v4066_v55 }
0x10ce   :  { %8773 = vmatprep.subr.bf16.mxu1 %v8772_v51 }
0x10d0   :  { %8847 = vmatpush3.bf16.msra.mxu0 %v10758_v14 }
0x10d1   :  { %8775 = vmatpush3.bf16.msra.mxu1 %v8772_v51  ;;  %v8816_v51 = vpack.c.bf16 %v4069_v44, %v4068_v50  ;;  %8849 = vmatprep.subr.bf16.mxu0 %v8848_v63  ;;  %v4603_v50 = vld [vmem:[#allocation41 + $0x70] sm:$0xff]  ;;  %v4604_v44 = vld [vmem:[#allocation41 + $0x78] sm:$0xff] }
0x10d2   :  { %8777 = vmatprep.subr.bf16.mxu1 %v8776_v60 }
0x10d4   :  { %8851 = vmatpush3.bf16.msra.mxu0 %v8848_v63 }
0x10d5   :  { %8853 = vmatprep.subr.bf16.mxu0 %v10739_v0 }
0x118b   :  { %v7700_v15 = vpop.f32.mrb[32].mxu1 }
0x118c   :  { %v3695_v16 = vpop.f32.mrb[33].mxu1 }
0x118d   :  { %v10763_v19 = vpop.f32.mrb[32].mxu0 }
0x118e   :  { %v4050_v20 = vpop.f32.mrb[33].mxu0 }
0x118f   :  { %v7705_v21 = vpop.f32.mrb[34].mxu1 }
0x1190   :  { %v3791_v22 = vpop.f32.mrb[35].mxu1 }
0x1191   :  { %7730 = vmatprep.mubr.msk.f32.mxu1 %vm2612_vm12, %v3791_v22 }
0x1192   :  { %7731 = vmatmul.mubr.msk.f32.vlgmr.msra.gmra.mrb[36].mxu1 %vm2612_vm12, %v7705_v21 }
0x1193   :  { %8779 = vmatpush3.bf16.msra.mxu1 %v8776_v60  ;;  %7757 = vmatprep.mubr.msk.f32.mxu1 %vm2612_vm12, %v3695_v16  ;;  %v8820_v60 = vpack.c.bf16 %v4071_v59, %v4070_v58 }
0x1194   :  { %8781 = vmatprep.subr.bf16.mxu1 %v8780_v23 }
0x1197   :  { %8783 = vmatpush3.bf16.msra.mxu1 %v8780_v23 }
0x1198   :  { %8785 = vmatprep.subr.bf16.mxu1 %v8784_v27 }
0x119b   :  { %8787 = vmatpush3.bf16.msra.mxu1 %v8784_v27 }
0x119c   :  { %8789 = vmatprep.subr.bf16.mxu1 %v8788_v30 }
0x119f   :  { %8791 = vmatpush3.bf16.msra.mxu1 %v8788_v30 }
0x11a0   :  { %8793 = vmatprep.subr.bf16.mxu1 %v8792_v33 }
0x11a3   :  { %8795 = vmatpush3.bf16.msra.mxu1 %v8792_v33 }
0x11a4   :  { %8797 = vmatprep.subr.bf16.mxu1 %v8796_v39 }
0x11a7   :  { %8799 = vmatpush3.bf16.msra.mxu1 %v8796_v39 }
0x11a8   :  { %8801 = vmatprep.subr.bf16.mxu1 %v8800_v48 }
0x11aa   :  { %7758 = vmatmul.mubr.msk.f32.vlgmr.msra.gmra.mrb[36].mxu1 %vm2612_vm12, %v7700_v15 }
0x11ab   :  { %8803 = vmatpush3.bf16.msra.mxu1 %v8800_v48  ;;  %7789 = vmatprep.mubr.msk.f32.mxu1 %vm2612_vm12, %v4050_v20 }
0x11ac   :  { %8805 = vmatprep.subr.bf16.mxu1 %v8804_v46 }
0x11af   :  { %8807 = vmatpush3.bf16.msra.mxu1 %v8804_v46  ;;  %v4376_v46 = vrot.slane %v3617_v1, %v10564_v37  ;;  %v4383_v1 = vld [vmem:[#allocation40 + $0x8] sm:$0xff] }
0x11b0   :  { %8809 = vmatprep.subr.bf16.mxu1 %v8808_v54 }
0x11b3   :  { %8811 = vmatpush3.bf16.msra.mxu1 %v8808_v54 }
0x11b4   :  { %8813 = vmatprep.subr.bf16.mxu1 %v8812_v56 }
0x11b7   :  { %8815 = vmatpush3.bf16.msra.mxu1 %v8812_v56 }
0x11b8   :  { %8817 = vmatprep.subr.bf16.mxu1 %v8816_v51 }
0x11bb   :  { %8819 = vmatpush3.bf16.msra.mxu1 %v8816_v51 }
0x11bc   :  { %8821 = vmatprep.subr.bf16.mxu1 %v8820_v60 }
0x11bf   :  { %8823 = vmatpush3.bf16.msra.mxu1 %v8820_v60  ;;  %v8892_v60 = vpack.c.bf16 %v4604_v44, %v4603_v50 }
0x11c2   :  { %7790 = vmatmul.mubr.msk.f32.vlgmr.msra.gmra.mrb[36].mxu1 %vm2612_vm12, %v10763_v19 }
0x1295   :  { %v7791_v4 = vpop.f32.mrb[36].mxu1 }
0x1296   :  { %v4144_v6 = vpop.f32.mrb[37].mxu1  ;;  %v4160_v9 = vadd.f32 %v7791_v4, %v4158_v3  ;;  %v4384_v4 = vld [vmem:[#allocation40 + $0x10] sm:$0xff] }
0x1297   :  { %v4159_v7 = vadd.f32 %v4158_v3, %v4144_v6  ;;  %v4503_v3 = vld [vmem:[#allocation40 + $0x30] sm:$0xff]  ;;  %v8896_v6 = vpack.c.bf16 %v4606_v62, %v4605_v61 }
0x1299   :  { %v4266_v10 = vmul.f32 %v4159_v7, %v4159_v7  ;;  %7820 = vmatprep.mubr.msk.f32.mxu0 %vm1359_vm5, %v4159_v7 }
0x129a   :  { %7821 = vmatmul.mubr.msk.f32.vlgmr.msra.gmra.mrb[34].mxu0 %vm1359_vm5, %v4160_v9 }
0x129b   :  { %8855 = vmatpush3.bf16.msra.mxu0 %v10739_v0  ;;  %7851 = vmatprep.mubr.msk.f32.mxu0 %vm1359_vm5, %v4266_v10  ;;  %v4267_v0 = vmul.f32 %v4160_v9, %v4160_v9  ;;  %v4504_v10 = vld [vmem:[#allocation40 + $0x38] sm:$0xf] }
0x129c   :  { %8857 = vmatprep.subr.bf16.mxu0 %v10741_v2 }
0x129f   :  { %8859 = vmatpush3.bf16.msra.mxu0 %v10741_v2  ;;  %v4501_v2 = vld [vmem:[#allocation40 + $0x20] sm:$0xff] }
0x12a0   :  { %8861 = vmatprep.subr.bf16.mxu0 %v10746_v5 }
0x12a3   :  { %8863 = vmatpush3.bf16.msra.mxu0 %v10746_v5  ;;  %v4382_v5 = vld [vmem:[#allocation40] sm:$0xff] }
0x12a4   :  { %8865 = vmatprep.subr.bf16.mxu0 %v10750_v8  ;;  %7858 = vmatprep.mubr.msk.f32.mxu1 %vm1934_vm10, %v4382_v5 }
0x12a7   :  { %8867 = vmatpush3.bf16.msra.mxu0 %v10750_v8 }
0x12a8   :  { %8869 = vmatprep.subr.bf16.mxu0 %v10754_v11 }
0x12ab   :  { %8871 = vmatpush3.bf16.msra.mxu0 %v10754_v11 }
0x12ac   :  { %8873 = vmatprep.subr.bf16.mxu0 %v10758_v14 }
0x12af   :  { %8875 = vmatpush3.bf16.msra.mxu0 %v10758_v14 }
0x12b0   :  { %8877 = vmatprep.subr.bf16.mxu0 %v8848_v63 }
0x12b3   :  { %8879 = vmatpush3.bf16.msra.mxu0 %v8848_v63  ;;  %v4502_v63 = vld [vmem:[#allocation40 + $0x28] sm:$0xff] }
0x12b6   :  { %7852 = vmatmul.mubr.msk.f32.vlgmr.msra.gmra.mrb[36].mxu0 %vm1359_vm5, %v4267_v0  ;;  %v4385_v0 = vld [vmem:[#allocation40 + $0x18] sm:$0xf] }
0x12b7   :  { %7868 = vmatprep.mubr.msk.f32.mxu0 %vm1934_vm10, %v4501_v2  ;;  %v4812_v2 = vld [vmem:[#allocation40 + $0x40] sm:$0xff] }
0x136d   :  { %v7822_v8 = vpop.f32.mrb[34].mxu0 }
0x136e   :  { %v4257_v12 = vsel %vm1806_vm7, %v7822_v8, 0.0  ;;  %v4247_v13 = vpop.f32.mrb[35].mxu0  ;;  %v4609_v8 = vld [vmem:[#allocation41 + $0xa0] sm:$0xff] }
0x136f   :  { %v4256_v11 = vsel %vm1359_vm5, %v4247_v13, 0.0  ;;  %v4814_v13 = vld [vmem:[#allocation40 + $0x50] sm:$0xff] }
0x1370   :  { %v4258_v15 = vadd.f32 %v4257_v12, %v4256_v11  ;;  %v4610_v12 = vld [vmem:[#allocation41 + $0xa8] sm:$0xff] }
0x1371   :  { %v8904_v11 = vpack.c.bf16 %v4610_v12, %v4609_v8 }
0x1372   :  { %v4259_v16 = vrot.slane %v4258_v15, 4 }
0x1374   :  { %v4260_v14 = vadd.f32 %v4259_v16, %v4258_v15  ;;  %v4611_v15 = vld [vmem:[#allocation41 + $0xb0] sm:$0xff]  ;;  %v4612_v16 = vld [vmem:[#allocation41 + $0xb8] sm:$0xff] }
0x1376   :  { %v4261_v17 = vrot.slane %v4260_v14, 2 }
0x1378   :  { %v4262_v19 = vadd.f32 %v4261_v17, %v4260_v14  ;;  %v4815_v14 = vld [vmem:[#allocation40 + $0x58] sm:$0xf]  ;;  %v8908_v17 = vpack.c.bf16 %v4612_v16, %v4611_v15  ;;  %v4498_v15 = vld [vmem:[#allocation41 + $0x60] sm:$0xff]  ;;  %v4499_v16 = vld [vmem:[#allocation41 + $0x68] sm:$0xff] }
0x137a   :  { %v4263_v24 = vrot.slane %v4262_v19, 1 }
0x137c   :  { %v4264_v28 = vadd.f32 %v4263_v24, %v4262_v19  ;;  %v4614_v19 = vld [vmem:[#allocation41 + $0xc8] sm:$0xff]  ;;  %v4486_v24 = vld [vmem:[#allocation41] sm:$0xff] }
0x137e   :  { %v4265_v31 = vmul.f32 0.071428575, %v4264_v28  ;;  %v5037_v28 = vld [vmem:[%s11179_s7] sm:$0xff] }
0x1380   :  { %v4359_v35 = vmul.f32 %v4265_v31, %v4265_v31  ;;  %v4361_v48 = vsub.f32 %v4159_v7, %v4265_v31  ;;  %v4362_v53 = vsub.f32 %v4160_v9, %v4265_v31  ;;  %v4607_v7 = vld [vmem:[#allocation41 + $0x90] sm:$0xff]  ;;  %v4608_v9 = vld [vmem:[#allocation41 + $0x98] sm:$0xff] }
0x1381   :  { %v8900_v5 = vpack.c.bf16 %v4608_v9, %v4607_v7 }
0x1389   :  { %v7853_v18 = vpop.f32.mrb[36].mxu0 }
0x138a   :  { %v4350_v20 = vsel %vm1806_vm7, %v7853_v18, 0.0  ;;  %v4340_v21 = vpop.f32.mrb[37].mxu0  ;;  %v4613_v18 = vld [vmem:[#allocation41 + $0xc0] sm:$0xff] }
0x138b   :  { %v4349_v22 = vsel %vm1359_vm5, %v4340_v21, 0.0  ;;  %v4615_v21 = vld [vmem:[#allocation41 + $0xd0] sm:$0xff] }
0x138c   :  { %v4351_v23 = vadd.f32 %v4350_v20, %v4349_v22  ;;  %v8912_v20 = vpack.c.bf16 %v4614_v19, %v4613_v18  ;;  %v4616_v22 = vld [vmem:[#allocation41 + $0xd8] sm:$0xff]  ;;  %v4915_v18 = vld [vmem:[#allocation41 + $0xe8] sm:$0xff] }
0x138e   :  { %v4352_v26 = vrot.slane %v4351_v23, 4 }
0x1390   :  { %v4353_v27 = vadd.f32 %v4352_v26, %v4351_v23  ;;  %v8916_v23 = vpack.c.bf16 %v4616_v22, %v4615_v21  ;;  %v4487_v26 = vld [vmem:[#allocation41 + $0x8] sm:$0xff]  ;;  %v4917_v21 = vld [vmem:[#allocation41 + $0xf8] sm:$0xff] }
0x1392   :  { %v4354_v29 = vrot.slane %v4353_v27, 2 }
0x1394   :  { %v4355_v30 = vadd.f32 %v4354_v29, %v4353_v27  ;;  %v8920_v27 = vpack.c.bf16 %v4487_v26, %v4486_v24  ;;  %v5038_v29 = vld [vmem:[%s11179_s7 + $0x8] sm:$0xff]  ;;  %v4919_v24 = vld [vmem:[#allocation41 + $0x108] sm:$0xff] }
0x1395   :  { %v10822_v31 = vpack.c.bf16 %v5038_v29, %v5037_v28  ;;  %v4921_v28 = vld [vmem:[#allocation41 + $0x118] sm:$0xff] }
0x1396   :  { %v4356_v32 = vrot.slane %v4355_v30, 1 }
0x1398   :  { %v4357_v33 = vadd.f32 %v4356_v32, %v4355_v30  ;;  %v5039_v30 = vld [vmem:[%s11179_s7 + $0x10] sm:$0xff]  ;;  %v5040_v32 = vld [vmem:[%s11179_s7 + $0x18] sm:$0xff] }
0x139a   :  { %v4358_v34 = vmul.f32 0.071428575, %v4357_v33  ;;  %v10825_v33 = vpack.c.bf16 %v5040_v32, %v5039_v30  ;;  %v4922_v30 = vld [vmem:[#allocation41 + $0x120] sm:$0xff]  ;;  %v4923_v32 = vld [vmem:[#allocation41 + $0x128] sm:$0xff] }
0x139c   :  { %v4360_v39 = vsub.f32 %v4358_v34, %v4359_v35  ;;  %v5041_v34 = vld [vmem:[%s11179_s7 + $0x20] sm:$0xff]  ;;  %v5042_v35 = vld [vmem:[%s11179_s7 + $0x28] sm:$0xff] }
0x139e   :  { %v4363_v45 = vadd.f32 1e-05, %v4360_v39  ;;  %v10832_v39 = vpack.c.bf16 %v5042_v35, %v5041_v34  ;;  %v8970_v34 = vpack.c.bf16 %v4923_v32, %v4922_v30  ;;  %v4924_v35 = vld [vmem:[#allocation41 + $0x130] sm:$0xff] }
0x13a0   :  { %9222 = vrsqrt.f32 %v4363_v45  ;;  %v5043_v45 = vld [vmem:[%s11179_s7 + $0x30] sm:$0xff] }
0x13aa   :  { %v9223_v38 = vpop.eup %9222 }
0x13ab   :  { %v4365_v49 = vmul.f32 %v9223_v38, %v4361_v48  ;;  %v4366_v52 = vmul.f32 %v9223_v38, %v4362_v53  ;;  %v5045_v53 = vld [vmem:[%s11179_s7 + $0x40] sm:$0xff]  ;;  %v5046_v38 = vld [vmem:[%s11179_s7 + $0x48] sm:$0xff] }
0x13ad   :  { %v4371_v54 = vmul.f32 %v4370_v47, %v4365_v49  ;;  %v4372_v55 = vmul.f32 %v4370_v47, %v4366_v52  ;;  %v5044_v47 = vld [vmem:[%s11179_s7 + $0x38] sm:$0xff]  ;;  %v5047_v49 = vld [vmem:[%s11179_s7 + $0x50] sm:$0xff] }
0x13ae   :  { %v10838_v48 = vpack.c.bf16 %v5044_v47, %v5043_v45  ;;  %v5048_v52 = vld [vmem:[%s11179_s7 + $0x58] sm:$0xff]  ;;  %v4925_v45 = vld [vmem:[#allocation41 + $0x138] sm:$0xff] }
0x13af   :  { %v4377_v41 = vadd.f32 %v4376_v46, %v4371_v54  ;;  %v4378_v56 = vadd.f32 %v4376_v46, %v4372_v55  ;;  %v10844_v46 = vpack.c.bf16 %v5046_v38, %v5045_v53  ;;  %v10850_v54 = vpack.c.bf16 %v5048_v52, %v5047_v49  ;;  %v4488_v55 = vld [vmem:[#allocation41 + $0x10] sm:$0xff]  ;;  %v4926_v53 = vld [vmem:[#allocation41 + $0x140] sm:$0xff]  ;;  %v4927_v38 = vld [vmem:[#allocation41 + $0x148] sm:$0xff] }
0x13b0   :  { %v8974_v47 = vpack.c.bf16 %v4925_v45, %v4924_v35  ;;  %v8978_v49 = vpack.c.bf16 %v4927_v38, %v4926_v53  ;;  %v5049_v52 = vld [vmem:[%s11179_s7 + $0x60] sm:$0xff] }
0x13b1   :  { %v4379_v51 = vmax.f32 %v4377_v41, 0.0  ;;  %v4380_v58 = vmax.f32 %v4378_v56, 0.0  ;;  %v4489_v41 = vld [vmem:[#allocation41 + $0x18] sm:$0xff] }
0x13b3   :  { %v8880_v59 = vpack.c.bf16 %v4380_v58, %v4379_v51  ;;  %v8924_v51 = vpack.c.bf16 %v4489_v41, %v4488_v55  ;;  %v5050_v55 = vld [vmem:[%s11179_s7 + $0x68] sm:$0xff] }
0x13b4   :  { %v9006_v41 = vpack.c.bf16 %v5050_v55, %v5049_v52 }
0x13b5   :  { %8882 = vmatprep.subr.msk.bf16.mxu1 %vm10574_vm9, %v8880_v59  ;;  %8888 = vmatprep.subr.msk.bf16.mxu0 %vm10574_vm9, %v8880_v59 }
0x13b6   :  { %8885 = vmatpush3.bf16.msk.msra.mxu1 %vm10574_vm9, %v8880_v59  ;;  %8891 = vmatpush3.bf16.msk.msra.mxu0 %vm10574_vm9, %v8880_v59 }
0x13b7   :  { %8950 = vmatprep.subr.msk.bf16.mxu0 %vm10574_vm9, %v8880_v59  ;;  %8893 = vmatprep.subr.bf16.mxu1 %v8892_v60 }
0x13b9   :  { %7869 = vmatmul.mubr.msk.f32.vlgmr.msra.gmra.mrb[38].mxu0 %vm1934_vm10, %v4502_v63  ;;  %7859 = vmatmul.mubr.msk.f32.vlgmr.msra.gmra.mrb[38].mxu1 %vm1934_vm10, %v4383_v1 }
0x13ba   :  { %8953 = vmatpush3.bf16.msk.msra.mxu0 %vm10574_vm9, %v8880_v59  ;;  %7871 = vmatprep.mubr.msk.f32.mxu0 %vm1934_vm10, %v4503_v3  ;;  %v4490_v59 = vld [vmem:[#allocation41 + $0x20] sm:$0xff] }
0x13bb   :  { %7861 = vmatprep.mubr.msk.f32.mxu1 %vm1934_vm10, %v4384_v4  ;;  %8895 = vmatpush3.bf16.msra.mxu1 %v8892_v60  ;;  %v4491_v60 = vld [vmem:[#allocation41 + $0x28] sm:$0xff]  ;;  %v4492_v4 = vld [vmem:[#allocation41 + $0x30] sm:$0xff] }
0x13bc   :  { %8897 = vmatprep.subr.bf16.mxu1 %v8896_v6  ;;  %8983 = vmatprep.subr.bf16.mxu0 %v10822_v31  ;;  %v8928_v63 = vpack.c.bf16 %v4491_v60, %v4490_v59 }
0x13bd   :  { %7872 = vmatmul.mubr.msk.f32.gmra.mrb[40].mxu0 %vm1934_vm10, %v4504_v10  ;;  %7862 = vmatmul.mubr.msk.f32.gmra.mrb[40].mxu1 %vm1934_vm10, %v4385_v0  ;;  %v4494_v0 = vld [vmem:[#allocation41 + $0x40] sm:$0xff] }
0x13be   :  { %7946 = vmatprep.mubr.msk.f32.mxu0 %vm1934_vm10, %v4812_v2  ;;  %v4495_v2 = vld [vmem:[#allocation41 + $0x48] sm:$0xff] }
0x13bf   :  { %8899 = vmatpush3.bf16.msra.mxu1 %v8896_v6  ;;  %v4493_v6 = vld [vmem:[#allocation41 + $0x38] sm:$0xff]  ;;  %v8936_v8 = vpack.c.bf16 %v4495_v2, %v4494_v0 }
0x13c0   :  { %8901 = vmatprep.subr.bf16.mxu1 %v8900_v5  ;;  %v8932_v9 = vpack.c.bf16 %v4493_v6, %v4492_v4 }
0x13c1   :  { %7947 = vmatmul.mubr.msk.f32.vlgmr.msra.gmra.mrb[42].mxu0 %vm1934_vm10, %v4813_v57  ;;  %v4496_v57 = vld [vmem:[#allocation41 + $0x50] sm:$0xff] }
0x13c2   :  { %7949 = vmatprep.mubr.msk.f32.mxu0 %vm1934_vm10, %v4814_v13  ;;  %8985 = vmatpush3.bf16.msra.mxu0 %v10822_v31  ;;  %v4497_v13 = vld [vmem:[#allocation41 + $0x58] sm:$0xff] }
0x13c3   :  { %8903 = vmatpush3.bf16.msra.mxu1 %v8900_v5  ;;  %8987 = vmatprep.subr.bf16.mxu0 %v10825_v33 }
0x13c4   :  { %8905 = vmatprep.subr.bf16.mxu1 %v8904_v11 }
0x13c5   :  { %7950 = vmatmul.mubr.msk.f32.gmra.mrb[44].mxu0 %vm1934_vm10, %v4815_v14  ;;  %v8944_v14 = vpack.c.bf16 %v4499_v16, %v4498_v15 }
0x13c6   :  { %8989 = vmatpush3.bf16.msra.mxu0 %v10825_v33 }
0x13c7   :  { %8907 = vmatpush3.bf16.msra.mxu1 %v8904_v11  ;;  %8991 = vmatprep.subr.bf16.mxu0 %v10832_v39  ;;  %v8940_v11 = vpack.c.bf16 %v4497_v13, %v4496_v57 }
0x13c8   :  { %8909 = vmatprep.subr.bf16.mxu1 %v8908_v17 }
0x13ca   :  { %8993 = vmatpush3.bf16.msra.mxu0 %v10832_v39 }
0x13cb   :  { %8911 = vmatpush3.bf16.msra.mxu1 %v8908_v17  ;;  %8995 = vmatprep.subr.bf16.mxu0 %v10838_v48  ;;  %v4914_v17 = vld [vmem:[#allocation41 + $0xe0] sm:$0xff] }
0x13cc   :  { %8913 = vmatprep.subr.bf16.mxu1 %v8912_v20  ;;  %v8954_v19 = vpack.c.bf16 %v4915_v18, %v4914_v17 }
0x13ce   :  { %8997 = vmatpush3.bf16.msra.mxu0 %v10838_v48 }
0x13cf   :  { %8915 = vmatpush3.bf16.msra.mxu1 %v8912_v20  ;;  %8999 = vmatprep.subr.bf16.mxu0 %v10844_v46  ;;  %v4916_v20 = vld [vmem:[#allocation41 + $0xf0] sm:$0xff] }
0x13d0   :  { %8917 = vmatprep.subr.bf16.mxu1 %v8916_v23  ;;  %v8958_v22 = vpack.c.bf16 %v4917_v21, %v4916_v20 }
0x13d2   :  { %9001 = vmatpush3.bf16.msra.mxu0 %v10844_v46 }
0x13d3   :  { %8919 = vmatpush3.bf16.msra.mxu1 %v8916_v23  ;;  %9003 = vmatprep.subr.bf16.mxu0 %v10850_v54  ;;  %v4918_v23 = vld [vmem:[#allocation41 + $0x100] sm:$0xff] }
0x13d4   :  { %8921 = vmatprep.subr.bf16.mxu1 %v8920_v27  ;;  %v8962_v26 = vpack.c.bf16 %v4919_v24, %v4918_v23 }
0x13d6   :  { %9005 = vmatpush3.bf16.msra.mxu0 %v10850_v54 }
0x13d7   :  { %9007 = vmatprep.subr.bf16.mxu0 %v9006_v41 }
0x13da   :  { %9009 = vmatpush3.bf16.msra.mxu0 %v9006_v41 }
0x13db   :  { %9011 = vmatprep.subr.bf16.mxu0 %v10822_v31 }
0x148c   :  { %v7870_v56 = vpop.f32.mrb[38].mxu0  ;;  %v7860_v50 = vpop.f32.mrb[38].mxu1 }
0x148d   :  { %v4583_v44 = vpop.f32.mrb[39].mxu0  ;;  %v4467_v58 = vpop.f32.mrb[39].mxu1 }
0x148e   :  { %7902 = vmatprep.mubr.msk.f32.mxu1 %vm1359_vm5, %v4583_v44 }
0x148f   :  { %7903 = vmatmul.mubr.msk.f32.vlgmr.msra.gmra.mrb[42].mxu1 %vm1359_vm5, %v7870_v56  ;;  %v10876_v56 = vld [vmem:[#allocation43] sm:$0x7] }
0x1490   :  { %8923 = vmatpush3.bf16.msra.mxu1 %v8920_v27  ;;  %v7873_v61 = vpop.f32.mrb[40].mxu0  ;;  %v7863_v62 = vpop.f32.mrb[40].mxu1  ;;  %v4920_v27 = vld [vmem:[#allocation41 + $0x110] sm:$0xff]  ;;  %v5294_v53 = vrot.slane %v10876_v56, %v10561_v36 }
0x1491   :  { %8925 = vmatprep.subr.bf16.mxu1 %v8924_v51  ;;  %v4593_v1 = vpop.f32.mrb[41].mxu0  ;;  %v4477_v3 = vpop.f32.mrb[41].mxu1  ;;  %v8966_v29 = vpack.c.bf16 %v4921_v28, %v4920_v27 }
0x1492   :  { %7905 = vmatprep.mubr.msk.f32.mxu1 %vm1359_vm5, %v4593_v1 }
0x1493   :  { %7906 = vmatmul.mubr.msk.f32.gmra.mrb[44].mxu1 %vm1359_vm5, %v7873_v61 }
0x1494   :  { %8927 = vmatpush3.bf16.msra.mxu1 %v8924_v51  ;;  %7936 = vmatprep.mubr.msk.f32.mxu1 %vm1359_vm5, %v4467_v58  ;;  %v10860_v7 = vpop.f32.mrb[42].mxu0 }
0x1495   :  { %8929 = vmatprep.subr.bf16.mxu1 %v8928_v63  ;;  %v4894_v10 = vpop.f32.mrb[43].mxu0 }
0x1498   :  { %8931 = vmatpush3.bf16.msra.mxu1 %v8928_v63  ;;  %v7951_v5 = vpop.f32.mrb[44].mxu0 }
0x1499   :  { %8933 = vmatprep.subr.bf16.mxu1 %v8932_v9  ;;  %v4904_v12 = vpop.f32.mrb[45].mxu0 }
0x149c   :  { %8935 = vmatpush3.bf16.msra.mxu1 %v8932_v9 }
0x149d   :  { %8937 = vmatprep.subr.bf16.mxu1 %v8936_v8 }
0x14a0   :  { %8939 = vmatpush3.bf16.msra.mxu1 %v8936_v8 }
0x14a1   :  { %8941 = vmatprep.subr.bf16.mxu1 %v8940_v11 }
0x14a4   :  { %8943 = vmatpush3.bf16.msra.mxu1 %v8940_v11 }
0x14a5   :  { %8945 = vmatprep.subr.bf16.mxu1 %v8944_v14 }
0x14a8   :  { %8947 = vmatpush3.bf16.msra.mxu1 %v8944_v14 }
0x14a9   :  { %8955 = vmatprep.subr.bf16.mxu1 %v8954_v19 }
0x14ab   :  { %7937 = vmatmul.mubr.msk.f32.vlgmr.msra.gmra.mrb[42].mxu1 %vm1359_vm5, %v7860_v50  ;;  %v5032_v50 = vrot.slane %v10876_v56, %v10512_v42 }
0x14ac   :  { %8957 = vmatpush3.bf16.msra.mxu1 %v8954_v19  ;;  %7939 = vmatprep.mubr.msk.f32.mxu1 %vm1359_vm5, %v4477_v3 }
0x14ad   :  { %8959 = vmatprep.subr.bf16.mxu1 %v8958_v22 }
0x14af   :  { %7940 = vmatmul.mubr.msk.f32.gmra.mrb[44].mxu1 %vm1359_vm5, %v7863_v62 }
0x14b0   :  { %8961 = vmatpush3.bf16.msra.mxu1 %v8958_v22  ;;  %7980 = vmatprep.mubr.msk.f32.mxu1 %vm1359_vm5, %v4894_v10 }
0x14b1   :  { %8963 = vmatprep.subr.bf16.mxu1 %v8962_v26 }
0x14b4   :  { %8965 = vmatpush3.bf16.msra.mxu1 %v8962_v26 }
0x14b5   :  { %8967 = vmatprep.subr.bf16.mxu1 %v8966_v29 }
0x14b8   :  { %8969 = vmatpush3.bf16.msra.mxu1 %v8966_v29 }
0x14b9   :  { %8971 = vmatprep.subr.bf16.mxu1 %v8970_v34 }
0x14bc   :  { %8973 = vmatpush3.bf16.msra.mxu1 %v8970_v34 }
0x14bd   :  { %8975 = vmatprep.subr.bf16.mxu1 %v8974_v47 }
0x14c0   :  { %8977 = vmatpush3.bf16.msra.mxu1 %v8974_v47 }
0x14c1   :  { %8979 = vmatprep.subr.bf16.mxu1 %v8978_v49 }
0x14c4   :  { %8981 = vmatpush3.bf16.msra.mxu1 %v8978_v49 }
0x14c5   :  { %9045 = vmatprep.subr.bf16.mxu1 %v10012_v40 }
0x14c7   :  { %7981 = vmatmul.mubr.msk.f32.vlgmr.msra.gmra.mrb[42].mxu1 %vm1359_vm5, %v10860_v7 }
0x14c8   :  { %7983 = vmatprep.mubr.msk.f32.mxu1 %vm1359_vm5, %v4904_v12 }
0x14cb   :  { %7984 = vmatmul.mubr.msk.f32.gmra.mrb[44].mxu1 %vm1359_vm5, %v7951_v5 }
0x14cc   :  { %8091 = vmatprep.mubr.msk.f32.mxu1 %vm10013_vm6, %v10014_v43 }
0x159a   :  { %v7982_v44 = vpop.f32.mrb[42].mxu1 }
0x159b   :  { %v5006_v51 = vpop.f32.mrb[43].mxu1  ;;  %v10882_v59 = vadd.f32 %v7982_v44, %v5032_v50 }
0x159c   :  { %v10880_v58 = vadd.f32 %v5032_v50, %v5006_v51 }
0x159e   :  { %v7985_v60 = vpop.f32.mrb[44].mxu1  ;;  %8014 = vmatprep.mubr.msk.f32.mxu0 %vm1359_vm5, %v10880_v58  ;;  %v5164_v42 = vmul.f32 %v10880_v58, %v10880_v58 }
0x159f   :  { %v5016_v61 = vpop.f32.mrb[45].mxu1  ;;  %8015 = vmatmul.mubr.msk.f32.vlgmr.msra.gmra.mrb[46].mxu0 %vm1359_vm5, %v10882_v59  ;;  %v10891_v63 = vadd.f32 %v7985_v60, %v5032_v50 }
0x15a0   :  { %v10888_v62 = vadd.f32 %v5032_v50, %v5016_v61  ;;  %9013 = vmatpush3.bf16.msra.mxu0 %v10822_v31  ;;  %v5165_v31 = vmul.f32 %v10882_v59, %v10882_v59  ;;  %v5302_v50 = vrot.slane %v10876_v56, %v10564_v37  ;;  %v5587_v37 = vld [vmem:[#allocation46 + $0x70] sm:$0xff]  ;;  %v5588_v56 = vld [vmem:[#allocation46 + $0x78] sm:$0xff] }
0x15a1   :  { %9015 = vmatprep.subr.bf16.mxu0 %v10825_v33 }
0x15a2   :  { %8017 = vmatprep.mubr.msk.f32.mxu0 %vm1359_vm5, %v10888_v62 }
0x15a3   :  { %8018 = vmatmul.mubr.msk.f32.gmra.mrb[48].mxu0 %vm1359_vm5, %v10891_v63 }
0x15a4   :  { %9017 = vmatpush3.bf16.msra.mxu0 %v10825_v33  ;;  %8048 = vmatprep.mubr.msk.f32.mxu0 %vm1359_vm5, %v5164_v42  ;;  %v5166_v33 = vmul.f32 %v10888_v62, %v10888_v62 }
0x15a5   :  { %9019 = vmatprep.subr.bf16.mxu0 %v10832_v39 }
0x15a8   :  { %9021 = vmatpush3.bf16.msra.mxu0 %v10832_v39  ;;  %v5167_v39 = vmul.f32 %v10891_v63, %v10891_v63 }
0x15a9   :  { %9023 = vmatprep.subr.bf16.mxu0 %v10838_v48 }
0x15ac   :  { %9025 = vmatpush3.bf16.msra.mxu0 %v10838_v48 }
0x15ad   :  { %9027 = vmatprep.subr.bf16.mxu0 %v10844_v46 }
0x15b0   :  { %9029 = vmatpush3.bf16.msra.mxu0 %v10844_v46 }
0x15b1   :  { %9031 = vmatprep.subr.bf16.mxu0 %v10850_v54 }
0x15b4   :  { %9033 = vmatpush3.bf16.msra.mxu0 %v10850_v54 }
0x15b5   :  { %9035 = vmatprep.subr.bf16.mxu0 %v9006_v41 }
0x15b8   :  { %9037 = vmatpush3.bf16.msra.mxu0 %v9006_v41 }
0x15b9   :  { %9038 = vmatprep.subr.bf16.mxu0 %v10012_v40 }
0x15bb   :  { %8049 = vmatmul.mubr.msk.f32.vlgmr.msra.gmra.mrb[50].mxu0 %vm1359_vm5, %v5165_v31 }
0x15bc   :  { %8051 = vmatprep.mubr.msk.f32.mxu0 %vm1359_vm5, %v5166_v33 }
0x15bf   :  { %8052 = vmatmul.mubr.msk.f32.gmra.mrb[52].mxu0 %vm1359_vm5, %v5167_v39 }
0x15c0   :  { %8062 = vmatprep.mubr.msk.f32.mxu0 %vm10013_vm6, %v10014_v43 }
0x1672   :  { %v8016_v48 = vpop.f32.mrb[46].mxu0 }
0x1673   :  { %v5149_v46 = vsel %vm1359_vm5, %v8016_v48, 0.0  ;;  %v5129_v54 = vpop.f32.mrb[47].mxu0 }
0x1674   :  { %v5148_v1 = vsel %vm1359_vm5, %v5129_v54, 0.0 }
0x1675   :  { %v5150_v3 = vadd.f32 %v5149_v46, %v5148_v1 }
0x1676   :  { %v8019_v4 = vpop.f32.mrb[48].mxu0 }
0x1677   :  { %v5139_v6 = vpop.f32.mrb[49].mxu0  ;;  %v5154_v10 = vsel %vm5153_vm0, %v8019_v4, 0.0  ;;  %v5443_v4 = vld [vmem:[#allocation46] sm:$0xff] }
0x1678   :  { %v5151_v7 = vsel %vm1359_vm5, %v5139_v6, 0.0  ;;  %v5444_v6 = vld [vmem:[#allocation46 + $0x8] sm:$0xff] }
0x1679   :  { %v5152_v9 = vadd.f32 %v5151_v7, %v5150_v3  ;;  %v5458_v7 = vld [vmem:[#allocation44 + $0x38] sm:$0xff] }
0x167b   :  { %v5155_v0 = vadd.f32 %v5154_v10, %v5152_v9  ;;  %v5312_v9 = vld [vmem:[#allocation44] sm:$0xff]  ;;  %v9053_v10 = vpack.c.bf16 %v5588_v56, %v5587_v37 }
0x167d   :  { %v5156_v2 = vrot.slane %v5155_v0, 4 }
0x167f   :  { %v5157_v5 = vadd.f32 %v5156_v2, %v5155_v0  ;;  %v5589_v0 = vld [vmem:[#allocation46 + $0x80] sm:$0xff]  ;;  %v9074_v2 = vpack.c.bf16 %v5444_v6, %v5443_v4 }
0x1681   :  { %v5158_v11 = vrot.slane %v5157_v5, 2 }
0x1683   :  { %v5159_v18 = vadd.f32 %v5158_v11, %v5157_v5  ;;  %v5590_v5 = vld [vmem:[#allocation46 + $0x88] sm:$0xff] }
0x1684   :  { %v9056_v11 = vpack.c.bf16 %v5590_v5, %v5589_v0 }
0x1685   :  { %v5160_v22 = vrot.slane %v5159_v18, 1 }
0x1687   :  { %v5161_v26 = vadd.f32 %v5160_v22, %v5159_v18  ;;  %v5448_v18 = vld [vmem:[#allocation46 + $0x28] sm:$0xff]  ;;  %v5593_v22 = vld [vmem:[#allocation46 + $0xa0] sm:$0xff] }
0x1689   :  { %v5163_v29 = vmul.f32 0.035714287, %v5161_v26  ;;  %v5449_v26 = vld [vmem:[#allocation46 + $0x30] sm:$0xff] }
0x168b   :  { %v5279_v35 = vmul.f32 %v5163_v29, %v5163_v29  ;;  %v5281_v38 = vsub.f32 %v10880_v58, %v5163_v29  ;;  %v5282_v49 = vsub.f32 %v10882_v59, %v5163_v29  ;;  %v5283_v52 = vsub.f32 %v10888_v62, %v5163_v29 }
0x168c   :  { %v5284_v55 = vsub.f32 %v10891_v63, %v5163_v29  ;;  %v5315_v29 = vld [vmem:[#allocation44 + $0x18] sm:$0xff] }
0x168e   :  { %v8050_v8 = vpop.f32.mrb[50].mxu0 }
0x168f   :  { %v5266_v12 = vsel %vm1359_vm5, %v8050_v8, 0.0  ;;  %v5246_v57 = vpop.f32.mrb[51].mxu0  ;;  %v5445_v8 = vld [vmem:[#allocation46 + $0x10] sm:$0xff] }
0x1690   :  { %v5265_v13 = vsel %vm1359_vm5, %v5246_v57, 0.0  ;;  %v5459_v57 = vld [vmem:[#allocation44 + $0x40] sm:$0xff] }
0x1691   :  { %v5267_v15 = vadd.f32 %v5266_v12, %v5265_v13  ;;  %v5446_v12 = vld [vmem:[#allocation46 + $0x18] sm:$0xff]  ;;  %v5313_v13 = vld [vmem:[#allocation44 + $0x8] sm:$0xff] }
0x1692   :  { %v8053_v16 = vpop.f32.mrb[52].mxu0 }
0x1693   :  { %v5256_v14 = vpop.f32.mrb[53].mxu0  ;;  %v5270_v20 = vsel %vm5153_vm0, %v8053_v16, 0.0  ;;  %v9077_v16 = vpack.c.bf16 %v5446_v12, %v5445_v8 }
0x1694   :  { %v5268_v17 = vsel %vm1359_vm5, %v5256_v14, 0.0  ;;  %v5592_v14 = vld [vmem:[#allocation46 + $0x98] sm:$0xff] }
0x1695   :  { %v5269_v19 = vadd.f32 %v5268_v17, %v5267_v15  ;;  %v5591_v15 = vld [vmem:[#allocation46 + $0x90] sm:$0xff]  ;;  %v5447_v17 = vld [vmem:[#allocation46 + $0x20] sm:$0xff] }
0x1697   :  { %v5271_v21 = vadd.f32 %v5270_v20, %v5269_v19  ;;  %v5460_v19 = vld [vmem:[#allocation44 + $0x48] sm:$0xff]  ;;  %v5314_v20 = vld [vmem:[#allocation44 + $0x10] sm:$0xff] }
0x1699   :  { %v5272_v23 = vrot.slane %v5271_v21, 4 }
0x169b   :  { %v5273_v24 = vadd.f32 %v5272_v23, %v5271_v21  ;;  %v9059_v21 = vpack.c.bf16 %v5592_v14, %v5591_v15  ;;  %v9080_v23 = vpack.c.bf16 %v5448_v18, %v5447_v17 }
0x169d   :  { %v5274_v27 = vrot.slane %v5273_v24, 2 }
0x169f   :  { %v5275_v28 = vadd.f32 %v5274_v27, %v5273_v24  ;;  %v5594_v24 = vld [vmem:[#allocation46 + $0xa8] sm:$0xff]  ;;  %v5450_v27 = vld [vmem:[#allocation46 + $0x38] sm:$0xff] }
0x16a1   :  { %v5276_v30 = vrot.slane %v5275_v28, 1 }
0x16a3   :  { %v5277_v32 = vadd.f32 %v5276_v30, %v5275_v28  ;;  %v5461_v28 = vld [vmem:[#allocation44 + $0x50] sm:$0xff]  ;;  %v9062_v30 = vpack.c.bf16 %v5594_v24, %v5593_v22  ;;  %v5845_v22 = vld [vmem:[#allocation44 + $0x78] sm:$0xff]  ;;  %v5847_v24 = vld [vmem:[#allocation44 + $0x88] sm:$0xff] }
0x16a5   :  { %v5278_v34 = vmul.f32 0.035714287, %v5277_v32  ;;  %v5595_v32 = vld [vmem:[#allocation46 + $0xb0] sm:$0xff] }
0x16a7   :  { %v5280_v45 = vsub.f32 %v5278_v34, %v5279_v35  ;;  %v9083_v34 = vpack.c.bf16 %v5450_v27, %v5449_v26  ;;  %v5596_v35 = vld [vmem:[#allocation46 + $0xb8] sm:$0xff]  ;;  %v5848_v26 = vld [vmem:[#allocation44 + $0x90] sm:$0xff]  ;;  %v5849_v27 = vld [vmem:[#allocation44 + $0x98] sm:$0xff] }
0x16a9   :  { %v5285_v47 = vadd.f32 1e-05, %v5280_v45  ;;  %v5451_v45 = vld [vmem:[#allocation46 + $0x40] sm:$0xff] }
0x16ab   :  { %9224 = vrsqrt.f32 %v5285_v47  ;;  %v5452_v47 = vld [vmem:[#allocation46 + $0x48] sm:$0xff] }
0x16b5   :  { %v9225_v41 = vpop.eup %9224 }
0x16b6   :  { %v5287_v44 = vmul.f32 %v9225_v41, %v5281_v38  ;;  %v5288_v51 = vmul.f32 %v9225_v41, %v5282_v49  ;;  %v5289_v60 = vmul.f32 %v9225_v41, %v5283_v52  ;;  %v5290_v61 = vmul.f32 %v9225_v41, %v5284_v55  ;;  %v5316_v38 = vld [vmem:[#allocation44 + $0x20] sm:$0xff]  ;;  %v5597_v52 = vld [vmem:[#allocation46 + $0xc0] sm:$0xff]  ;;  %v5598_v41 = vld [vmem:[#allocation46 + $0xc8] sm:$0xff] }
0x16b7   :  { %v9065_v49 = vpack.c.bf16 %v5596_v35, %v5595_v32  ;;  %v9086_v55 = vpack.c.bf16 %v5452_v47, %v5451_v45  ;;  %v5976_v35 = vld [vmem:[#allocation46 + $0xf8] sm:$0xff]  ;;  %v5977_v47 = vld [vmem:[#allocation46 + $0x100] sm:$0xff] }
0x16b8   :  { %v5295_v42 = vmul.f32 %v5294_v53, %v5287_v44  ;;  %v5296_v31 = vmul.f32 %v5294_v53, %v5288_v51  ;;  %v5297_v33 = vmul.f32 %v5294_v53, %v5289_v60  ;;  %v5298_v36 = vmul.f32 %v5294_v53, %v5290_v61  ;;  %v5462_v53 = vld [vmem:[#allocation44 + $0x58] sm:$0xff]  ;;  %v5454_v44 = vld [vmem:[#allocation46 + $0x58] sm:$0xff]  ;;  %v5317_v60 = vld [vmem:[#allocation44 + $0x28] sm:$0xff] }
0x16b9   :  { %v5463_v51 = vld [vmem:[#allocation44 + $0x60] sm:$0xff]  ;;  %v9068_v61 = vpack.c.bf16 %v5598_v41, %v5597_v52  ;;  %v5981_v41 = vld [vmem:[#allocation46 + $0x120] sm:$0xff] }
0x16ba   :  { %v5303_v39 = vadd.f32 %v5302_v50, %v5295_v42  ;;  %v5304_v58 = vadd.f32 %v5302_v50, %v5296_v31  ;;  %v5305_v48 = vadd.f32 %v5302_v50, %v5297_v33  ;;  %v5306_v59 = vadd.f32 %v5302_v50, %v5298_v36  ;;  %v5453_v50 = vld [vmem:[#allocation46 + $0x50] sm:$0xff]  ;;  %v5600_v33 = vld [vmem:[#allocation46 + $0xd8] sm:$0xff]  ;;  %v5464_v36 = vld [vmem:[#allocation44 + $0x68] sm:$0xff] }
0x16bb   :  { %v9089_v42 = vpack.c.bf16 %v5454_v44, %v5453_v50  ;;  %v5599_v31 = vld [vmem:[#allocation46 + $0xd0] sm:$0xff]  ;;  %v5980_v52 = vld [vmem:[#allocation46 + $0x118] sm:$0xff]  ;;  %v5982_v50 = vld [vmem:[#allocation46 + $0x128] sm:$0xff] }
0x16bc   :  { %v5307_v46 = vmax.f32 %v5303_v39, 0.0  ;;  %v5308_v62 = vmax.f32 %v5304_v58, 0.0  ;;  %v5309_v54 = vmax.f32 %v5305_v48, 0.0  ;;  %v5310_v63 = vmax.f32 %v5306_v59, 0.0  ;;  %v5318_v39 = vld [vmem:[#allocation44 + $0x30] sm:$0xff]  ;;  %v5455_v48 = vld [vmem:[#allocation46 + $0x60] sm:$0xff] }
0x16bd   :  { %v9071_v58 = vpack.c.bf16 %v5600_v33, %v5599_v31  ;;  %v5456_v59 = vld [vmem:[#allocation46 + $0x68] sm:$0xff]  ;;  %v9114_v44 = vpack.c.bf16 %v5982_v50, %v5981_v41 }
0x16be   :  { %v10938_v1 = vpack.c.bf16 %v5308_v62, %v5307_v46  ;;  %v10940_v3 = vpack.c.bf16 %v5310_v63, %v5309_v54  ;;  %v9092_v46 = vpack.c.bf16 %v5456_v59, %v5455_v48  ;;  %v5986_v31 = vld [vmem:[#allocation46 + $0x148] sm:$0xff] }
0x16c0   :  { %9040 = vmatpush3.bf16.msra.mxu0 %v10938_v1  ;;  %9047 = vmatpush3.bf16.msra.mxu1 %v10938_v1 }
0x16c1   :  { %9041 = vmatprep.subr.bf16.mxu0 %v10012_v40  ;;  %9048 = vmatprep.subr.bf16.mxu1 %v10012_v40 }
0x16c4   :  { %9044 = vmatpush3.bf16.msk.msra.mxu0 %vm10427_vm3, %v10940_v3  ;;  %9051 = vmatpush3.bf16.msk.msra.mxu1 %vm10427_vm3, %v10940_v3 }
0x16c5   :  { %9052 = vmatprep.subr.bf16.mxu0 %v10012_v40  ;;  %9073 = vmatprep.subr.bf16.mxu1 %v10012_v40 }
0x16c7   :  { %8092 = vmatmul.mubr.msk.f32.vlgmr.msra.gmra.mrb[46].mxu1 %vm732_vm4, %v5458_v7  ;;  %8063 = vmatmul.mubr.msk.f32.vlgmr.msra.gmra.mrb[54].mxu0 %vm732_vm4, %v5312_v9 }
0x16c8   :  { %8094 = vmatprep.mubr.msk.f32.mxu1 %vm10013_vm6, %v10014_v43  ;;  %8065 = vmatprep.mubr.msk.f32.mxu0 %vm10013_vm6, %v10014_v43 }
0x16c9   :  { %9054 = vmatpush3.bf16.msra.mxu0 %v9053_v10  ;;  %9075 = vmatpush3.bf16.msra.mxu1 %v9074_v2 }
0x16ca   :  { %9055 = vmatprep.subr.bf16.mxu0 %v10012_v40  ;;  %9076 = vmatprep.subr.bf16.mxu1 %v10012_v40 }
0x16cb   :  { %8095 = vmatmul.mubr.msk.f32.gmra.mrb[48].mxu1 %vm732_vm4, %v5459_v57  ;;  %8066 = vmatmul.mubr.msk.f32.gmra.mrb[56].mxu0 %vm732_vm4, %v5313_v13 }
0x16cc   :  { %8097 = vmatprep.mubr.msk.f32.mxu1 %vm10013_vm6, %v10014_v43  ;;  %8068 = vmatprep.mubr.msk.f32.mxu0 %vm10013_vm6, %v10014_v43 }
0x16cd   :  { %9057 = vmatpush3.bf16.msra.mxu0 %v9056_v11  ;;  %9078 = vmatpush3.bf16.msra.mxu1 %v9077_v16 }
0x16ce   :  { %9058 = vmatprep.subr.bf16.mxu0 %v10012_v40  ;;  %9079 = vmatprep.subr.bf16.mxu1 %v10012_v40 }
0x16cf   :  { %8098 = vmatmul.mubr.msk.f32.gmra.mrb[50].mxu1 %vm732_vm4, %v5460_v19  ;;  %8069 = vmatmul.mubr.msk.f32.gmra.mrb[58].mxu0 %vm732_vm4, %v5314_v20 }
0x16d0   :  { %8100 = vmatprep.mubr.msk.f32.mxu1 %vm10013_vm6, %v10014_v43  ;;  %8071 = vmatprep.mubr.msk.f32.mxu0 %vm10013_vm6, %v10014_v43 }
0x16d1   :  { %9060 = vmatpush3.bf16.msra.mxu0 %v9059_v21  ;;  %9081 = vmatpush3.bf16.msra.mxu1 %v9080_v23  ;;  %v5844_v21 = vld [vmem:[#allocation44 + $0x70] sm:$0xff]  ;;  %v5846_v23 = vld [vmem:[#allocation44 + $0x80] sm:$0xff] }
0x16d2   :  { %9061 = vmatprep.subr.bf16.mxu0 %v10012_v40  ;;  %9082 = vmatprep.subr.bf16.mxu1 %v10012_v40 }
0x16d3   :  { %8101 = vmatmul.mubr.msk.f32.gmra.mrb[52].mxu1 %vm732_vm4, %v5461_v28  ;;  %8072 = vmatmul.mubr.msk.f32.gmra.mrb[60].mxu0 %vm732_vm4, %v5315_v29  ;;  %v5850_v28 = vld [vmem:[#allocation44 + $0xa0] sm:$0xff]  ;;  %v5973_v29 = vld [vmem:[#allocation46 + $0xe0] sm:$0xff] }
0x16d4   :  { %8103 = vmatprep.mubr.msk.f32.mxu1 %vm10013_vm6, %v10014_v43  ;;  %8074 = vmatprep.mubr.msk.f32.mxu0 %vm10013_vm6, %v10014_v43 }
0x16d5   :  { %9063 = vmatpush3.bf16.msra.mxu0 %v9062_v30  ;;  %9084 = vmatpush3.bf16.msra.mxu1 %v9083_v34  ;;  %v5974_v30 = vld [vmem:[#allocation46 + $0xe8] sm:$0xff]  ;;  %v5975_v34 = vld [vmem:[#allocation46 + $0xf0] sm:$0xff] }
0x16d6   :  { %9064 = vmatprep.subr.bf16.mxu0 %v10012_v40  ;;  %9085 = vmatprep.subr.bf16.mxu1 %v10012_v40  ;;  %v9102_v32 = vpack.c.bf16 %v5974_v30, %v5973_v29  ;;  %v9105_v45 = vpack.c.bf16 %v5976_v35, %v5975_v34 }
0x16d7   :  { %8104 = vmatmul.mubr.msk.f32.gmra.mrb[54].mxu1 %vm732_vm4, %v5462_v53  ;;  %8075 = vmatmul.mubr.msk.f32.gmra.mrb[62].mxu0 %vm732_vm4, %v5316_v38  ;;  %v5978_v53 = vld [vmem:[#allocation46 + $0x108] sm:$0xff] }
0x16d8   :  { %8106 = vmatprep.mubr.msk.f32.mxu1 %vm10013_vm6, %v10014_v43  ;;  %8077 = vmatprep.mubr.msk.f32.mxu0 %vm10013_vm6, %v10014_v43  ;;  %v9108_v38 = vpack.c.bf16 %v5978_v53, %v5977_v47  ;;  %v6415_v53 = vld [vmem:[%s10179_s30] ss:$0 sm:$0xff]  ;;  %s10015_s30 = smov [#allocation47]  }
0x16d9   :  { %9066 = vmatpush3.bf16.msra.mxu0 %v9065_v49  ;;  %9087 = vmatpush3.bf16.msra.mxu1 %v9086_v55  ;;  %v5979_v49 = vld [vmem:[#allocation46 + $0x110] sm:$0xff]  ;;  %s6182_s10 = sshll.u32 %s10015_s30, 4  ;;  %s6183_s10 = int_to_ptr.vmem [resolvable:$true] %s6182_s10 }
0x16da   :  { %9067 = vmatprep.subr.bf16.mxu0 %v10012_v40  ;;  %9088 = vmatprep.subr.bf16.mxu1 %v10012_v40  ;;  %v9111_v55 = vpack.c.bf16 %v5980_v52, %v5979_v49  ;;  %s9892_s8 = scalar_lea.vmem %s6183_s10, 896  ;;  %p9897_p9 = scmp.lt.s32.totalorder %s6183_s10, %s6183_s10 }
0x16db   :  { %8107 = vmatmul.mubr.msk.f32.gmra.mrb[56].mxu1 %vm732_vm4, %v5463_v51  ;;  %8078 = vmatmul.mubr.msk.f32.gmra.mrb[64].mxu0 %vm732_vm4, %v5317_v60  ;;  %v5983_v51 = vld [vmem:[#allocation46 + $0x130] sm:$0xff]  ;;  %v5984_v60 = vld [vmem:[#allocation46 + $0x138] sm:$0xff]  ;;  %p9893_p8 = scmp.ne.s32.totalorder %s6183_s10, %s9892_s8  ;;  %p9898_p10 = scmp.lt.s32.totalorder %s9892_s8, %s9892_s8 }
0x16dc   :  { %8109 = vmatprep.mubr.msk.f32.mxu1 %vm10013_vm6, %v10014_v43  ;;  %8080 = vmatprep.mubr.msk.f32.mxu0 %vm10013_vm6, %v10014_v43 }
0x16dd   :  { %9069 = vmatpush3.bf16.msra.mxu0 %v9068_v61  ;;  %9090 = vmatpush3.bf16.msra.mxu1 %v9089_v42  ;;  %v9117_v61 = vpack.c.bf16 %v5984_v60, %v5983_v51  ;;  %v5985_v42 = vld [vmem:[#allocation46 + $0x140] sm:$0xff]  ;;  %p9899_p11 = por %p9898_p10, %p9897_p9 }
0x16de   :  { %9070 = vmatprep.subr.bf16.mxu0 %v10012_v40  ;;  %9091 = vmatprep.subr.bf16.mxu1 %v10012_v40  ;;  %v9120_v33 = vpack.c.bf16 %v5986_v31, %v5985_v42 }
0x16df   :  { %8110 = vmatmul.mubr.msk.f32.gmra.mrb[58].mxu1 %vm732_vm4, %v5464_v36  ;;  %8081 = vmatmul.mubr.msk.f32.gmra.mrb[66].mxu0 %vm732_vm4, %v5318_v39  ;;  %p9900_p12 = pnand %p9899_p11, %p9893_p8 }
0x16e0   :  { %8140 = vmatprep.mubr.msk.f32.mxu0 %vm10013_vm6, %v10014_v43  ;;  %8189 = vmatprep.mubr.msk.f32.mxu1 %vm10013_vm6, %v10014_v43 }
0x16e1   :  { %9072 = vmatpush3.bf16.msra.mxu0 %v9071_v58  ;;  %9093 = vmatpush3.bf16.msra.mxu1 %v9092_v46 }
0x16e2   :  { %9094 = vmatprep.subr.bf16.mxu0 %v10012_v40  ;;  %9101 = vmatprep.subr.bf16.mxu1 %v10012_v40 }
0x179a   :  { %v5552_v62 = vpop.f32.mrb[46].mxu1  ;;  %v5409_v54 = vpop.f32.mrb[54].mxu0 }
0x179b   :  { %8141 = vmatmul.mubr.msk.f32.vlgmr.msra.gmra.mrb[68].mxu0 %vm1359_vm5, %v5552_v62  ;;  %v8093_v63 = vpop.f32.mrb[47].mxu1  ;;  %8190 = vmatmul.mubr.msk.f32.vlgmr.msra.gmra.mrb[60].mxu1 %vm1359_vm5, %v5409_v54  ;;  %v8064_v37 = vpop.f32.mrb[55].mxu0 }
0x179c   :  { %9096 = vmatpush3.bf16.msra.mxu0 %v10938_v1  ;;  %8143 = vmatprep.mubr.msk.f32.mxu0 %vm10013_vm6, %v10014_v43 }
0x179d   :  { %9097 = vmatprep.subr.bf16.mxu0 %v10012_v40  ;;  %8192 = vmatprep.mubr.msk.f32.mxu1 %vm10013_vm6, %v10014_v43 }
0x179e   :  { %v5557_v56 = vpop.f32.mrb[48].mxu1  ;;  %v5414_v4 = vpop.f32.mrb[56].mxu0  ;;  %9103 = vmatpush3.bf16.msra.mxu1 %v9102_v32 }
0x179f   :  { %8144 = vmatmul.mubr.msk.f32.gmra.mrb[70].mxu0 %vm1359_vm5, %v5557_v56  ;;  %v8096_v6 = vpop.f32.mrb[49].mxu1  ;;  %8193 = vmatmul.mubr.msk.f32.gmra.mrb[62].mxu1 %vm1359_vm5, %v5414_v4  ;;  %v8067_v7 = vpop.f32.mrb[57].mxu0 }
0x17a0   :  { %9100 = vmatpush3.bf16.msk.msra.mxu0 %vm10427_vm3, %v10940_v3  ;;  %8146 = vmatprep.mubr.msk.f32.mxu0 %vm10013_vm6, %v10014_v43 }
0x17a1   :  { %8195 = vmatprep.mubr.msk.f32.mxu1 %vm10013_vm6, %v10014_v43  ;;  %9104 = vmatprep.subr.bf16.mxu1 %v10012_v40 }
0x17a2   :  { %v5562_v1 = vpop.f32.mrb[50].mxu1  ;;  %v5419_v9 = vpop.f32.mrb[58].mxu0  ;;  %9106 = vmatpush3.bf16.msra.mxu1 %v9105_v45 }
0x17a3   :  { %8147 = vmatmul.mubr.msk.f32.gmra.mrb[72].mxu0 %vm1359_vm5, %v5562_v1  ;;  %v8099_v10 = vpop.f32.mrb[51].mxu1  ;;  %8196 = vmatmul.mubr.msk.f32.gmra.mrb[64].mxu1 %vm1359_vm5, %v5419_v9  ;;  %v8070_v0 = vpop.f32.mrb[59].mxu0 }
0x17a4   :  { %8149 = vmatprep.mubr.msk.f32.mxu0 %vm10013_vm6, %v10014_v43  ;;  %8198 = vmatprep.mubr.msk.f32.mxu1 %vm10013_vm6, %v10014_v43 }
0x17a5   :  { %9107 = vmatprep.subr.bf16.mxu1 %v10012_v40 }
0x17a6   :  { %v5567_v25 = vpop.f32.mrb[52].mxu1  ;;  %v5424_v3 = vpop.f32.mrb[60].mxu0  ;;  %9109 = vmatpush3.bf16.msra.mxu1 %v9108_v38 }
0x17a7   :  { %8150 = vmatmul.mubr.msk.f32.gmra.mrb[74].mxu0 %vm1359_vm5, %v5567_v25  ;;  %v8102_v2 = vpop.f32.mrb[53].mxu1  ;;  %8199 = vmatmul.mubr.msk.f32.gmra.mrb[66].mxu1 %vm1359_vm5, %v5424_v3  ;;  %v8073_v5 = vpop.f32.mrb[61].mxu0 }
0x17a8   :  { %8152 = vmatprep.mubr.msk.f32.mxu0 %vm10013_vm6, %v10014_v43  ;;  %8201 = vmatprep.mubr.msk.f32.mxu1 %vm10013_vm6, %v10014_v43 }
0x17a9   :  { %9110 = vmatprep.subr.bf16.mxu1 %v10012_v40 }
0x17aa   :  { %v5572_v8 = vpop.f32.mrb[54].mxu1  ;;  %v5429_v12 = vpop.f32.mrb[62].mxu0  ;;  %9112 = vmatpush3.bf16.msra.mxu1 %v9111_v55 }
0x17ab   :  { %8153 = vmatmul.mubr.msk.f32.gmra.mrb[76].mxu0 %vm1359_vm5, %v5572_v8  ;;  %v8105_v57 = vpop.f32.mrb[55].mxu1  ;;  %8202 = vmatmul.mubr.msk.f32.gmra.mrb[68].mxu1 %vm1359_vm5, %v5429_v12  ;;  %v8076_v13 = vpop.f32.mrb[63].mxu0 }
0x17ac   :  { %8155 = vmatprep.mubr.msk.f32.mxu0 %vm10013_vm6, %v10014_v43  ;;  %8204 = vmatprep.mubr.msk.f32.mxu1 %vm10013_vm6, %v10014_v43 }
0x17ad   :  { %9113 = vmatprep.subr.bf16.mxu1 %v10012_v40 }
0x17ae   :  { %v5577_v11 = vpop.f32.mrb[56].mxu1  ;;  %v5434_v15 = vpop.f32.mrb[64].mxu0  ;;  %9115 = vmatpush3.bf16.msra.mxu1 %v9114_v44 }
0x17af   :  { %8156 = vmatmul.mubr.msk.f32.gmra.mrb[78].mxu0 %vm1359_vm5, %v5577_v11  ;;  %v8108_v16 = vpop.f32.mrb[57].mxu1  ;;  %8205 = vmatmul.mubr.msk.f32.gmra.mrb[70].mxu1 %vm1359_vm5, %v5434_v15  ;;  %v8079_v14 = vpop.f32.mrb[65].mxu0 }
0x17b0   :  { %8158 = vmatprep.mubr.msk.f32.mxu0 %vm10013_vm6, %v10014_v43  ;;  %8207 = vmatprep.mubr.msk.f32.mxu1 %vm10013_vm6, %v10014_v43 }
0x17b1   :  { %9116 = vmatprep.subr.bf16.mxu1 %v10012_v40 }
0x17b2   :  { %v5582_v17 = vpop.f32.mrb[58].mxu1  ;;  %v5439_v18 = vpop.f32.mrb[66].mxu0  ;;  %9118 = vmatpush3.bf16.msra.mxu1 %v9117_v61 }
0x17b3   :  { %8159 = vmatmul.mubr.msk.f32.gmra.mrb[80].mxu0 %vm1359_vm5, %v5582_v17  ;;  %v8111_v19 = vpop.f32.mrb[59].mxu1  ;;  %8208 = vmatmul.mubr.msk.f32.gmra.mrb[72].mxu1 %vm1359_vm5, %v5439_v18  ;;  %v8082_v20 = vpop.f32.mrb[67].mxu0 }
0x17b4   :  { %8218 = vmatprep.mubr.msk.f32.mxu0 %vm10013_vm6, %v10014_v43  ;;  %8267 = vmatprep.mubr.msk.f32.mxu1 %vm10013_vm6, %v10014_v43 }
0x17b5   :  { %9119 = vmatprep.subr.bf16.mxu1 %v10012_v40 }
0x17b6   :  { %9121 = vmatpush3.bf16.msra.mxu1 %v9120_v33 }
0x17b7   :  { %8219 = vmatmul.mubr.msk.f32.vlgmr.msra.gmra.mrb[82].mxu0 %vm732_vm4, %v5844_v21 }
0x17b8   :  { %8221 = vmatprep.mubr.msk.f32.mxu0 %vm10013_vm6, %v10014_v43 }
0x17bb   :  { %8222 = vmatmul.mubr.msk.f32.gmra.mrb[84].mxu0 %vm732_vm4, %v5845_v22 }
0x17bc   :  { %8224 = vmatprep.mubr.msk.f32.mxu0 %vm10013_vm6, %v10014_v43 }
0x17bf   :  { %8225 = vmatmul.mubr.msk.f32.gmra.mrb[86].mxu0 %vm732_vm4, %v5846_v23 }
0x17c0   :  { %8227 = vmatprep.mubr.msk.f32.mxu0 %vm10013_vm6, %v10014_v43 }
0x17c3   :  { %8228 = vmatmul.mubr.msk.f32.gmra.mrb[88].mxu0 %vm732_vm4, %v5847_v24 }
0x17c4   :  { %8230 = vmatprep.mubr.msk.f32.mxu0 %vm10013_vm6, %v10014_v43 }
0x17c7   :  { %8231 = vmatmul.mubr.msk.f32.gmra.mrb[90].mxu0 %vm732_vm4, %v5848_v26 }
0x17c8   :  { %8233 = vmatprep.mubr.msk.f32.mxu0 %vm10013_vm6, %v10014_v43 }
0x17cb   :  { %8234 = vmatmul.mubr.msk.f32.gmra.mrb[92].mxu0 %vm732_vm4, %v5849_v27 }
0x17cc   :  { %8236 = vmatprep.mubr.msk.f32.mxu0 %vm10013_vm6, %v10014_v43 }
0x17cf   :  { %8237 = vmatmul.mubr.msk.f32.gmra.mrb[94].mxu0 %vm732_vm4, %v5850_v28 }
0x186e   :  { %v5688_v36 = vpop.f32.mrb[68].mxu0  ;;  %v5809_v39 = vpop.f32.mrb[60].mxu1 }
0x186f   :  { %v8142_v58 = vpop.f32.mrb[69].mxu0  ;;  %v5810_v48 = vadd.f32 %v5809_v39, %v5688_v36  ;;  %v8191_v59 = vpop.f32.mrb[61].mxu1 }
0x1872   :  { %v5693_v46 = vpop.f32.mrb[70].mxu0  ;;  %v5814_v62 = vpop.f32.mrb[62].mxu1 }
0x1873   :  { %v8145_v54 = vpop.f32.mrb[71].mxu0  ;;  %v5815_v63 = vadd.f32 %v5814_v62, %v5693_v46  ;;  %v8194_v37 = vpop.f32.mrb[63].mxu1 }
0x1876   :  { %v5698_v56 = vpop.f32.mrb[72].mxu0  ;;  %v5819_v4 = vpop.f32.mrb[64].mxu1 }
0x1877   :  { %v8148_v6 = vpop.f32.mrb[73].mxu0  ;;  %v11082_v7 = vadd.f32 %v5819_v4, %v5698_v56  ;;  %v8197_v40 = vpop.f32.mrb[65].mxu1 }
0x187a   :  { %v5703_v1 = vpop.f32.mrb[74].mxu0  ;;  %v5824_v9 = vpop.f32.mrb[66].mxu1 }
0x187b   :  { %v8151_v10 = vpop.f32.mrb[75].mxu0  ;;  %v11084_v0 = vadd.f32 %v5824_v9, %v5703_v1  ;;  %v8200_v25 = vpop.f32.mrb[67].mxu1 }
0x187e   :  { %v5708_v3 = vpop.f32.mrb[76].mxu0  ;;  %v5829_v2 = vpop.f32.mrb[68].mxu1 }
0x187f   :  { %v8154_v5 = vpop.f32.mrb[77].mxu0  ;;  %v11086_v8 = vadd.f32 %v5829_v2, %v5708_v3  ;;  %v8203_v12 = vpop.f32.mrb[69].mxu1 }
0x1882   :  { %v5713_v57 = vpop.f32.mrb[78].mxu0  ;;  %v5834_v13 = vpop.f32.mrb[70].mxu1 }
0x1883   :  { %v8157_v11 = vpop.f32.mrb[79].mxu0  ;;  %v11088_v15 = vadd.f32 %v5834_v13, %v5713_v57  ;;  %v8206_v16 = vpop.f32.mrb[71].mxu1 }
0x1886   :  { %v5718_v14 = vpop.f32.mrb[80].mxu0  ;;  %v5839_v17 = vpop.f32.mrb[72].mxu1 }
0x1887   :  { %v8160_v18 = vpop.f32.mrb[81].mxu0  ;;  %v11090_v19 = vadd.f32 %v5839_v17, %v5718_v14  ;;  %v8209_v20 = vpop.f32.mrb[73].mxu1 }
0x188a   :  { %v5938_v21 = vpop.f32.mrb[82].mxu0 }
0x188b   :  { %8268 = vmatmul.mubr.msk.f32.vlgmr.msra.gmra.mrb[74].mxu1 %vm1359_vm5, %v5938_v21  ;;  %v8220_v22 = vpop.f32.mrb[83].mxu0 }
0x188c   :  { %8270 = vmatprep.mubr.msk.f32.mxu1 %vm10013_vm6, %v10014_v43 }
0x188e   :  { %v5943_v23 = vpop.f32.mrb[84].mxu0 }
0x188f   :  { %8271 = vmatmul.mubr.msk.f32.gmra.mrb[76].mxu1 %vm1359_vm5, %v5943_v23  ;;  %v8223_v24 = vpop.f32.mrb[85].mxu0 }
0x1890   :  { %8273 = vmatprep.mubr.msk.f32.mxu1 %vm10013_vm6, %v10014_v43 }
0x1892   :  { %v5948_v26 = vpop.f32.mrb[86].mxu0 }
0x1893   :  { %8274 = vmatmul.mubr.msk.f32.gmra.mrb[78].mxu1 %vm1359_vm5, %v5948_v26  ;;  %v8226_v27 = vpop.f32.mrb[87].mxu0 }
0x1894   :  { %8276 = vmatprep.mubr.msk.f32.mxu1 %vm10013_vm6, %v10014_v43 }
0x1896   :  { %v5953_v28 = vpop.f32.mrb[88].mxu0 }
0x1897   :  { %8277 = vmatmul.mubr.msk.f32.gmra.mrb[80].mxu1 %vm1359_vm5, %v5953_v28  ;;  %v8229_v29 = vpop.f32.mrb[89].mxu0 }
0x1898   :  { %8279 = vmatprep.mubr.msk.f32.mxu1 %vm10013_vm6, %v10014_v43 }
0x189a   :  { %v5958_v30 = vpop.f32.mrb[90].mxu0 }
0x189b   :  { %8280 = vmatmul.mubr.msk.f32.gmra.mrb[82].mxu1 %vm1359_vm5, %v5958_v30  ;;  %v8232_v32 = vpop.f32.mrb[91].mxu0 }
0x189c   :  { %8282 = vmatprep.mubr.msk.f32.mxu1 %vm10013_vm6, %v10014_v43 }
0x189e   :  { %v5963_v34 = vpop.f32.mrb[92].mxu0 }
0x189f   :  { %8283 = vmatmul.mubr.msk.f32.gmra.mrb[84].mxu1 %vm1359_vm5, %v5963_v34  ;;  %v8235_v35 = vpop.f32.mrb[93].mxu0 }
0x18a0   :  { %8285 = vmatprep.mubr.msk.f32.mxu1 %vm10013_vm6, %v10014_v43 }
0x18a2   :  { %v5968_v45 = vpop.f32.mrb[94].mxu0 }
0x18a3   :  { %8286 = vmatmul.mubr.msk.f32.gmra.mrb[86].mxu1 %vm1359_vm5, %v5968_v45  ;;  %v8238_v47 = vpop.f32.mrb[95].mxu0 }
0x195e   :  { %v6074_v38 = vpop.f32.mrb[74].mxu1 }
0x195f   :  { %v6108_v49 = vadd.f32 %v6074_v38, %v5810_v48  ;;  %v8269_v52 = vpop.f32.mrb[75].mxu1 }
0x1961   :  { %v6121_v55 = vadd.f32 %v6415_v53, %v6108_v49 }
0x1962   :  { %v6079_v41 = vpop.f32.mrb[76].mxu1 }
0x1963   :  { %v6128_v50 = vsub.f32 0.0, %v6121_v55  ;;  %v6109_v44 = vadd.f32 %v6079_v41, %v5815_v63  ;;  %v8272_v51 = vpop.f32.mrb[77].mxu1 }
0x1965   :  { %v6135_v60 = vmul.f32 1.442695, %v6128_v50  ;;  %v6122_v61 = vadd.f32 %v6415_v53, %v6109_v44 }
0x1966   :  { %v6084_v42 = vpop.f32.mrb[78].mxu1 }
0x1967   :  { %9226 = vpow2.f32 %v6135_v60  ;;  %v6129_v31 = vsub.f32 0.0, %v6122_v61  ;;  %v6110_v43 = vadd.f32 %v6084_v42, %v11082_v7  ;;  %v8275_v33 = vpop.f32.mrb[79].mxu1 }
0x1969   :  { %v6137_v36 = vmul.f32 1.442695, %v6129_v31  ;;  %v6123_v39 = vadd.f32 %v6415_v53, %v6110_v43 }
0x196a   :  { %v6089_v58 = vpop.f32.mrb[80].mxu1 }
0x196b   :  { %9228 = vpow2.f32 %v6137_v36  ;;  %v6130_v59 = vsub.f32 0.0, %v6123_v39  ;;  %v6111_v48 = vadd.f32 %v6089_v58, %v11084_v0  ;;  %v8278_v46 = vpop.f32.mrb[81].mxu1 }
0x196d   :  { %v6139_v62 = vmul.f32 1.442695, %v6130_v59  ;;  %v6124_v54 = vadd.f32 %v6415_v53, %v6111_v48 }
0x196e   :  { %v6094_v63 = vpop.f32.mrb[82].mxu1 }
0x196f   :  { %9230 = vpow2.f32 %v6139_v62  ;;  %v6131_v37 = vsub.f32 0.0, %v6124_v54  ;;  %v6112_v56 = vadd.f32 %v6094_v63, %v11086_v8  ;;  %v8281_v4 = vpop.f32.mrb[83].mxu1 }
0x1971   :  { %v9227_v6 = vpop.eup %9226  ;;  %v6141_v40 = vmul.f32 1.442695, %v6131_v37  ;;  %v6125_v7 = vadd.f32 %v6415_v53, %v6112_v56 }
0x1972   :  { %v6149_v1 = vadd.f32 1.0, %v9227_v6  ;;  %v6099_v9 = vpop.f32.mrb[84].mxu1 }
0x1973   :  { %9232 = vpow2.f32 %v6141_v40  ;;  %v6132_v10 = vsub.f32 0.0, %v6125_v7  ;;  %v6113_v25 = vadd.f32 %v6099_v9, %v11088_v15  ;;  %v8284_v3 = vpop.f32.mrb[85].mxu1 }
0x1974   :  { %9234 = vrcp.f32 %v6149_v1 }
0x1975   :  { %v9229_v0 = vpop.eup %9228  ;;  %v6143_v2 = vmul.f32 1.442695, %v6132_v10  ;;  %v6126_v5 = vadd.f32 %v6415_v53, %v6113_v25 }
0x1976   :  { %v6150_v12 = vadd.f32 1.0, %v9229_v0  ;;  %v6104_v57 = vpop.f32.mrb[86].mxu1 }
0x1977   :  { %9236 = vpow2.f32 %v6143_v2  ;;  %v6133_v13 = vsub.f32 0.0, %v6126_v5  ;;  %v6114_v8 = vadd.f32 %v6104_v57, %v11090_v19  ;;  %v8287_v11 = vpop.f32.mrb[87].mxu1 }
0x1978   :  { %9238 = vrcp.f32 %v6150_v12 }
0x1979   :  { %v9231_v16 = vpop.eup %9230  ;;  %v6145_v14 = vmul.f32 1.442695, %v6133_v13  ;;  %v6127_v17 = vadd.f32 %v6415_v53, %v6114_v8 }
0x197a   :  { %v6151_v18 = vadd.f32 1.0, %v9231_v16 }
0x197b   :  { %9240 = vpow2.f32 %v6145_v14  ;;  %v6134_v20 = vsub.f32 0.0, %v6127_v17 }
0x197c   :  { %9242 = vrcp.f32 %v6151_v18 }
0x197d   :  { %v9233_v15 = vpop.eup %9232  ;;  %v6147_v21 = vmul.f32 1.442695, %v6134_v20 }
0x197e   :  { %v9235_v22 = vpop.eup %9234  ;;  %v6152_v23 = vadd.f32 1.0, %v9233_v15 }
0x197f   :  { %6170 = vst.msk [vmem:[#allocation47] sm:$0xff] %vm732_vm4, %v9235_v22  ;;  %9244 = vpow2.f32 %v6147_v21 }
0x1980   :  { %9246 = vrcp.f32 %v6152_v23 }
0x1981   :  { %v9237_v24 = vpop.eup %9236 }
0x1982   :  { %v9239_v26 = vpop.eup %9238  ;;  %v6153_v19 = vadd.f32 1.0, %v9237_v24 }
0x1983   :  { %6171 = vst.msk [vmem:[#allocation47 + $0x8] sm:$0xff] %vm732_vm4, %v9239_v26 }
0x1984   :  { %9248 = vrcp.f32 %v6153_v19 }
0x1985   :  { %v9241_v27 = vpop.eup %9240 }
0x1986   :  { %v9243_v28 = vpop.eup %9242  ;;  %v6154_v29 = vadd.f32 1.0, %v9241_v27 }
0x1987   :  { %6172 = vst.msk [vmem:[#allocation47 + $0x10] sm:$0xff] %vm732_vm4, %v9243_v28 }
0x1988   :  { %9250 = vrcp.f32 %v6154_v29 }
0x1989   :  { %v9245_v30 = vpop.eup %9244 }
0x198a   :  { %v9247_v32 = vpop.eup %9246  ;;  %v6155_v34 = vadd.f32 1.0, %v9245_v30 }
0x198b   :  { %6173 = vst.msk [vmem:[#allocation47 + $0x18] sm:$0xff] %vm732_vm4, %v9247_v32 }
0x198c   :  { %9252 = vrcp.f32 %v6155_v34 }
0x198e   :  { %v9249_v35 = vpop.eup %9248 }
0x198f   :  { %6174 = vst.msk [vmem:[#allocation47 + $0x20] sm:$0xff] %vm732_vm4, %v9249_v35 }
0x1992   :  { %v9251_v45 = vpop.eup %9250 }
0x1993   :  { %6175 = vst.msk [vmem:[#allocation47 + $0x28] sm:$0xff] %vm732_vm4, %v9251_v45 }
0x1996   :  { %v9253_v47 = vpop.eup %9252 }
0x1997   :  { %6176 = vst.msk [vmem:[#allocation47 + $0x30] sm:$0xff] %vm732_vm4, %v9253_v47 }
0x1998   :  { %9903 = shalt.err (!%p9900_p12)
}
0x1999   :  { %s9904_s16 = scalar_lea.hbm %s10184_s21, 896 }
0x199a   :  { %p9905_p13 = scmp.ne.s32.totalorder %s10184_s21, %s9904_s16  ;;  %p9908_p0 = scmp.lt.u32.totalorder %s9904_s16, %s10184_s21 }
0x199c   :  { %p9910_p1 = pnand %p9908_p0, %p9905_p13 }
0x199e   :  { %9913 = shalt.err (!%p9910_p1)
}
0x199f   :  { %6188 = dma.vmem_to_hbm [thread:$0]  %s6183_s10, 896, %s10184_s21, [#allocation4], %s9980_s11, %s9980_s11, %s9981_s15  }
0x19a0   :  { %9944 = dma.done.wait [#allocation4], 896  }
0x19a1   :  { %9945 = vsyncadd [#allocation4], 4294966400 }
0x19a2   :  { %6192 = vsyncpa [#allocation3], 1 }
0x19a3   :  { %6193 = vsyncpa [#allocation6], 1 }
0x19a4   :  { %6194 = vsyncpa [#allocation9], 1 }
0x19a5   :  { %6195 = vsyncpa [#allocation12], 1 }
0x19a6   :  { %6196 = vsyncpa [#allocation15], 1 }
0x19a7   :  { %6197 = vsyncpa [#allocation18], 1 }
0x19a8   :  { %6198 = vsyncpa [#allocation21], 1 }
0x19a9   :  { %6199 = vsyncpa [#allocation24], 1 }
0x19aa   :  { %6200 = vsyncpa [#allocation27], 1 }
0x19ab   :  { %6201 = vsyncpa [#allocation30], 1 }
0x19ac   :  { %6202 = vsyncpa [#allocation33], 1 }
0x19ad   :  { %6203 = vsyncpa [#allocation36], 1 }
0x19ae   :  { %6204 = vsyncpa [#allocation39], 1 }
0x19af   :  { %6205 = vsyncpa [#allocation42], 1 }
0x19b0   :  { %6206 = vsyncpa [#allocation45], 1 }
0x19b1   :  { %6207 = vsyncpa [#allocation4], 1 }

</bundles_post_ra>
